<compile_context>
chip_gen: v7x
topology: tpu7x:2x2x1
jax: 0.10.0
libtpu: 0.0.40
codegen_flags: <defaults>
</compile_context>

<pallas_src>
import math

import jax
import jax.numpy as jnp
from jax.experimental import pallas as pl
from jax.experimental.pallas import tpu as pltpu

# ---------------- small, module-consistent hyperparameters ----------------
M_WINDOW = 8                 # input sequence length (seq_len)
H_WINDOW = 4                 # predicted horizon
INPUT_DIM = 2
HIDDEN = 64                  # d_model  (small stand-in for 512)
NUM_HEADS = 8
HEAD_DIM = HIDDEN // NUM_HEADS
FF_DIM = 4 * HIDDEN
OUT_DIM = H_WINDOW * INPUT_DIM
OUT_PAD = 128                # lane-dense padded output width
MAX_LEN = 1000
LN_EPS = 1e-5                # PyTorch LayerNorm default eps
TB_DEFAULT = 128             # batch-tile size (64-256 recommended)

# rows of the packed bias / LayerNorm-vector slab
(ROW_BEMB, ROW_BQKV, ROW_BO, ROW_G1, ROW_BETA1,
 ROW_BFF1, ROW_BFF2, ROW_G2, ROW_BETA2, ROW_BOUT) = range(10)
N_VEC_ROWS = 10
VEC_W = max(FF_DIM, 3 * HIDDEN, OUT_PAD)   # 256


# ------------------------------ Pallas kernel ------------------------------
def vpt360_kernel(x_ref, pe_ref,
                  wemb_ref, wqkv_ref, wo_ref, w1_ref, w2_ref, wout_ref,
                  vecs_ref, out_ref):
    n_rows = x_ref.shape[0]                 # TB * M_WINDOW (static)
    tb = n_rows // M_WINDOW

    def vec(row, width):                    # (1, width) bias/scale row
        return vecs_ref[row:row + 1, 0:width]

    # ---- input embedding + positional encoding (PE quirk pre-expanded) ----
    h = jnp.dot(x_ref[...], wemb_ref[...], preferred_element_type=jnp.float32)
    h = h + vec(ROW_BEMB, HIDDEN) + pe_ref[...]

    # ---- fused QKV projection: one (TB*S, H) @ (H, 3H) matmul ----
    qkv = jnp.dot(h, wqkv_ref[...], preferred_element_type=jnp.float32)
    qkv = qkv + vec(ROW_BQKV, 3 * HIDDEN)
    qkv3 = qkv.reshape(tb, M_WINDOW, 3 * HIDDEN)

    # ---- multi-head self-attention, batched over the TB batch tile ----
    scale = 1.0 / math.sqrt(HEAD_DIM)
    head_outs = []
    for hh in range(NUM_HEADS):             # static small loop over heads
        lo = hh * HEAD_DIM
        qh = qkv3[:, :, lo:lo + HEAD_DIM]
        kh = qkv3[:, :, HIDDEN + lo:HIDDEN + lo + HEAD_DIM]
        vh = qkv3[:, :, 2 * HIDDEN + lo:2 * HIDDEN + lo + HEAD_DIM]
        s = jnp.einsum("bsd,btd->bst", qh, kh,
                       preferred_element_type=jnp.float32) * scale
        m = jnp.max(s, axis=-1, keepdims=True)
        e = jnp.exp(s - m)
        p = e * pl.reciprocal(jnp.sum(e, axis=-1, keepdims=True), approx=True)
        head_outs.append(jnp.einsum("bst,btd->bsd", p, vh,
                                    preferred_element_type=jnp.float32))
    attn = jnp.concatenate(head_outs, axis=-1).reshape(n_rows, HIDDEN)
    attn = (jnp.dot(attn, wo_ref[...], preferred_element_type=jnp.float32)
            + vec(ROW_BO, HIDDEN))

    # ---- residual + LayerNorm 1 (post-norm, PyTorch norm_first=False) ----
    h = h + attn
    mu = jnp.mean(h, axis=-1, keepdims=True)
    var = jnp.mean((h - mu) ** 2, axis=-1, keepdims=True)
    h = ((h - mu) * jax.lax.rsqrt(var + LN_EPS) * vec(ROW_G1, HIDDEN)
         + vec(ROW_BETA1, HIDDEN))

    # ---- feed-forward (ReLU) on the full (TB*S, H) slab ----
    # (Only the last token feeds the head; FFN could be restricted to
    #  last-token rows for a further ~8x FLOP cut with identical outputs.)
    ff = jnp.dot(h, w1_ref[...], preferred_element_type=jnp.float32) + vec(ROW_BFF1, FF_DIM)
    ff = jnp.maximum(ff, 0.0)
    ff = jnp.dot(ff, w2_ref[...], preferred_element_type=jnp.float32) + vec(ROW_BFF2, HIDDEN)

    # ---- residual + LayerNorm 2 ----
    h = h + ff
    mu = jnp.mean(h, axis=-1, keepdims=True)
    var = jnp.mean((h - mu) ** 2, axis=-1, keepdims=True)
    h = ((h - mu) * jax.lax.rsqrt(var + LN_EPS) * vec(ROW_G2, HIDDEN)
         + vec(ROW_BETA2, HIDDEN))

    # ---- output head on last time step only (lane-dense padded to 128) ----
    last = h.reshape(tb, M_WINDOW, HIDDEN)[:, M_WINDOW - 1:M_WINDOW, :]
    last = last.reshape(tb, HIDDEN)
    out = (jnp.dot(last, wout_ref[...], preferred_element_type=jnp.float32)
           + vec(ROW_BOUT, OUT_PAD))
    out_ref[...] = out


# ------------------------------ glue (plain JAX) ------------------------------
def make_pe_table():
    pos = jnp.arange(MAX_LEN, dtype=jnp.float32)[:, None]                   # (L, 1)
    div = jnp.power(10000.0,
                    -jnp.arange(0, HIDDEN, 2, dtype=jnp.float32) / HIDDEN)  # (H/2,)
    pe = jnp.zeros((MAX_LEN, HIDDEN), dtype=jnp.float32)
    pe = pe.at[:, 0::2].set(jnp.sin(pos * div))
    pe = pe.at[:, 1::2].set(jnp.cos(pos * div))
    return pe


def init_params(key):
    ks = jax.random.split(key, 8)

    def w(k, shape, scale=0.05):
        return (scale * jax.random.normal(k, shape)).astype(jnp.float32)

    zeros = lambda n: jnp.zeros((1, n), jnp.float32)
    ones = lambda n: jnp.ones((1, n), jnp.float32)

    return dict(
        wemb=w(ks[0], (INPUT_DIM, HIDDEN)), bemb=zeros(HIDDEN),
        wq=w(ks[1], (HIDDEN, HIDDEN)), bq=zeros(HIDDEN),
        wk=w(ks[2], (HIDDEN, HIDDEN)), bk=zeros(HIDDEN),
        wv=w(ks[3], (HIDDEN, HIDDEN)), bv=zeros(HIDDEN),
        wo=w(ks[4], (HIDDEN, HIDDEN)), bo=zeros(HIDDEN),
        g1=ones(HIDDEN), beta1=zeros(HIDDEN),
        w1=w(ks[5], (HIDDEN, FF_DIM)), bff1=zeros(FF_DIM),
        w2=w(ks[6], (FF_DIM, HIDDEN)), bff2=zeros(HIDDEN),
        g2=ones(HIDDEN), beta2=zeros(HIDDEN),
        wout=w(ks[7], (HIDDEN, OUT_DIM)), bout=zeros(OUT_DIM),
    )


def pack_params(p):
    """Pack 20 small tensors into 7 kernel operands (weights + one vec slab)."""
    wqkv = jnp.concatenate([p["wq"], p["wk"], p["wv"]], axis=1)        # (H, 3H)
    bqkv = jnp.concatenate([p["bq"], p["bk"], p["bv"]], axis=1)        # (1, 3H)
    wout_p = jnp.zeros((HIDDEN, OUT_PAD), jnp.float32).at[:, :OUT_DIM].set(p["wout"])
    bout_p = jnp.zeros((1, OUT_PAD), jnp.float32).at[:, :OUT_DIM].set(p["bout"])

    rows = [p["bemb"], bqkv, p["bo"], p["g1"], p["beta1"],
            p["bff1"], p["bff2"], p["g2"], p["beta2"], bout_p]          # ROW_* order
    vecs = jnp.zeros((N_VEC_ROWS, VEC_W), jnp.float32)
    for i, r in enumerate(rows):
        vecs = vecs.at[i, :r.shape[-1]].set(r.reshape(-1))
    return (p["wemb"], wqkv, p["wo"], p["w1"], p["w2"], wout_p, vecs)


def vpt360_forward(ip, params, pe_table, tb=TB_DEFAULT):
    x = ip[0]                                   # matches `x = ip[0]` in PyTorch
    B, S, Din = x.shape
    assert S == M_WINDOW and Din == INPUT_DIM
    # PE quirk: pe is indexed by the *batch* index, exactly as the module does.
    assert B <= MAX_LEN, "PositionalEncoding quirk requires batch <= max_len"

    tb = max(1, min(tb, B))
    n_blocks = (B + tb - 1) // tb
    b_pad = n_blocks * tb

    pe_b = pe_table[:B]                                           # (B, HIDDEN)
    if b_pad != B:
        x = jnp.concatenate([x, jnp.zeros((b_pad - B, S, Din), x.dtype)], axis=0)
        pe_b = jnp.concatenate([pe_b, jnp.zeros((b_pad - B, HIDDEN), pe_b.dtype)], axis=0)

    x_rows = x.reshape(b_pad * S, Din).astype(jnp.float32)        # (B*S, INPUT_DIM)
    pe_rows = jnp.repeat(pe_b, S, axis=0).astype(jnp.float32)     # (B*S, HIDDEN)

    packed = pack_params(params)
    rows_blk = tb * S

    def row_spec(width):
        return pl.BlockSpec((rows_blk, width), lambda b: (b, 0))

    def full_spec(arr):
        nd = arr.ndim
        return pl.BlockSpec(tuple(arr.shape), lambda b, _n=nd: (0,) * _n)

    in_specs = [row_spec(Din), row_spec(HIDDEN)] + [full_spec(a) for a in packed]

    out = pl.pallas_call(
        vpt360_kernel,
        out_shape=jax.ShapeDtypeStruct((b_pad, OUT_PAD), jnp.float32),
        grid_spec=pltpu.PrefetchScalarGridSpec(
            num_scalar_prefetch=0,
            grid=(n_blocks,),
            in_specs=in_specs,
            out_specs=pl.BlockSpec((tb, OUT_PAD), lambda b: (b, 0)),
        ),
        compiler_params=pltpu.CompilerParams(
            dimension_semantics=("parallel",)),
    )(x_rows, pe_rows, *packed)

    return out[:B, :OUT_DIM].reshape(B, H_WINDOW, INPUT_DIM)


if __name__ == "__main__":
    key = jax.random.PRNGKey(0)
    kx, kp = jax.random.split(key)

    B = 16
    x = jax.random.normal(kx, (B, M_WINDOW, INPUT_DIM), dtype=jnp.float32)
    params = init_params(kp)
    pe_table = make_pe_table()

    # tb=8 -> grid of 2 batch tiles (exercises pipelining / parallel axis).
    out = vpt360_forward((x,), params, pe_table, tb=8)
    out = jax.block_until_ready(out)
    assert out.shape == (B, H_WINDOW, INPUT_DIM)
    assert bool(jnp.all(jnp.isfinite(out)))
    print("KERNEL_OK")
</pallas_src>

<mosaic_0001>
module attributes {stable_mosaic.version = 11 : i64} {
  func.func @vpt360_kernel(%arg0: i32, %arg1: memref<64x2xf32, #tpu.memory_space<vmem>>, %arg2: memref<64x64xf32, #tpu.memory_space<vmem>>, %arg3: memref<2x64xf32, #tpu.memory_space<vmem>>, %arg4: memref<64x192xf32, #tpu.memory_space<vmem>>, %arg5: memref<64x64xf32, #tpu.memory_space<vmem>>, %arg6: memref<64x256xf32, #tpu.memory_space<vmem>>, %arg7: memref<256x64xf32, #tpu.memory_space<vmem>>, %arg8: memref<64x128xf32, #tpu.memory_space<vmem>>, %arg9: memref<10x256xf32, #tpu.memory_space<vmem>>, %arg10: memref<8x128xf32, #tpu.memory_space<vmem>>) attributes {dimension_semantics = [#tpu.dimension_semantics<parallel>], iteration_bounds = array<i64: 2>, scalar_prefetch = 0 : i64, scratch_operands = 0 : i64, tpu.core_type = #tpu.core_type<tc>, window_params = [{transform_indices = @transform_0, window_bounds = array<i64: 64, 2>}, {transform_indices = @transform_1, window_bounds = array<i64: 64, 64>}, {pipeline_mode = #tpu.pipeline_mode<synchronous>, transform_indices = @transform_2, window_bounds = array<i64: 2, 64>}, {pipeline_mode = #tpu.pipeline_mode<synchronous>, transform_indices = @transform_3, window_bounds = array<i64: 64, 192>}, {pipeline_mode = #tpu.pipeline_mode<synchronous>, transform_indices = @transform_4, window_bounds = array<i64: 64, 64>}, {pipeline_mode = #tpu.pipeline_mode<synchronous>, transform_indices = @transform_5, window_bounds = array<i64: 64, 256>}, {pipeline_mode = #tpu.pipeline_mode<synchronous>, transform_indices = @transform_6, window_bounds = array<i64: 256, 64>}, {pipeline_mode = #tpu.pipeline_mode<synchronous>, transform_indices = @transform_7, window_bounds = array<i64: 64, 128>}, {pipeline_mode = #tpu.pipeline_mode<synchronous>, transform_indices = @transform_8, window_bounds = array<i64: 10, 256>}, {transform_indices = @transform_9, window_bounds = array<i64: 8, 128>}]} {
    %c0 = arith.constant 0 : index
    %c0_0 = arith.constant 0 : index
    %0 = vector.load %arg1[%c0, %c0_0] : memref<64x2xf32, #tpu.memory_space<vmem>>, vector<64x2xf32>
    %c0_1 = arith.constant 0 : index
    %c0_2 = arith.constant 0 : index
    %1 = vector.load %arg3[%c0_1, %c0_2] : memref<2x64xf32, #tpu.memory_space<vmem>>, vector<2x64xf32>
    %cst = arith.constant dense<0.000000e+00> : vector<64x64xf32>
    %2 = tpu.matmul %0, %1, %cst {dimension_numbers = #tpu.dot_dimension_numbers<[1], [0], [0], [1], [0, 0, 1, 1], [], []>} : vector<64x2xf32>, vector<2x64xf32>, vector<64x64xf32> -> vector<64x64xf32>
    %c0_3 = arith.constant 0 : index
    %c0_4 = arith.constant 0 : index
    %3 = vector.load %arg9[%c0_3, %c0_4] : memref<10x256xf32, #tpu.memory_space<vmem>>, vector<1x64xf32>
    %4 = vector.broadcast %3 : vector<1x64xf32> to vector<64x64xf32>
    %5 = arith.addf %2, %4 : vector<64x64xf32>
    %c0_5 = arith.constant 0 : index
    %c0_6 = arith.constant 0 : index
    %6 = vector.load %arg2[%c0_5, %c0_6] : memref<64x64xf32, #tpu.memory_space<vmem>>, vector<64x64xf32>
    %7 = arith.addf %5, %6 : vector<64x64xf32>
    %c0_7 = arith.constant 0 : index
    %c0_8 = arith.constant 0 : index
    %8 = vector.load %arg4[%c0_7, %c0_8] : memref<64x192xf32, #tpu.memory_space<vmem>>, vector<64x192xf32>
    %cst_9 = arith.constant dense<0.000000e+00> : vector<64x192xf32>
    %9 = tpu.matmul %7, %8, %cst_9 {dimension_numbers = #tpu.dot_dimension_numbers<[1], [0], [0], [1], [0, 0, 1, 1], [], []>} : vector<64x64xf32>, vector<64x192xf32>, vector<64x192xf32> -> vector<64x192xf32>
    %c1 = arith.constant 1 : index
    %c0_10 = arith.constant 0 : index
    %10 = vector.load %arg9[%c1, %c0_10] : memref<10x256xf32, #tpu.memory_space<vmem>>, vector<1x192xf32>
    %11 = vector.broadcast %10 : vector<1x192xf32> to vector<64x192xf32>
    %12 = arith.addf %9, %11 : vector<64x192xf32>
    %13 = vector.shape_cast %12 : vector<64x192xf32> to vector<8x8x192xf32>
    %14 = vector.extract_strided_slice %13 {offsets = [0, 0, 0], sizes = [8, 8, 8], strides = [1, 1, 1]} : vector<8x8x192xf32> to vector<8x8x8xf32>
    %15 = vector.extract_strided_slice %13 {offsets = [0, 0, 64], sizes = [8, 8, 8], strides = [1, 1, 1]} : vector<8x8x192xf32> to vector<8x8x8xf32>
    %16 = vector.extract_strided_slice %13 {offsets = [0, 0, 128], sizes = [8, 8, 8], strides = [1, 1, 1]} : vector<8x8x192xf32> to vector<8x8x8xf32>
    "tpu.trace_start"() <{level = 10 : i32, message = "bsd,btd->bst"}> : () -> ()
    %cst_11 = arith.constant dense<0.000000e+00> : vector<8x8x8xf32>
    %17 = tpu.matmul %14, %15, %cst_11 {dimension_numbers = #tpu.dot_dimension_numbers<[2], [2], [1], [1], [0, 0, 0, 1, 1, 1], [0], [0]>} : vector<8x8x8xf32>, vector<8x8x8xf32>, vector<8x8x8xf32> -> vector<8x8x8xf32>
    "tpu.trace_stop"() : () -> ()
    %cst_12 = arith.constant 0.353553385 : f32
    %18 = vector.broadcast %cst_12 : f32 to vector<8x8x8xf32>
    %19 = arith.mulf %17, %18 : vector<8x8x8xf32>
    %cst_13 = arith.constant dense<0xFF800000> : vector<8x8xf32>
    %20 = vector.multi_reduction <maximumf>, %19, %cst_13 [2] : vector<8x8x8xf32> to vector<8x8xf32>
    %21 = vector.shape_cast %20 : vector<8x8xf32> to vector<8x8x1xf32>
    %22 = vector.broadcast %21 : vector<8x8x1xf32> to vector<8x8x8xf32>
    %23 = arith.subf %19, %22 : vector<8x8x8xf32>
    %24 = math.exp %23 : vector<8x8x8xf32>
    %cst_14 = arith.constant dense<0.000000e+00> : vector<8x8xf32>
    %25 = vector.multi_reduction <add>, %24, %cst_14 [2] : vector<8x8x8xf32> to vector<8x8xf32>
    %26 = vector.shape_cast %25 : vector<8x8xf32> to vector<8x8x1xf32>
    %27 = tpu.reciprocal %26 {approx = true} : vector<8x8x1xf32> -> vector<8x8x1xf32>
    %28 = vector.broadcast %27 : vector<8x8x1xf32> to vector<8x8x8xf32>
    %29 = arith.mulf %24, %28 : vector<8x8x8xf32>
    "tpu.trace_start"() <{level = 10 : i32, message = "bst,btd->bsd"}> : () -> ()
    %cst_15 = arith.constant dense<0.000000e+00> : vector<8x8x8xf32>
    %30 = tpu.matmul %29, %16, %cst_15 {dimension_numbers = #tpu.dot_dimension_numbers<[2], [1], [1], [2], [0, 0, 0, 1, 1, 2], [0], [0]>} : vector<8x8x8xf32>, vector<8x8x8xf32>, vector<8x8x8xf32> -> vector<8x8x8xf32>
    "tpu.trace_stop"() : () -> ()
    %31 = vector.extract_strided_slice %13 {offsets = [0, 0, 8], sizes = [8, 8, 8], strides = [1, 1, 1]} : vector<8x8x192xf32> to vector<8x8x8xf32>
    %32 = vector.extract_strided_slice %13 {offsets = [0, 0, 72], sizes = [8, 8, 8], strides = [1, 1, 1]} : vector<8x8x192xf32> to vector<8x8x8xf32>
    %33 = vector.extract_strided_slice %13 {offsets = [0, 0, 136], sizes = [8, 8, 8], strides = [1, 1, 1]} : vector<8x8x192xf32> to vector<8x8x8xf32>
    "tpu.trace_start"() <{level = 10 : i32, message = "bsd,btd->bst"}> : () -> ()
    %cst_16 = arith.constant dense<0.000000e+00> : vector<8x8x8xf32>
    %34 = tpu.matmul %31, %32, %cst_16 {dimension_numbers = #tpu.dot_dimension_numbers<[2], [2], [1], [1], [0, 0, 0, 1, 1, 1], [0], [0]>} : vector<8x8x8xf32>, vector<8x8x8xf32>, vector<8x8x8xf32> -> vector<8x8x8xf32>
    "tpu.trace_stop"() : () -> ()
    %cst_17 = arith.constant 0.353553385 : f32
    %35 = vector.broadcast %cst_17 : f32 to vector<8x8x8xf32>
    %36 = arith.mulf %34, %35 : vector<8x8x8xf32>
    %cst_18 = arith.constant dense<0xFF800000> : vector<8x8xf32>
    %37 = vector.multi_reduction <maximumf>, %36, %cst_18 [2] : vector<8x8x8xf32> to vector<8x8xf32>
    %38 = vector.shape_cast %37 : vector<8x8xf32> to vector<8x8x1xf32>
    %39 = vector.broadcast %38 : vector<8x8x1xf32> to vector<8x8x8xf32>
    %40 = arith.subf %36, %39 : vector<8x8x8xf32>
    %41 = math.exp %40 : vector<8x8x8xf32>
    %cst_19 = arith.constant dense<0.000000e+00> : vector<8x8xf32>
    %42 = vector.multi_reduction <add>, %41, %cst_19 [2] : vector<8x8x8xf32> to vector<8x8xf32>
    %43 = vector.shape_cast %42 : vector<8x8xf32> to vector<8x8x1xf32>
    %44 = tpu.reciprocal %43 {approx = true} : vector<8x8x1xf32> -> vector<8x8x1xf32>
    %45 = vector.broadcast %44 : vector<8x8x1xf32> to vector<8x8x8xf32>
    %46 = arith.mulf %41, %45 : vector<8x8x8xf32>
    "tpu.trace_start"() <{level = 10 : i32, message = "bst,btd->bsd"}> : () -> ()
    %cst_20 = arith.constant dense<0.000000e+00> : vector<8x8x8xf32>
    %47 = tpu.matmul %46, %33, %cst_20 {dimension_numbers = #tpu.dot_dimension_numbers<[2], [1], [1], [2], [0, 0, 0, 1, 1, 2], [0], [0]>} : vector<8x8x8xf32>, vector<8x8x8xf32>, vector<8x8x8xf32> -> vector<8x8x8xf32>
    "tpu.trace_stop"() : () -> ()
    %48 = vector.extract_strided_slice %13 {offsets = [0, 0, 16], sizes = [8, 8, 8], strides = [1, 1, 1]} : vector<8x8x192xf32> to vector<8x8x8xf32>
    %49 = vector.extract_strided_slice %13 {offsets = [0, 0, 80], sizes = [8, 8, 8], strides = [1, 1, 1]} : vector<8x8x192xf32> to vector<8x8x8xf32>
    %50 = vector.extract_strided_slice %13 {offsets = [0, 0, 144], sizes = [8, 8, 8], strides = [1, 1, 1]} : vector<8x8x192xf32> to vector<8x8x8xf32>
    "tpu.trace_start"() <{level = 10 : i32, message = "bsd,btd->bst"}> : () -> ()
    %cst_21 = arith.constant dense<0.000000e+00> : vector<8x8x8xf32>
    %51 = tpu.matmul %48, %49, %cst_21 {dimension_numbers = #tpu.dot_dimension_numbers<[2], [2], [1], [1], [0, 0, 0, 1, 1, 1], [0], [0]>} : vector<8x8x8xf32>, vector<8x8x8xf32>, vector<8x8x8xf32> -> vector<8x8x8xf32>
    "tpu.trace_stop"() : () -> ()
    %cst_22 = arith.constant 0.353553385 : f32
    %52 = vector.broadcast %cst_22 : f32 to vector<8x8x8xf32>
    %53 = arith.mulf %51, %52 : vector<8x8x8xf32>
    %cst_23 = arith.constant dense<0xFF800000> : vector<8x8xf32>
    %54 = vector.multi_reduction <maximumf>, %53, %cst_23 [2] : vector<8x8x8xf32> to vector<8x8xf32>
    %55 = vector.shape_cast %54 : vector<8x8xf32> to vector<8x8x1xf32>
    %56 = vector.broadcast %55 : vector<8x8x1xf32> to vector<8x8x8xf32>
    %57 = arith.subf %53, %56 : vector<8x8x8xf32>
    %58 = math.exp %57 : vector<8x8x8xf32>
    %cst_24 = arith.constant dense<0.000000e+00> : vector<8x8xf32>
    %59 = vector.multi_reduction <add>, %58, %cst_24 [2] : vector<8x8x8xf32> to vector<8x8xf32>
    %60 = vector.shape_cast %59 : vector<8x8xf32> to vector<8x8x1xf32>
    %61 = tpu.reciprocal %60 {approx = true} : vector<8x8x1xf32> -> vector<8x8x1xf32>
    %62 = vector.broadcast %61 : vector<8x8x1xf32> to vector<8x8x8xf32>
    %63 = arith.mulf %58, %62 : vector<8x8x8xf32>
    "tpu.trace_start"() <{level = 10 : i32, message = "bst,btd->bsd"}> : () -> ()
    %cst_25 = arith.constant dense<0.000000e+00> : vector<8x8x8xf32>
    %64 = tpu.matmul %63, %50, %cst_25 {dimension_numbers = #tpu.dot_dimension_numbers<[2], [1], [1], [2], [0, 0, 0, 1, 1, 2], [0], [0]>} : vector<8x8x8xf32>, vector<8x8x8xf32>, vector<8x8x8xf32> -> vector<8x8x8xf32>
    "tpu.trace_stop"() : () -> ()
    %65 = vector.extract_strided_slice %13 {offsets = [0, 0, 24], sizes = [8, 8, 8], strides = [1, 1, 1]} : vector<8x8x192xf32> to vector<8x8x8xf32>
    %66 = vector.extract_strided_slice %13 {offsets = [0, 0, 88], sizes = [8, 8, 8], strides = [1, 1, 1]} : vector<8x8x192xf32> to vector<8x8x8xf32>
    %67 = vector.extract_strided_slice %13 {offsets = [0, 0, 152], sizes = [8, 8, 8], strides = [1, 1, 1]} : vector<8x8x192xf32> to vector<8x8x8xf32>
    "tpu.trace_start"() <{level = 10 : i32, message = "bsd,btd->bst"}> : () -> ()
    %cst_26 = arith.constant dense<0.000000e+00> : vector<8x8x8xf32>
    %68 = tpu.matmul %65, %66, %cst_26 {dimension_numbers = #tpu.dot_dimension_numbers<[2], [2], [1], [1], [0, 0, 0, 1, 1, 1], [0], [0]>} : vector<8x8x8xf32>, vector<8x8x8xf32>, vector<8x8x8xf32> -> vector<8x8x8xf32>
    "tpu.trace_stop"() : () -> ()
    %cst_27 = arith.constant 0.353553385 : f32
    %69 = vector.broadcast %cst_27 : f32 to vector<8x8x8xf32>
    %70 = arith.mulf %68, %69 : vector<8x8x8xf32>
    %cst_28 = arith.constant dense<0xFF800000> : vector<8x8xf32>
    %71 = vector.multi_reduction <maximumf>, %70, %cst_28 [2] : vector<8x8x8xf32> to vector<8x8xf32>
    %72 = vector.shape_cast %71 : vector<8x8xf32> to vector<8x8x1xf32>
    %73 = vector.broadcast %72 : vector<8x8x1xf32> to vector<8x8x8xf32>
    %74 = arith.subf %70, %73 : vector<8x8x8xf32>
    %75 = math.exp %74 : vector<8x8x8xf32>
    %cst_29 = arith.constant dense<0.000000e+00> : vector<8x8xf32>
    %76 = vector.multi_reduction <add>, %75, %cst_29 [2] : vector<8x8x8xf32> to vector<8x8xf32>
    %77 = vector.shape_cast %76 : vector<8x8xf32> to vector<8x8x1xf32>
    %78 = tpu.reciprocal %77 {approx = true} : vector<8x8x1xf32> -> vector<8x8x1xf32>
    %79 = vector.broadcast %78 : vector<8x8x1xf32> to vector<8x8x8xf32>
    %80 = arith.mulf %75, %79 : vector<8x8x8xf32>
    "tpu.trace_start"() <{level = 10 : i32, message = "bst,btd->bsd"}> : () -> ()
    %cst_30 = arith.constant dense<0.000000e+00> : vector<8x8x8xf32>
    %81 = tpu.matmul %80, %67, %cst_30 {dimension_numbers = #tpu.dot_dimension_numbers<[2], [1], [1], [2], [0, 0, 0, 1, 1, 2], [0], [0]>} : vector<8x8x8xf32>, vector<8x8x8xf32>, vector<8x8x8xf32> -> vector<8x8x8xf32>
    "tpu.trace_stop"() : () -> ()
    %82 = vector.extract_strided_slice %13 {offsets = [0, 0, 32], sizes = [8, 8, 8], strides = [1, 1, 1]} : vector<8x8x192xf32> to vector<8x8x8xf32>
    %83 = vector.extract_strided_slice %13 {offsets = [0, 0, 96], sizes = [8, 8, 8], strides = [1, 1, 1]} : vector<8x8x192xf32> to vector<8x8x8xf32>
    %84 = vector.extract_strided_slice %13 {offsets = [0, 0, 160], sizes = [8, 8, 8], strides = [1, 1, 1]} : vector<8x8x192xf32> to vector<8x8x8xf32>
    "tpu.trace_start"() <{level = 10 : i32, message = "bsd,btd->bst"}> : () -> ()
    %cst_31 = arith.constant dense<0.000000e+00> : vector<8x8x8xf32>
    %85 = tpu.matmul %82, %83, %cst_31 {dimension_numbers = #tpu.dot_dimension_numbers<[2], [2], [1], [1], [0, 0, 0, 1, 1, 1], [0], [0]>} : vector<8x8x8xf32>, vector<8x8x8xf32>, vector<8x8x8xf32> -> vector<8x8x8xf32>
    "tpu.trace_stop"() : () -> ()
    %cst_32 = arith.constant 0.353553385 : f32
    %86 = vector.broadcast %cst_32 : f32 to vector<8x8x8xf32>
    %87 = arith.mulf %85, %86 : vector<8x8x8xf32>
    %cst_33 = arith.constant dense<0xFF800000> : vector<8x8xf32>
    %88 = vector.multi_reduction <maximumf>, %87, %cst_33 [2] : vector<8x8x8xf32> to vector<8x8xf32>
    %89 = vector.shape_cast %88 : vector<8x8xf32> to vector<8x8x1xf32>
    %90 = vector.broadcast %89 : vector<8x8x1xf32> to vector<8x8x8xf32>
    %91 = arith.subf %87, %90 : vector<8x8x8xf32>
    %92 = math.exp %91 : vector<8x8x8xf32>
    %cst_34 = arith.constant dense<0.000000e+00> : vector<8x8xf32>
    %93 = vector.multi_reduction <add>, %92, %cst_34 [2] : vector<8x8x8xf32> to vector<8x8xf32>
    %94 = vector.shape_cast %93 : vector<8x8xf32> to vector<8x8x1xf32>
    %95 = tpu.reciprocal %94 {approx = true} : vector<8x8x1xf32> -> vector<8x8x1xf32>
    %96 = vector.broadcast %95 : vector<8x8x1xf32> to vector<8x8x8xf32>
    %97 = arith.mulf %92, %96 : vector<8x8x8xf32>
    "tpu.trace_start"() <{level = 10 : i32, message = "bst,btd->bsd"}> : () -> ()
    %cst_35 = arith.constant dense<0.000000e+00> : vector<8x8x8xf32>
    %98 = tpu.matmul %97, %84, %cst_35 {dimension_numbers = #tpu.dot_dimension_numbers<[2], [1], [1], [2], [0, 0, 0, 1, 1, 2], [0], [0]>} : vector<8x8x8xf32>, vector<8x8x8xf32>, vector<8x8x8xf32> -> vector<8x8x8xf32>
    "tpu.trace_stop"() : () -> ()
    %99 = vector.extract_strided_slice %13 {offsets = [0, 0, 40], sizes = [8, 8, 8], strides = [1, 1, 1]} : vector<8x8x192xf32> to vector<8x8x8xf32>
    %100 = vector.extract_strided_slice %13 {offsets = [0, 0, 104], sizes = [8, 8, 8], strides = [1, 1, 1]} : vector<8x8x192xf32> to vector<8x8x8xf32>
    %101 = vector.extract_strided_slice %13 {offsets = [0, 0, 168], sizes = [8, 8, 8], strides = [1, 1, 1]} : vector<8x8x192xf32> to vector<8x8x8xf32>
    "tpu.trace_start"() <{level = 10 : i32, message = "bsd,btd->bst"}> : () -> ()
    %cst_36 = arith.constant dense<0.000000e+00> : vector<8x8x8xf32>
    %102 = tpu.matmul %99, %100, %cst_36 {dimension_numbers = #tpu.dot_dimension_numbers<[2], [2], [1], [1], [0, 0, 0, 1, 1, 1], [0], [0]>} : vector<8x8x8xf32>, vector<8x8x8xf32>, vector<8x8x8xf32> -> vector<8x8x8xf32>
    "tpu.trace_stop"() : () -> ()
    %cst_37 = arith.constant 0.353553385 : f32
    %103 = vector.broadcast %cst_37 : f32 to vector<8x8x8xf32>
    %104 = arith.mulf %102, %103 : vector<8x8x8xf32>
    %cst_38 = arith.constant dense<0xFF800000> : vector<8x8xf32>
    %105 = vector.multi_reduction <maximumf>, %104, %cst_38 [2] : vector<8x8x8xf32> to vector<8x8xf32>
    %106 = vector.shape_cast %105 : vector<8x8xf32> to vector<8x8x1xf32>
    %107 = vector.broadcast %106 : vector<8x8x1xf32> to vector<8x8x8xf32>
    %108 = arith.subf %104, %107 : vector<8x8x8xf32>
    %109 = math.exp %108 : vector<8x8x8xf32>
    %cst_39 = arith.constant dense<0.000000e+00> : vector<8x8xf32>
    %110 = vector.multi_reduction <add>, %109, %cst_39 [2] : vector<8x8x8xf32> to vector<8x8xf32>
    %111 = vector.shape_cast %110 : vector<8x8xf32> to vector<8x8x1xf32>
    %112 = tpu.reciprocal %111 {approx = true} : vector<8x8x1xf32> -> vector<8x8x1xf32>
    %113 = vector.broadcast %112 : vector<8x8x1xf32> to vector<8x8x8xf32>
    %114 = arith.mulf %109, %113 : vector<8x8x8xf32>
    "tpu.trace_start"() <{level = 10 : i32, message = "bst,btd->bsd"}> : () -> ()
    %cst_40 = arith.constant dense<0.000000e+00> : vector<8x8x8xf32>
    %115 = tpu.matmul %114, %101, %cst_40 {dimension_numbers = #tpu.dot_dimension_numbers<[2], [1], [1], [2], [0, 0, 0, 1, 1, 2], [0], [0]>} : vector<8x8x8xf32>, vector<8x8x8xf32>, vector<8x8x8xf32> -> vector<8x8x8xf32>
    "tpu.trace_stop"() : () -> ()
    %116 = vector.extract_strided_slice %13 {offsets = [0, 0, 48], sizes = [8, 8, 8], strides = [1, 1, 1]} : vector<8x8x192xf32> to vector<8x8x8xf32>
    %117 = vector.extract_strided_slice %13 {offsets = [0, 0, 112], sizes = [8, 8, 8], strides = [1, 1, 1]} : vector<8x8x192xf32> to vector<8x8x8xf32>
    %118 = vector.extract_strided_slice %13 {offsets = [0, 0, 176], sizes = [8, 8, 8], strides = [1, 1, 1]} : vector<8x8x192xf32> to vector<8x8x8xf32>
    "tpu.trace_start"() <{level = 10 : i32, message = "bsd,btd->bst"}> : () -> ()
    %cst_41 = arith.constant dense<0.000000e+00> : vector<8x8x8xf32>
    %119 = tpu.matmul %116, %117, %cst_41 {dimension_numbers = #tpu.dot_dimension_numbers<[2], [2], [1], [1], [0, 0, 0, 1, 1, 1], [0], [0]>} : vector<8x8x8xf32>, vector<8x8x8xf32>, vector<8x8x8xf32> -> vector<8x8x8xf32>
    "tpu.trace_stop"() : () -> ()
    %cst_42 = arith.constant 0.353553385 : f32
    %120 = vector.broadcast %cst_42 : f32 to vector<8x8x8xf32>
    %121 = arith.mulf %119, %120 : vector<8x8x8xf32>
    %cst_43 = arith.constant dense<0xFF800000> : vector<8x8xf32>
    %122 = vector.multi_reduction <maximumf>, %121, %cst_43 [2] : vector<8x8x8xf32> to vector<8x8xf32>
    %123 = vector.shape_cast %122 : vector<8x8xf32> to vector<8x8x1xf32>
    %124 = vector.broadcast %123 : vector<8x8x1xf32> to vector<8x8x8xf32>
    %125 = arith.subf %121, %124 : vector<8x8x8xf32>
    %126 = math.exp %125 : vector<8x8x8xf32>
    %cst_44 = arith.constant dense<0.000000e+00> : vector<8x8xf32>
    %127 = vector.multi_reduction <add>, %126, %cst_44 [2] : vector<8x8x8xf32> to vector<8x8xf32>
    %128 = vector.shape_cast %127 : vector<8x8xf32> to vector<8x8x1xf32>
    %129 = tpu.reciprocal %128 {approx = true} : vector<8x8x1xf32> -> vector<8x8x1xf32>
    %130 = vector.broadcast %129 : vector<8x8x1xf32> to vector<8x8x8xf32>
    %131 = arith.mulf %126, %130 : vector<8x8x8xf32>
    "tpu.trace_start"() <{level = 10 : i32, message = "bst,btd->bsd"}> : () -> ()
    %cst_45 = arith.constant dense<0.000000e+00> : vector<8x8x8xf32>
    %132 = tpu.matmul %131, %118, %cst_45 {dimension_numbers = #tpu.dot_dimension_numbers<[2], [1], [1], [2], [0, 0, 0, 1, 1, 2], [0], [0]>} : vector<8x8x8xf32>, vector<8x8x8xf32>, vector<8x8x8xf32> -> vector<8x8x8xf32>
    "tpu.trace_stop"() : () -> ()
    %133 = vector.extract_strided_slice %13 {offsets = [0, 0, 56], sizes = [8, 8, 8], strides = [1, 1, 1]} : vector<8x8x192xf32> to vector<8x8x8xf32>
    %134 = vector.extract_strided_slice %13 {offsets = [0, 0, 120], sizes = [8, 8, 8], strides = [1, 1, 1]} : vector<8x8x192xf32> to vector<8x8x8xf32>
    %135 = vector.extract_strided_slice %13 {offsets = [0, 0, 184], sizes = [8, 8, 8], strides = [1, 1, 1]} : vector<8x8x192xf32> to vector<8x8x8xf32>
    "tpu.trace_start"() <{level = 10 : i32, message = "bsd,btd->bst"}> : () -> ()
    %cst_46 = arith.constant dense<0.000000e+00> : vector<8x8x8xf32>
    %136 = tpu.matmul %133, %134, %cst_46 {dimension_numbers = #tpu.dot_dimension_numbers<[2], [2], [1], [1], [0, 0, 0, 1, 1, 1], [0], [0]>} : vector<8x8x8xf32>, vector<8x8x8xf32>, vector<8x8x8xf32> -> vector<8x8x8xf32>
    "tpu.trace_stop"() : () -> ()
    %cst_47 = arith.constant 0.353553385 : f32
    %137 = vector.broadcast %cst_47 : f32 to vector<8x8x8xf32>
    %138 = arith.mulf %136, %137 : vector<8x8x8xf32>
    %cst_48 = arith.constant dense<0xFF800000> : vector<8x8xf32>
    %139 = vector.multi_reduction <maximumf>, %138, %cst_48 [2] : vector<8x8x8xf32> to vector<8x8xf32>
    %140 = vector.shape_cast %139 : vector<8x8xf32> to vector<8x8x1xf32>
    %141 = vector.broadcast %140 : vector<8x8x1xf32> to vector<8x8x8xf32>
    %142 = arith.subf %138, %141 : vector<8x8x8xf32>
    %143 = math.exp %142 : vector<8x8x8xf32>
    %cst_49 = arith.constant dense<0.000000e+00> : vector<8x8xf32>
    %144 = vector.multi_reduction <add>, %143, %cst_49 [2] : vector<8x8x8xf32> to vector<8x8xf32>
    %145 = vector.shape_cast %144 : vector<8x8xf32> to vector<8x8x1xf32>
    %146 = tpu.reciprocal %145 {approx = true} : vector<8x8x1xf32> -> vector<8x8x1xf32>
    %147 = vector.broadcast %146 : vector<8x8x1xf32> to vector<8x8x8xf32>
    %148 = arith.mulf %143, %147 : vector<8x8x8xf32>
    "tpu.trace_start"() <{level = 10 : i32, message = "bst,btd->bsd"}> : () -> ()
    %cst_50 = arith.constant dense<0.000000e+00> : vector<8x8x8xf32>
    %149 = tpu.matmul %148, %135, %cst_50 {dimension_numbers = #tpu.dot_dimension_numbers<[2], [1], [1], [2], [0, 0, 0, 1, 1, 2], [0], [0]>} : vector<8x8x8xf32>, vector<8x8x8xf32>, vector<8x8x8xf32> -> vector<8x8x8xf32>
    "tpu.trace_stop"() : () -> ()
    %150 = tpu.concatenate %30, %47, %64, %81, %98, %115, %132, %149 in 2 : vector<8x8x8xf32>, vector<8x8x8xf32>, vector<8x8x8xf32>, vector<8x8x8xf32>, vector<8x8x8xf32>, vector<8x8x8xf32>, vector<8x8x8xf32>, vector<8x8x8xf32> -> vector<8x8x64xf32>
    %151 = vector.shape_cast %150 : vector<8x8x64xf32> to vector<64x64xf32>
    %c0_51 = arith.constant 0 : index
    %c0_52 = arith.constant 0 : index
    %152 = vector.load %arg5[%c0_51, %c0_52] : memref<64x64xf32, #tpu.memory_space<vmem>>, vector<64x64xf32>
    %cst_53 = arith.constant dense<0.000000e+00> : vector<64x64xf32>
    %153 = tpu.matmul %151, %152, %cst_53 {dimension_numbers = #tpu.dot_dimension_numbers<[1], [0], [0], [1], [0, 0, 1, 1], [], []>} : vector<64x64xf32>, vector<64x64xf32>, vector<64x64xf32> -> vector<64x64xf32>
    %c2 = arith.constant 2 : index
    %c0_54 = arith.constant 0 : index
    %154 = vector.load %arg9[%c2, %c0_54] : memref<10x256xf32, #tpu.memory_space<vmem>>, vector<1x64xf32>
    %155 = vector.broadcast %154 : vector<1x64xf32> to vector<64x64xf32>
    %156 = arith.addf %153, %155 : vector<64x64xf32>
    %157 = arith.addf %7, %156 : vector<64x64xf32>
    %cst_55 = arith.constant dense<0.000000e+00> : vector<64xf32>
    %158 = vector.multi_reduction <add>, %157, %cst_55 [1] : vector<64x64xf32> to vector<64xf32>
    %159 = vector.shape_cast %158 : vector<64xf32> to vector<64x1xf32>
    %cst_56 = arith.constant 6.400000e+01 : f32
    %160 = vector.broadcast %cst_56 : f32 to vector<64x1xf32>
    %161 = arith.divf %159, %160 : vector<64x1xf32>
    %162 = vector.broadcast %161 : vector<64x1xf32> to vector<64x64xf32>
    %163 = arith.subf %157, %162 : vector<64x64xf32>
    %164 = arith.mulf %163, %163 : vector<64x64xf32>
    %cst_57 = arith.constant dense<0.000000e+00> : vector<64xf32>
    %165 = vector.multi_reduction <add>, %164, %cst_57 [1] : vector<64x64xf32> to vector<64xf32>
    %166 = vector.shape_cast %165 : vector<64xf32> to vector<64x1xf32>
    %cst_58 = arith.constant 6.400000e+01 : f32
    %167 = vector.broadcast %cst_58 : f32 to vector<64x1xf32>
    %168 = arith.divf %166, %167 : vector<64x1xf32>
    %169 = vector.broadcast %161 : vector<64x1xf32> to vector<64x64xf32>
    %170 = arith.subf %157, %169 : vector<64x64xf32>
    %cst_59 = arith.constant 9.99999974E-6 : f32
    %171 = vector.broadcast %cst_59 : f32 to vector<64x1xf32>
    %172 = arith.addf %168, %171 : vector<64x1xf32>
    %173 = math.rsqrt %172 : vector<64x1xf32>
    %174 = vector.broadcast %173 : vector<64x1xf32> to vector<64x64xf32>
    %175 = arith.mulf %170, %174 : vector<64x64xf32>
    %c3 = arith.constant 3 : index
    %c0_60 = arith.constant 0 : index
    %176 = vector.load %arg9[%c3, %c0_60] : memref<10x256xf32, #tpu.memory_space<vmem>>, vector<1x64xf32>
    %177 = vector.broadcast %176 : vector<1x64xf32> to vector<64x64xf32>
    %178 = arith.mulf %175, %177 : vector<64x64xf32>
    %c4 = arith.constant 4 : index
    %c0_61 = arith.constant 0 : index
    %179 = vector.load %arg9[%c4, %c0_61] : memref<10x256xf32, #tpu.memory_space<vmem>>, vector<1x64xf32>
    %180 = vector.broadcast %179 : vector<1x64xf32> to vector<64x64xf32>
    %181 = arith.addf %178, %180 : vector<64x64xf32>
    %c0_62 = arith.constant 0 : index
    %c0_63 = arith.constant 0 : index
    %182 = vector.load %arg6[%c0_62, %c0_63] : memref<64x256xf32, #tpu.memory_space<vmem>>, vector<64x256xf32>
    %cst_64 = arith.constant dense<0.000000e+00> : vector<64x256xf32>
    %183 = tpu.matmul %181, %182, %cst_64 {dimension_numbers = #tpu.dot_dimension_numbers<[1], [0], [0], [1], [0, 0, 1, 1], [], []>} : vector<64x64xf32>, vector<64x256xf32>, vector<64x256xf32> -> vector<64x256xf32>
    %c5 = arith.constant 5 : index
    %c0_65 = arith.constant 0 : index
    %184 = vector.load %arg9[%c5, %c0_65] : memref<10x256xf32, #tpu.memory_space<vmem>>, vector<1x256xf32>
    %185 = vector.broadcast %184 : vector<1x256xf32> to vector<64x256xf32>
    %186 = arith.addf %183, %185 : vector<64x256xf32>
    %cst_66 = arith.constant 0.000000e+00 : f32
    %187 = vector.broadcast %cst_66 : f32 to vector<64x256xf32>
    %188 = arith.maximumf %186, %187 : vector<64x256xf32>
    %c0_67 = arith.constant 0 : index
    %c0_68 = arith.constant 0 : index
    %189 = vector.load %arg7[%c0_67, %c0_68] : memref<256x64xf32, #tpu.memory_space<vmem>>, vector<256x64xf32>
    %cst_69 = arith.constant dense<0.000000e+00> : vector<64x64xf32>
    %190 = tpu.matmul %188, %189, %cst_69 {dimension_numbers = #tpu.dot_dimension_numbers<[1], [0], [0], [1], [0, 0, 1, 1], [], []>} : vector<64x256xf32>, vector<256x64xf32>, vector<64x64xf32> -> vector<64x64xf32>
    %c6 = arith.constant 6 : index
    %c0_70 = arith.constant 0 : index
    %191 = vector.load %arg9[%c6, %c0_70] : memref<10x256xf32, #tpu.memory_space<vmem>>, vector<1x64xf32>
    %192 = vector.broadcast %191 : vector<1x64xf32> to vector<64x64xf32>
    %193 = arith.addf %190, %192 : vector<64x64xf32>
    %194 = arith.addf %181, %193 : vector<64x64xf32>
    %cst_71 = arith.constant dense<0.000000e+00> : vector<64xf32>
    %195 = vector.multi_reduction <add>, %194, %cst_71 [1] : vector<64x64xf32> to vector<64xf32>
    %196 = vector.shape_cast %195 : vector<64xf32> to vector<64x1xf32>
    %cst_72 = arith.constant 6.400000e+01 : f32
    %197 = vector.broadcast %cst_72 : f32 to vector<64x1xf32>
    %198 = arith.divf %196, %197 : vector<64x1xf32>
    %199 = vector.broadcast %198 : vector<64x1xf32> to vector<64x64xf32>
    %200 = arith.subf %194, %199 : vector<64x64xf32>
    %201 = arith.mulf %200, %200 : vector<64x64xf32>
    %cst_73 = arith.constant dense<0.000000e+00> : vector<64xf32>
    %202 = vector.multi_reduction <add>, %201, %cst_73 [1] : vector<64x64xf32> to vector<64xf32>
    %203 = vector.shape_cast %202 : vector<64xf32> to vector<64x1xf32>
    %cst_74 = arith.constant 6.400000e+01 : f32
    %204 = vector.broadcast %cst_74 : f32 to vector<64x1xf32>
    %205 = arith.divf %203, %204 : vector<64x1xf32>
    %206 = vector.broadcast %198 : vector<64x1xf32> to vector<64x64xf32>
    %207 = arith.subf %194, %206 : vector<64x64xf32>
    %cst_75 = arith.constant 9.99999974E-6 : f32
    %208 = vector.broadcast %cst_75 : f32 to vector<64x1xf32>
    %209 = arith.addf %205, %208 : vector<64x1xf32>
    %210 = math.rsqrt %209 : vector<64x1xf32>
    %211 = vector.broadcast %210 : vector<64x1xf32> to vector<64x64xf32>
    %212 = arith.mulf %207, %211 : vector<64x64xf32>
    %c7 = arith.constant 7 : index
    %c0_76 = arith.constant 0 : index
    %213 = vector.load %arg9[%c7, %c0_76] : memref<10x256xf32, #tpu.memory_space<vmem>>, vector<1x64xf32>
    %214 = vector.broadcast %213 : vector<1x64xf32> to vector<64x64xf32>
    %215 = arith.mulf %212, %214 : vector<64x64xf32>
    %c8 = arith.constant 8 : index
    %c0_77 = arith.constant 0 : index
    %216 = vector.load %arg9[%c8, %c0_77] : memref<10x256xf32, #tpu.memory_space<vmem>>, vector<1x64xf32>
    %217 = vector.broadcast %216 : vector<1x64xf32> to vector<64x64xf32>
    %218 = arith.addf %215, %217 : vector<64x64xf32>
    %219 = vector.shape_cast %218 : vector<64x64xf32> to vector<8x8x64xf32>
    %220 = vector.extract_strided_slice %219 {offsets = [0, 7, 0], sizes = [8, 1, 64], strides = [1, 1, 1]} : vector<8x8x64xf32> to vector<8x1x64xf32>
    %221 = vector.shape_cast %220 : vector<8x1x64xf32> to vector<8x64xf32>
    %c0_78 = arith.constant 0 : index
    %c0_79 = arith.constant 0 : index
    %222 = vector.load %arg8[%c0_78, %c0_79] : memref<64x128xf32, #tpu.memory_space<vmem>>, vector<64x128xf32>
    %cst_80 = arith.constant dense<0.000000e+00> : vector<8x128xf32>
    %223 = tpu.matmul %221, %222, %cst_80 {dimension_numbers = #tpu.dot_dimension_numbers<[1], [0], [0], [1], [0, 0, 1, 1], [], []>} : vector<8x64xf32>, vector<64x128xf32>, vector<8x128xf32> -> vector<8x128xf32>
    %c9 = arith.constant 9 : index
    %c0_81 = arith.constant 0 : index
    %224 = vector.load %arg9[%c9, %c0_81] : memref<10x256xf32, #tpu.memory_space<vmem>>, vector<1x128xf32>
    %225 = vector.broadcast %224 : vector<1x128xf32> to vector<8x128xf32>
    %226 = arith.addf %223, %225 : vector<8x128xf32>
    %c0_82 = arith.constant 0 : index
    %c0_83 = arith.constant 0 : index
    %227 = vector.load %arg10[%c0_82, %c0_83] : memref<8x128xf32, #tpu.memory_space<vmem>>, vector<8x128xf32>
    tpu.vector_store %arg10[%c0_82, %c0_83], %226 {strides = array<i32>} : memref<8x128xf32, #tpu.memory_space<vmem>>, vector<8x128xf32>,
    return
  }
  func.func @transform_0(%arg0: i32) -> (i32, i32) {
    %c0_i32 = arith.constant 0 : i32
    %c0_i32_0 = arith.constant 0 : i32
    return %arg0, %c0_i32 : i32, i32
  }
  func.func @transform_1(%arg0: i32) -> (i32, i32) {
    %c0_i32 = arith.constant 0 : i32
    %c0_i32_0 = arith.constant 0 : i32
    return %arg0, %c0_i32 : i32, i32
  }
  func.func @transform_2(%arg0: i32) -> (i32, i32) {
    %c0_i32 = arith.constant 0 : i32
    %c0_i32_0 = arith.constant 0 : i32
    %c0_i32_1 = arith.constant 0 : i32
    return %c0_i32, %c0_i32_0 : i32, i32
  }
  func.func @transform_3(%arg0: i32) -> (i32, i32) {
    %c0_i32 = arith.constant 0 : i32
    %c0_i32_0 = arith.constant 0 : i32
    %c0_i32_1 = arith.constant 0 : i32
    return %c0_i32, %c0_i32_0 : i32, i32
  }
  func.func @transform_4(%arg0: i32) -> (i32, i32) {
    %c0_i32 = arith.constant 0 : i32
    %c0_i32_0 = arith.constant 0 : i32
    %c0_i32_1 = arith.constant 0 : i32
    return %c0_i32, %c0_i32_0 : i32, i32
  }
  func.func @transform_5(%arg0: i32) -> (i32, i32) {
    %c0_i32 = arith.constant 0 : i32
    %c0_i32_0 = arith.constant 0 : i32
    %c0_i32_1 = arith.constant 0 : i32
    return %c0_i32, %c0_i32_0 : i32, i32
  }
  func.func @transform_6(%arg0: i32) -> (i32, i32) {
    %c0_i32 = arith.constant 0 : i32
    %c0_i32_0 = arith.constant 0 : i32
    %c0_i32_1 = arith.constant 0 : i32
    return %c0_i32, %c0_i32_0 : i32, i32
  }
  func.func @transform_7(%arg0: i32) -> (i32, i32) {
    %c0_i32 = arith.constant 0 : i32
    %c0_i32_0 = arith.constant 0 : i32
    %c0_i32_1 = arith.constant 0 : i32
    return %c0_i32, %c0_i32_0 : i32, i32
  }
  func.func @transform_8(%arg0: i32) -> (i32, i32) {
    %c0_i32 = arith.constant 0 : i32
    %c0_i32_0 = arith.constant 0 : i32
    %c0_i32_1 = arith.constant 0 : i32
    return %c0_i32, %c0_i32_0 : i32, i32
  }
  func.func @transform_9(%arg0: i32) -> (i32, i32) {
    %c0_i32 = arith.constant 0 : i32
    %c0_i32_0 = arith.constant 0 : i32
    return %arg0, %c0_i32 : i32, i32
  }
}

</mosaic_0001>

<bundles_post_ra>
// kernel: tpu_custom_call.1
= control target key start
LH: loop header
LB: loop body
LE: loop exit
PB: predicated region body
PF: predicated region fallthrough
CT: control target
= control target key end

     0   :  { %14 = vsyncpa [#allocation3], 0  ;;  %s16804_s0 = inlined_call_operand.vmem [shape: f32[128,2], index: 0, kind: input, shape index: {}]   ;;  %s16805_s1 = inlined_call_operand.vmem [shape: f32[128,64], index: 1, kind: input, shape index: {}]   ;;  %s16806_s2 = inlined_call_operand.vmem [shape: f32[2,64], index: 2, kind: input, shape index: {}]   ;;  %s16807_s3 = inlined_call_operand.vmem [shape: f32[64,192], index: 3, kind: input, shape index: {}]   ;;  %s16808_s4 = inlined_call_operand.vmem [shape: f32[64,64], index: 4, kind: input, shape index: {}]   ;;  %s16809_s5 = inlined_call_operand.vmem [shape: f32[64,256], index: 5, kind: input, shape index: {}]   ;;  %s16810_s6 = inlined_call_operand.vmem [shape: f32[256,64], index: 6, kind: input, shape index: {}]   ;;  %s16811_s7 = inlined_call_operand.vmem [shape: f32[64,128], index: 7, kind: input, shape index: {}]   ;;  %s16812_s8 = inlined_call_operand.vmem [shape: f32[10,256], index: 8, kind: input, shape index: {}]   ;;  %s16813_s9 = inlined_call_operand.hbm [shape: f32[16,128], index: 9, kind: output, shape index: {}]  }
   0x1   :  { %16 = vsyncpa [#allocation3 + $0x1], 0  ;;  %s14350_s30 = smov 0   ;;  %s14352_s10 = smov 0  }
   0x2   :  { %s14354_s11 = smov 0   ;;  %s14356_s12 = smov 0  }
   0x3 LB: > { %s14371_s13 = sadd.s32 4294967295, %s14279_s12   ;;  %s12484_s14 = sadd.s32 4294967294, %s14279_s12   ;;  %s14279_s12 = sphi %s14356_s12, %s16918_s12   ;;  %s14275_s11 = sphi %s14354_s11, %s16917_s11   ;;  %s14271_s10 = sphi %s14352_s10, %s16916_s10   ;;  %s14267_s30 = sphi %s14350_s30, %s16915_s30  }
   0x4   : > { %s14375_s15 = sadd.s32 1, %s14279_s12   ;;  %s228_s16 = sadd.s32 1, %s14275_s11 }
   0x5   : > { %s225_s17 = ssub.s32 %s14279_s12, %s14375_s15  ;;  %p238_p0 = scmp.ne.s32.totalorder %s14275_s11, %s14271_s10 }
   0x6   : > { %p226_p1 = scmp.eq.s32.totalorder %s225_s17, 0  ;;  %p239_p2 = scmp.eq.s32.totalorder %s14371_s13, 1 }
   0x7   : > { %p244_p3 = scmp.ne.s32.totalorder %s14271_s10, %s14267_s30  ;;  %p245_p4 = scmp.eq.s32.totalorder %s12484_s14, 1 }
   0x8   : > { %s14386_s18 = scalar_select %p226_p1, %s14275_s11, %s228_s16  }
   0x9   : > { %p14388_p5 = por %p239_p2, %p238_p0  ;;  %p14392_p6 = por %p245_p4, %p244_p3 }
   0xa   : > { %p12487_p7 = scmp.ge.s32.totalorder %s14279_s12, 1  ;;  %p302_p8 = scmp.lt.s32.totalorder %s14279_s12, 3 }
   0xc   : > { %p303_p9 = pnand %p12487_p7, %p302_p8 }
   0xe   : > { %306 = sbr.rel (%p303_p9) target bundleno = 7131 (0x1bdb), region = 56 }
  0x15   : > { %v363_v0 = vld [vmem:[%s16806_s2] sm:$0x3]  ;;  %vm390_vm0 = vcmask 1041408   ;;  %s12489_s23 = sshll.u32 %s14371_s13, 3  ;;  %v516_v1 = vld [vmem:[%s16807_s3 + $0x8] sm:$0xff]  ;;  %v518_v2 = vld [vmem:[%s16807_s3 + $0x18] sm:$0xff] }
  0x16   : > { %13071 = vmatprep.subr.msk.mxu0 %vm390_vm0, %v363_v0  ;;  %p344_p10 = scmp.lt.s32.totalorder %s12489_s23, 15  ;;  %v515_v3 = vld [vmem:[%s16807_s3] sm:$0xff]  ;;  %v517_v4 = vld [vmem:[%s16807_s3 + $0x10] sm:$0xff]  ;;  %v13772_v5 = vpack.c.bf16 %v518_v2, %v516_v1  ;;  %v520_v6 = vld [vmem:[%s16807_s3 + $0x28] sm:$0xff]  ;;  %vm365_vm1 = vcmask 15360   ;;  %v16816_v33 = vmov 0.0  }
  0x17   : > { %13072 = vmatpush3.msk.msra.mxu0 %vm390_vm0, %v363_v0  ;;  %v522_v7 = vld [vmem:[%s16807_s3 + $0x38] sm:$0xff]  ;;  %v13774_v8 = vpack.c.bf16 %v517_v4, %v515_v3  ;;  %v519_v10 = vld [vmem:[%s16807_s3 + $0x20] sm:$0xff]  ;;  %v521_v11 = vld [vmem:[%s16807_s3 + $0x30] sm:$0xff]  ;;  %651 = vmatprep.mubr.f32.mxu1 %v16816_v33  ;;  %vm544_vm2 = vcmask 523264   ;;  %v534_v3 = vlaneseq  ;;  %vm14282_vm3 = vmmov 0   ;;  %s14283_s24 = smov 64  }
  0x18   : > { %s16920_s23 = smov (!%p344_p10, %s12489_s23), 15  ;;  %13773 = vmatprep.subr.bf16.mxu0 %v13772_v5  ;;  %v13776_v9 = vpack.c.bf16 %v522_v7, %v520_v6  ;;  %13864 = vmatprep.subr.bf16.mxu1 %v13772_v5  ;;  %v524_v12 = vld [vmem:[%s16807_s3 + $0x48] sm:$0xff]  ;;  %v526_v13 = vld [vmem:[%s16807_s3 + $0x58] sm:$0xff]  ;;  %v13778_v17 = vpack.c.bf16 %v521_v11, %v519_v10  ;;  %v523_v18 = vld [vmem:[%s16807_s3 + $0x40] sm:$0xff]  ;;  %vm685_vm4 = vcmask 64512   ;;  %s14284_s25 = smov 56  }
  0x19   : > { %s12490_s29 = sshll.u32 %s16920_s23, 3  ;;  %13868 = vmatpush1.bf16.msra.mxu1 %v13774_v8  ;;  %v525_v19 = vld [vmem:[%s16807_s3 + $0x50] sm:$0xff]  ;;  %v13780_v20 = vpack.c.bf16 %v526_v13, %v524_v12  ;;  %v528_v27 = vld [vmem:[%s16807_s3 + $0x68] sm:$0xff]  ;;  %v530_v28 = vld [vmem:[%s16807_s3 + $0x78] sm:$0xff]  ;;  %v14526_v4 = vshrl.u32 %v534_v3, 7  ;;  %s14285_s26 = smov 120  }
  0x1a   : > { %s347_s17 = scalar_lea.vmem %s16804_s0, %s12490_s29  ;;  %13865 = vmatprep.subr.bf16.mxu1 %v13776_v9  ;;  %v13782_v23 = vpack.c.bf16 %v525_v19, %v523_v18  ;;  %v13784_v29 = vpack.c.bf16 %v530_v28, %v528_v27  ;;  %v527_v30 = vld [vmem:[%s16807_s3 + $0x60] sm:$0xff]  ;;  %v529_v31 = vld [vmem:[%s16807_s3 + $0x70] sm:$0xff]  ;;  %s14475_s16 = scalar_lea.vmem %s16805_s1, %s12490_s29  ;;  %vm11515_vm5 = vcmask 130048   ;;  %vm11524_vm6 = vcmask 195584  }
  0x1b   : > { %v355_v14 = vld [vmem:[%s347_s17] sm:$0xff]  ;;  %v356_v15 = vld [vmem:[%s347_s17 + $0x8] sm:$0xff]  ;;  %v357_v16 = vld [vmem:[%s347_s17 + $0x10] sm:$0xff]  ;;  %v13786_v32 = vpack.c.bf16 %v529_v31, %v527_v30  ;;  %16842 = vst [vmem:[#allocation13_spill] sm:$0xff] %v14526_v4  ;;  %v16815_v5 = vsub.s32 0, %v14526_v4  ;;  %v16814_v7 = vsub.s32 1, %v14526_v4 }
  0x1c   : > { %13073 = vmatprep.mubr.msk.f32.mxu0 %vm365_vm1, %v355_v14  ;;  %v358_v21 = vld [vmem:[%s347_s17 + $0x18] sm:$0xff]  ;;  %v359_v22 = vld [vmem:[%s347_s17 + $0x20] sm:$0xff]  ;;  %v360_v24 = vld [vmem:[%s347_s17 + $0x28] sm:$0xff]  ;;  %s16828_s27 = smov 48   ;;  %s14287_s28 = smov 112   ;;  %vm11533_vm7 = vcmask 261120  }
  0x1d   : > { %13074 = vmatmul.mubr.msk.f32.vlgmr.msra.gmra.mrb[0].mxu0 %vm365_vm1, %v356_v15  ;;  %13869 = vmatpush1.bf16.msra.mxu1 %v13778_v17  ;;  %v361_v25 = vld [vmem:[%s347_s17 + $0x30] sm:$0xff]  ;;  %v362_v26 = vld [vmem:[%s347_s17 + $0x38] sm:$0xff]  ;;  %v364_v34 = vld [vmem:[%s16812_s8] ss:$0 sm:$0xff]  ;;  %s16830_s17 = smov 40   ;;  %s14289_s14 = smov 104  }
  0x1e   : > { %13076 = vmatprep.mubr.msk.f32.mxu0 %vm365_vm1, %v357_v16  ;;  %13775 = vmatpush1.bf16.msra.mxu0 %v13774_v8  ;;  %v500_v36 = vld [vmem:[%s14475_s16 + $0x8] sm:$0xff]  ;;  %v499_v39 = vld [vmem:[%s14475_s16] sm:$0xff]  ;;  %v502_v44 = vld [vmem:[%s14475_s16 + $0x18] sm:$0xff]  ;;  %s14291_s21 = smov 96   ;;  %s14292_s22 = smov 24   ;;  %vm11542_vm8 = vcmask 326656  }
  0x1f   : > { %13777 = vmatprep.subr.bf16.mxu0 %v13776_v9  ;;  %13866 = vmatprep.subr.bf16.mxu1 %v13780_v20  ;;  %v501_v47 = vld [vmem:[%s14475_s16 + $0x10] sm:$0xff]  ;;  %v504_v52 = vld [vmem:[%s14475_s16 + $0x28] sm:$0xff]  ;;  %v503_v55 = vld [vmem:[%s14475_s16 + $0x20] sm:$0xff]  ;;  %s14293_s23 = smov 88   ;;  %s14294_s29 = smov 16   ;;  %vm11551_vm9 = vcmask 392192  }
  0x20   : > { %v506_v60 = vld [vmem:[%s14475_s16 + $0x38] sm:$0xff]  ;;  %v505_v63 = vld [vmem:[%s14475_s16 + $0x30] sm:$0xff]  ;;  %v12502_v6 = vld [vmem:[%s16812_s8 + $0x1] ss:$8 sm:$0x3]  ;;  %s14290_s16 = smov 32  }
  0x21   : > { %13077 = vmatmul.mubr.msk.f32.gmra.mrb[2].mxu0 %vm365_vm1, %v358_v21  ;;  %13870 = vmatpush1.bf16.msra.mxu1 %v13782_v23  ;;  %v537_v8 = vrot.slane %v12502_v6, %v16815_v5  ;;  %v541_v9 = vrot.slane %v12502_v6, %v16814_v7  ;;  %vm11560_vm10 = vcmask 457728   ;;  %vm12307_vm11 = vcmask 1041409  }
  0x22   : > { %13079 = vmatprep.mubr.msk.f32.mxu0 %vm365_vm1, %v359_v22  ;;  %13779 = vmatpush1.bf16.msra.mxu0 %v13778_v17  ;;  %vm12310_vm12 = vcmask 1042434   ;;  %vm12313_vm13 = vcmask 1043459   ;;  %vm12316_vm14 = vcmask 1044484   ;;  %vm12319_vm15 = vcmask 1045509  }
  0x23   : > { %13781 = vmatprep.subr.bf16.mxu0 %v13780_v20  ;;  %13867 = vmatprep.subr.bf16.mxu1 %v13784_v29  ;;  %vm12322_vm0 = vcmask 1046534  }
  0x25   : > { %13080 = vmatmul.mubr.msk.f32.gmra.mrb[4].mxu0 %vm365_vm1, %v360_v24  ;;  %13871 = vmatpush1.bf16.msra.mxu1 %v13786_v32 }
  0x26   : > { %13082 = vmatprep.mubr.msk.f32.mxu0 %vm365_vm1, %v361_v25  ;;  %13783 = vmatpush1.bf16.msra.mxu0 %v13782_v23 }
  0x27   : > { %13785 = vmatprep.subr.bf16.mxu0 %v13784_v29  ;;  %13125 = vmatprep.subr.mxu1 %v16816_v33 }
  0x29   : > { %13083 = vmatmul.mubr.msk.f32.gmra.mrb[6].mxu0 %vm365_vm1, %v362_v26  ;;  %vm12324_vm1 = vcmask 1047559  }
  0x2a   : > { %13787 = vmatpush1.bf16.msra.mxu0 %v13786_v32  ;;  %633 = vmatprep.mubr.f32.mxu0 %v16816_v33 }
  0x2b   : > { %13085 = vmatprep.subr.mxu0 %v16816_v33 }
  0xf0   : > { %v13075_v35 = vpop.f32.mrb[0].mxu0 }
  0xf1   : > { %v466_v37 = vadd.f32 %v13075_v35, %v364_v34  ;;  %v460_v38 = vpop.f32.mrb[1].mxu0 }
  0xf2   : > { %v461_v40 = vadd.f32 %v460_v38, %v364_v34 }
  0xf3   : > { %v14482_v41 = vadd.f32 %v500_v36, %v466_v37 }
  0xf4   : > { %v14484_v42 = vadd.f32 %v499_v39, %v461_v40  ;;  %v13078_v43 = vpop.f32.mrb[2].mxu0 }
  0xf5   : > { %16834 = vst [vmem:[#allocation5_spill] sm:$0xff] %v14482_v41  ;;  %v476_v45 = vadd.f32 %v13078_v43, %v364_v34  ;;  %v470_v46 = vpop.f32.mrb[3].mxu0 }
  0xf6   : > { %16835 = vst [vmem:[#allocation6_spill] sm:$0xff] %v14484_v42  ;;  %12503 = vmatmul.mubr.msk.f32.vlgmr.msra.gmra.mrb[8].mxu0 %vm544_vm2, %v14484_v42  ;;  %v471_v48 = vadd.f32 %v470_v46, %v364_v34 }
  0xf7   : > { %v14490_v49 = vadd.f32 %v502_v44, %v476_v45  ;;  %639 = vmatprep.mubr.f32.mxu0 %v16816_v33 }
  0xf8   : > { %v14493_v50 = vadd.f32 %v501_v47, %v471_v48  ;;  %v13081_v51 = vpop.f32.mrb[4].mxu0 }
  0xf9   : > { %16836 = vst [vmem:[#allocation7_spill] sm:$0xff] %v14490_v49  ;;  %v486_v53 = vadd.f32 %v13081_v51, %v364_v34  ;;  %v480_v54 = vpop.f32.mrb[5].mxu0  ;;  %12506 = vmatmul.mubr.msk.f32.vlgmr.msra.gmra.mrb[0].mxu1 %vm544_vm2, %v14490_v49 }
  0xfa   : > { %16837 = vst [vmem:[#allocation8_spill] sm:$0xff] %v14493_v50  ;;  %12504 = vmatmul.mubr.msk.f32.gmra.mrb[10].mxu0 %vm544_vm2, %v14482_v41  ;;  %v481_v56 = vadd.f32 %v480_v54, %v364_v34  ;;  %657 = vmatprep.mubr.f32.mxu1 %v16816_v33 }
  0xfb   : > { %645 = vmatprep.mubr.f32.mxu0 %v16816_v33  ;;  %v14503_v57 = vadd.f32 %v504_v52, %v486_v53 }
  0xfc   : > { %v14505_v58 = vadd.f32 %v503_v55, %v481_v56  ;;  %v13084_v59 = vpop.f32.mrb[6].mxu0 }
  0xfd   : > { %16838 = vst [vmem:[#allocation9_spill] sm:$0xff] %v14503_v57  ;;  %v496_v61 = vadd.f32 %v13084_v59, %v364_v34  ;;  %v490_v62 = vpop.f32.mrb[7].mxu0 }
  0xfe   : > { %16839 = vst [vmem:[#allocation10_spill] sm:$0xff] %v14505_v58  ;;  %12505 = vmatmul.mubr.msk.f32.gmra.mrb[12].mxu0 %vm544_vm2, %v14493_v50  ;;  %12507 = vmatmul.mubr.msk.f32.gmra.mrb[2].mxu1 %vm544_vm2, %v14505_v58  ;;  %v491_v0 = vadd.f32 %v490_v62, %v364_v34 }
  0xff   : > { %v14513_v1 = vadd.f32 %v506_v60, %v496_v61  ;;  %663 = vmatprep.mubr.f32.mxu1 %v16816_v33  ;;  %13087 = vmatprep.mubr.msk.f32.mxu0 %vm14282_vm3, %v16816_v33 }
 0x100   : > { %v14516_v2 = vadd.f32 %v505_v63, %v491_v0 }
 0x101   : > { %16840 = vst [vmem:[#allocation11_spill] sm:$0xff] %v14513_v1 }
 0x102   : > { %16841 = vst [vmem:[#allocation12_spill] sm:$0xff] %v14516_v2  ;;  %12508 = vmatmul.mubr.msk.f32.gmra.mrb[4].mxu1 %vm544_vm2, %v14503_v57 }
 0x103   : > { %669 = vmatprep.mubr.f32.mxu1 %v16816_v33 }
 0x106   : > { %12509 = vmatmul.mubr.msk.f32.gmra.mrb[6].mxu1 %vm544_vm2, %v14516_v2 }
 0x107   : > { %675 = vmatprep.mubr.f32.mxu1 %v16816_v33 }
 0x10a   : > { %12510 = vmatmul.mubr.msk.f32.gmra.mrb[8].mxu1 %vm544_vm2, %v14513_v1 }
 0x10b   : > { %13127 = vmatprep.mubr.msk.f32.mxu1 %vm14282_vm3, %v16816_v33 }
 0x1c9   : > { %v635_v10 = vpop.f32.mrb[8].mxu0 }
 0x1ca   : > { %v14541_v11 = vadd.f32 %v635_v10, %v537_v8  ;;  %v637_v12 = vpop.f32.mrb[9].mxu0 }
 0x1cb   : > { %v14543_v13 = vadd.f32 %v637_v12, %v541_v9 }
 0x1cc   : > { %683 = vrot.lane.b32.xlu0 %v14541_v11, %s14283_s24  ;;  %v653_v14 = vpop.f32.mrb[0].mxu1 }
 0x1cd   : > { %v641_v15 = vpop.f32.mrb[10].mxu0  ;;  %13126 = vmatpush3.msra.mxu1 %v14543_v13  ;;  %v655_v16 = vpop.f32.mrb[1].mxu1  ;;  %v14569_v30 = vadd.f32 %v653_v14, %v537_v8 }
 0x1ce   : > { %v14548_v17 = vadd.f32 %v641_v15, %v537_v8  ;;  %v643_v18 = vpop.f32.mrb[11].mxu0  ;;  %v14550_v19 = vadd.f32 %v655_v16, %v541_v9  ;;  %13135 = vmatprep.subr.mxu1 %v16816_v33 }
 0x1cf   : > { %v14553_v20 = vadd.f32 %v643_v18, %v541_v9 }
 0x1d0   : > { %761 = vrot.lane.b32.xlu0 %v14548_v17, %s14283_s24 }
 0x1d1   : > { %v647_v21 = vpop.f32.mrb[12].mxu0  ;;  %v659_v22 = vpop.f32.mrb[2].mxu1 }
 0x1d2   : > { %v14557_v23 = vadd.f32 %v647_v21, %v537_v8  ;;  %v649_v24 = vpop.f32.mrb[13].mxu0  ;;  %v14559_v25 = vadd.f32 %v659_v22, %v537_v8  ;;  %v661_v26 = vpop.f32.mrb[3].mxu1 }
 0x1d3   : > { %v14561_v27 = vadd.f32 %v649_v24, %v541_v9  ;;  %v14563_v28 = vadd.f32 %v661_v26, %v541_v9 }
 0x1d4   : > { %838 = vrot.lane.b32.xlu1 %v14557_v23, %s14283_s24  ;;  %992 = vrot.lane.b32.xlu0 %v14559_v25, %s14283_s24 }
 0x1d5   : > { %v665_v29 = vpop.f32.mrb[4].mxu1 }
 0x1d6   : > { %v667_v31 = vpop.f32.mrb[5].mxu1  ;;  %v14575_v34 = vadd.f32 %v665_v29, %v537_v8 }
 0x1d7   : > { %v14571_v32 = vadd.f32 %v667_v31, %v541_v9 }
 0x1d8   : > { %915 = vrot.lane.b32.xlu1 %v14569_v30, %s14283_s24 }
 0x1d9   : > { %v671_v35 = vpop.f32.mrb[6].mxu1 }
 0x1da   : > { %v14577_v36 = vadd.f32 %v671_v35, %v537_v8  ;;  %v673_v37 = vpop.f32.mrb[7].mxu1 }
 0x1db   : > { %v14579_v38 = vadd.f32 %v673_v37, %v541_v9 }
 0x1dc   : > { %1069 = vrot.lane.b32.xlu1 %v14575_v34, %s14283_s24  ;;  %1146 = vrot.lane.b32.xlu0 %v14577_v36, %s14283_s24 }
 0x1dd   : > { %v677_v39 = vpop.f32.mrb[8].mxu1 }
 0x1de   : > { %v14585_v40 = vadd.f32 %v677_v39, %v537_v8  ;;  %v679_v43 = vpop.f32.mrb[9].mxu1 }
 0x1df   : > { %v14587_v44 = vadd.f32 %v679_v43, %v541_v9 }
 0x1e0   : > { %1223 = vrot.lane.b32.xlu1 %v14585_v40, %s14283_s24  ;;  %s14295_s24 = smov 80  }
 0x23e   : > { %v684_v45 = vpop.permute.xlu0 %683 }
 0x23f   : > { %13086 = vmatpush3.xpose.msk.msra.mxu0 %vm685_vm4, %v684_v45 }
 0x240   : > { %13090 = vmatprep.subr.mxu0 %v16816_v33 }
 0x242   : > { %13088 = vmatmul.mubr.msk.f32.vlgmr.msra.gmra.mrb[14].mxu0 %vm685_vm4, %v14541_v11  ;;  %v762_v46 = vpop.permute.xlu0 %761 }
 0x243   : > { %13091 = vmatpush3.xpose.msk.msra.mxu0 %vm685_vm4, %v762_v46  ;;  %13092 = vmatprep.mubr.msk.f32.mxu0 %vm14282_vm3, %v16816_v33 }
 0x244   : > { %13095 = vmatprep.subr.mxu0 %v16816_v33 }
 0x246   : > { %v839_v47 = vpop.permute.xlu1 %838  ;;  %13093 = vmatmul.mubr.msk.f32.vlgmr.msra.gmra.mrb[16].mxu0 %vm685_vm4, %v14548_v17  ;;  %v993_v51 = vpop.permute.xlu0 %992 }
 0x247   : > { %13096 = vmatpush3.xpose.msk.msra.mxu0 %vm685_vm4, %v839_v47  ;;  %13097 = vmatprep.mubr.msk.f32.mxu0 %vm14282_vm3, %v16816_v33 }
 0x248   : > { %13100 = vmatprep.subr.mxu0 %v16816_v33 }
 0x24a   : > { %v916_v48 = vpop.permute.xlu1 %915  ;;  %13098 = vmatmul.mubr.msk.f32.vlgmr.msra.gmra.mrb[18].mxu0 %vm685_vm4, %v14557_v23 }
 0x24b   : > { %13101 = vmatpush3.xpose.msk.msra.mxu0 %vm685_vm4, %v916_v48  ;;  %13102 = vmatprep.mubr.msk.f32.mxu0 %vm14282_vm3, %v16816_v33 }
 0x24c   : > { %13105 = vmatprep.subr.mxu0 %v16816_v33 }
 0x24e   : > { %13103 = vmatmul.mubr.msk.f32.vlgmr.msra.gmra.mrb[20].mxu0 %vm685_vm4, %v14569_v30  ;;  %v1070_v52 = vpop.permute.xlu1 %1069  ;;  %v1147_v53 = vpop.permute.xlu0 %1146 }
 0x24f   : > { %13106 = vmatpush3.xpose.msk.msra.mxu0 %vm685_vm4, %v993_v51  ;;  %13107 = vmatprep.mubr.msk.f32.mxu0 %vm14282_vm3, %v16816_v33 }
 0x250   : > { %13110 = vmatprep.subr.mxu0 %v16816_v33 }
 0x252   : > { %13108 = vmatmul.mubr.msk.f32.vlgmr.msra.gmra.mrb[22].mxu0 %vm685_vm4, %v14559_v25  ;;  %v1224_v54 = vpop.permute.xlu1 %1223 }
 0x253   : > { %13111 = vmatpush3.xpose.msk.msra.mxu0 %vm685_vm4, %v1070_v52  ;;  %13112 = vmatprep.mubr.msk.f32.mxu0 %vm14282_vm3, %v16816_v33 }
 0x254   : > { %13115 = vmatprep.subr.mxu0 %v16816_v33 }
 0x256   : > { %13113 = vmatmul.mubr.msk.f32.vlgmr.msra.gmra.mrb[24].mxu0 %vm685_vm4, %v14575_v34 }
 0x257   : > { %13116 = vmatpush3.xpose.msk.msra.mxu0 %vm685_vm4, %v1147_v53  ;;  %13117 = vmatprep.mubr.msk.f32.mxu0 %vm14282_vm3, %v16816_v33 }
 0x258   : > { %13120 = vmatprep.subr.mxu0 %v16816_v33 }
 0x25a   : > { %13118 = vmatmul.mubr.msk.f32.vlgmr.msra.gmra.mrb[26].mxu0 %vm685_vm4, %v14577_v36 }
 0x25b   : > { %13121 = vmatpush3.xpose.msk.msra.mxu0 %vm685_vm4, %v1224_v54  ;;  %13122 = vmatprep.mubr.msk.f32.mxu0 %vm14282_vm3, %v16816_v33 }
 0x25c   : > { %13130 = vmatprep.subr.mxu0 %v16816_v33 }
 0x25e   : > { %13123 = vmatmul.mubr.msk.f32.vlgmr.msra.gmra.mrb[28].mxu0 %vm685_vm4, %v14585_v40 }
 0x25f   : > { %13131 = vmatpush3.msra.mxu0 %v14553_v20  ;;  %13132 = vmatprep.mubr.msk.f32.mxu0 %vm14282_vm3, %v16816_v33 }
 0x260   : > { %13140 = vmatprep.subr.mxu0 %v16816_v33 }
 0x315   : > { %v756_v55 = vpop.f32.mrb[14].mxu0 }
 0x316   : > { %v1299_v56 = vmul.f32 0.35355338, %v756_v55  ;;  %v13089_v59 = vpop.f32.mrb[15].mxu0 }
 0x318   : > { %v1307_v60 = vsel %vm685_vm4, %v1299_v56, -inf }
 0x319   : > { %1308 = vmax.xlane.f32.xlu0 %v1307_v60  ;;  %v833_v61 = vpop.f32.mrb[16].mxu0 }
 0x31a   : > { %v1300_v62 = vmul.f32 0.35355338, %v833_v61  ;;  %v13094_v63 = vpop.f32.mrb[17].mxu0 }
 0x31c   : > { %v1310_v0 = vsel %vm685_vm4, %v1300_v62, -inf }
 0x31d   : > { %1311 = vmax.xlane.f32.xlu1 %v1310_v0  ;;  %v910_v3 = vpop.f32.mrb[18].mxu0 }
 0x31e   : > { %v1301_v6 = vmul.f32 0.35355338, %v910_v3  ;;  %v13099_v8 = vpop.f32.mrb[19].mxu0 }
 0x320   : > { %v1313_v9 = vsel %vm685_vm4, %v1301_v6, -inf }
 0x321   : > { %1314 = vmax.xlane.f32.xlu0 %v1313_v9  ;;  %v987_v10 = vpop.f32.mrb[20].mxu0 }
 0x322   : > { %v1302_v12 = vmul.f32 0.35355338, %v987_v10  ;;  %v13104_v14 = vpop.f32.mrb[21].mxu0 }
 0x324   : > { %v1316_v15 = vsel %vm685_vm4, %v1302_v12, -inf }
 0x325   : > { %1317 = vmax.xlane.f32.xlu0 %v1316_v15  ;;  %v1064_v16 = vpop.f32.mrb[22].mxu0 }
 0x326   : > { %v1303_v18 = vmul.f32 0.35355338, %v1064_v16  ;;  %v13109_v21 = vpop.f32.mrb[23].mxu0 }
 0x328   : > { %v1319_v22 = vsel %vm685_vm4, %v1303_v18, -inf }
 0x329   : > { %1320 = vmax.xlane.f32.xlu1 %v1319_v22  ;;  %v1141_v24 = vpop.f32.mrb[24].mxu0 }
 0x32a   : > { %v1304_v26 = vmul.f32 0.35355338, %v1141_v24  ;;  %v13114_v29 = vpop.f32.mrb[25].mxu0 }
 0x32c   : > { %v1322_v31 = vsel %vm685_vm4, %v1304_v26, -inf }
 0x32d   : > { %1323 = vmax.xlane.f32.xlu0 %v1322_v31  ;;  %v1218_v35 = vpop.f32.mrb[26].mxu0 }
 0x32e   : > { %v1305_v37 = vmul.f32 0.35355338, %v1218_v35  ;;  %v13119_v39 = vpop.f32.mrb[27].mxu0 }
 0x330   : > { %v1325_v43 = vsel %vm685_vm4, %v1305_v37, -inf }
 0x331   : > { %1326 = vmax.xlane.f32.xlu1 %v1325_v43  ;;  %v1295_v45 = vpop.f32.mrb[28].mxu0 }
 0x332   : > { %v1306_v46 = vmul.f32 0.35355338, %v1295_v45  ;;  %v13124_v47 = vpop.f32.mrb[29].mxu0 }
 0x334   : > { %v1328_v48 = vsel %vm685_vm4, %v1306_v46, -inf }
 0x335   : > { %1329 = vmax.xlane.f32.xlu0 %v1328_v48 }
 0x342   : > { %1981 = vrot.lane.b32.xlu1 %v14541_v11, %s14284_s25 }
 0x346   : > { %1979 = vrot.lane.b32.xlu1 %v14541_v11, %s14285_s26 }
 0x34a   : > { %2057 = vrot.lane.b32.xlu1 %v14548_v17, %s14285_s26 }
 0x34b   : > { %2059 = vrot.lane.b32.xlu0 %v14548_v17, %s14284_s25 }
 0x34e   : > { %2215 = vrot.lane.b32.xlu1 %v14569_v30, %s14284_s25 }
 0x34f   : > { %2137 = vrot.lane.b32.xlu0 %v14557_v23, %s14284_s25 }
 0x3a6   : > { %v1309_v51 = vpop.xlane.xlu0 %1308 }
 0x3a7   : > { %v1331_v52 = vsub.f32 %v1299_v56, %v1309_v51 }
 0x3a9   : > { %v1339_v53 = vmul.f32 1.442695, %v1331_v52 }
 0x3aa   : > { %v1312_v54 = vpop.xlane.xlu1 %1311 }
 0x3ab   : > { %13929 = vpow2.f32 %v1339_v53  ;;  %v1332_v55 = vsub.f32 %v1300_v62, %v1312_v54 }
 0x3ad   : > { %v1341_v59 = vmul.f32 1.442695, %v1332_v55 }
 0x3ae   : > { %v1315_v60 = vpop.xlane.xlu0 %1314 }
 0x3af   : > { %13931 = vpow2.f32 %v1341_v59  ;;  %v1333_v61 = vsub.f32 %v1301_v6, %v1315_v60 }
 0x3b1   : > { %v1343_v63 = vmul.f32 1.442695, %v1333_v61 }
 0x3b2   : > { %v1318_v0 = vpop.xlane.xlu0 %1317 }
 0x3b3   : > { %13933 = vpow2.f32 %v1343_v63  ;;  %v1334_v3 = vsub.f32 %v1302_v12, %v1318_v0 }
 0x3b5   : > { %v14661_v8 = vpop.eup %13929  ;;  %v1345_v9 = vmul.f32 1.442695, %v1334_v3 }
 0x3b6   : > { %v1321_v10 = vpop.xlane.xlu1 %1320  ;;  %v1355_v14 = vsel %vm685_vm4, %v14661_v8, 0.0 }
 0x3b7   : > { %13935 = vpow2.f32 %v1345_v9  ;;  %v1335_v56 = vsub.f32 %v1303_v18, %v1321_v10  ;;  %1356 = vadd.xlane.f32.xlu1 %v1355_v14 }
 0x3b9   : > { %v14665_v15 = vpop.eup %13931  ;;  %v1347_v62 = vmul.f32 1.442695, %v1335_v56 }
 0x3ba   : > { %v1324_v16 = vpop.xlane.xlu0 %1323  ;;  %v1358_v6 = vsel %vm685_vm4, %v14665_v15, 0.0 }
 0x3bb   : > { %13937 = vpow2.f32 %v1347_v62  ;;  %v1336_v21 = vsub.f32 %v1304_v26, %v1324_v16  ;;  %1359 = vadd.xlane.f32.xlu0 %v1358_v6 }
 0x3bd   : > { %v14669_v12 = vpop.eup %13933  ;;  %v1349_v22 = vmul.f32 1.442695, %v1336_v21 }
 0x3be   : > { %v1327_v24 = vpop.xlane.xlu1 %1326  ;;  %v1361_v29 = vsel %vm685_vm4, %v14669_v12, 0.0 }
 0x3bf   : > { %13939 = vpow2.f32 %v1349_v22  ;;  %v1337_v18 = vsub.f32 %v1305_v37, %v1327_v24  ;;  %1362 = vadd.xlane.f32.xlu1 %v1361_v29 }
 0x3c1   : > { %v14673_v31 = vpop.eup %13935  ;;  %v1351_v35 = vmul.f32 1.442695, %v1337_v18 }
 0x3c2   : > { %v1330_v39 = vpop.xlane.xlu0 %1329  ;;  %v1364_v43 = vsel %vm685_vm4, %v14673_v31, 0.0  ;;  %v14713_v55 = vpop.permute.xlu1 %1981 }
 0x3c3   : > { %13941 = vpow2.f32 %v1351_v35  ;;  %v1338_v26 = vsub.f32 %v1306_v46, %v1330_v39  ;;  %1365 = vadd.xlane.f32.xlu0 %v1364_v43 }
 0x3c5   : > { %v14677_v45 = vpop.eup %13937  ;;  %v1353_v47 = vmul.f32 1.442695, %v1338_v26 }
 0x3c6   : > { %v1367_v48 = vsel %vm685_vm4, %v14677_v45, 0.0  ;;  %v14715_v59 = vpop.permute.xlu1 %1979  ;;  %v14719_v61 = vpop.permute.xlu0 %2059 }
 0x3c7   : > { %13943 = vpow2.f32 %v1353_v47  ;;  %1368 = vadd.xlane.f32.xlu1 %v1367_v48 }
 0x3c9   : > { %v14681_v37 = vpop.eup %13939 }
 0x3ca   : > { %v1370_v51 = vsel %vm685_vm4, %v14681_v37, 0.0  ;;  %v14717_v60 = vpop.permute.xlu1 %2057  ;;  %v14723_v0 = vpop.permute.xlu0 %2137 }
 0x3cb   : > { %1371 = vadd.xlane.f32.xlu0 %v1370_v51 }
 0x3cd   : > { %v14685_v52 = vpop.eup %13941 }
 0x3ce   : > { %v1373_v46 = vsel %vm685_vm4, %v14685_v52, 0.0  ;;  %v14721_v63 = vpop.permute.xlu1 %2215 }
 0x3cf   : > { %1374 = vadd.xlane.f32.xlu1 %v1373_v46 }
 0x3d1   : > { %v14689_v53 = vpop.eup %13943 }
 0x3d2   : > { %v1376_v54 = vsel %vm685_vm4, %v14689_v53, 0.0 }
 0x3d3   : > { %1377 = vadd.xlane.f32.xlu0 %v1376_v54 }
 0x3e0   : > { %2213 = vrot.lane.b32.xlu1 %v14569_v30, %s14285_s26 }
 0x3e4   : > { %2371 = vrot.lane.b32.xlu1 %v14575_v34, %s14284_s25 }
 0x3e8   : > { %2369 = vrot.lane.b32.xlu1 %v14575_v34, %s14285_s26 }
 0x3e9   : > { %2135 = vrot.lane.b32.xlu0 %v14557_v23, %s14285_s26 }
 0x3ec   : > { %2527 = vrot.lane.b32.xlu1 %v14585_v40, %s14284_s25 }
 0x3ed   : > { %2293 = vrot.lane.b32.xlu0 %v14559_v25, %s14284_s25 }
 0x3f0   : > { %2525 = vrot.lane.b32.xlu1 %v14585_v40, %s14285_s26 }
 0x3f1   : > { %2291 = vrot.lane.b32.xlu0 %v14559_v25, %s14285_s26 }
 0x3f5   : > { %2449 = vrot.lane.b32.xlu0 %v14577_v36, %s14284_s25 }
 0x3f9   : > { %2447 = vrot.lane.b32.xlu0 %v14577_v36, %s14285_s26 }
 0x444   : > { %v1357_v3 = vpop.xlane.xlu1 %1356 }
 0x445   : > { %13945 = vrcp.f32 %v1357_v3 }
 0x448   : > { %v1360_v9 = vpop.xlane.xlu0 %1359 }
 0x449   : > { %13947 = vrcp.f32 %v1360_v9 }
 0x44c   : > { %v1363_v10 = vpop.xlane.xlu1 %1362 }
 0x44d   : > { %13949 = vrcp.f32 %v1363_v10 }
 0x44f   : > { %v13946_v14 = vpop.eup %13945 }
 0x450   : > { %v1387_v56 = vmul.f32 %v13946_v14, %v14661_v8  ;;  %v1366_v62 = vpop.xlane.xlu0 %1365 }
 0x451   : > { %13951 = vrcp.f32 %v1366_v62 }
 0x452   : > { %13128 = vmatmul.mubr.msk.f32.vlgmr.msra.gmra.mrb[10].mxu1 %vm685_vm4, %v1387_v56 }
 0x453   : > { %v13948_v16 = vpop.eup %13947  ;;  %13136 = vmatpush3.msra.mxu1 %v14561_v27  ;;  %13137 = vmatprep.mubr.msk.f32.mxu1 %vm14282_vm3, %v16816_v33 }
 0x454   : > { %v1369_v6 = vpop.xlane.xlu1 %1368  ;;  %v1388_v21 = vmul.f32 %v13948_v16, %v14665_v15  ;;  %13145 = vmatprep.subr.mxu1 %v16816_v33 }
 0x455   : > { %13953 = vrcp.f32 %v1369_v6 }
 0x456   : > { %13133 = vmatmul.mubr.msk.f32.vlgmr.msra.gmra.mrb[30].mxu0 %vm685_vm4, %v1388_v21 }
 0x457   : > { %v13950_v22 = vpop.eup %13949  ;;  %13141 = vmatpush3.msra.mxu0 %v14550_v19  ;;  %13142 = vmatprep.mubr.msk.f32.mxu0 %vm14282_vm3, %v16816_v33 }
 0x458   : > { %v1372_v8 = vpop.xlane.xlu0 %1371  ;;  %v1389_v24 = vmul.f32 %v13950_v22, %v14669_v12  ;;  %13150 = vmatprep.subr.mxu0 %v16816_v33 }
 0x459   : > { %13955 = vrcp.f32 %v1372_v8 }
 0x45a   : > { %13138 = vmatmul.mubr.msk.f32.vlgmr.msra.gmra.mrb[12].mxu1 %vm685_vm4, %v1389_v24 }
 0x45b   : > { %v13952_v15 = vpop.eup %13951  ;;  %13146 = vmatpush3.msra.mxu1 %v14563_v28  ;;  %13147 = vmatprep.mubr.msk.f32.mxu1 %vm14282_vm3, %v16816_v33 }
 0x45c   : > { %v1375_v29 = vpop.xlane.xlu1 %1374  ;;  %v1390_v18 = vmul.f32 %v13952_v15, %v14673_v31  ;;  %13155 = vmatprep.subr.mxu1 %v16816_v33 }
 0x45d   : > { %13957 = vrcp.f32 %v1375_v29 }
 0x45e   : > { %13143 = vmatmul.mubr.msk.f32.vlgmr.msra.gmra.mrb[32].mxu0 %vm685_vm4, %v1390_v18 }
 0x45f   : > { %v13954_v12 = vpop.eup %13953  ;;  %13151 = vmatpush3.msra.mxu0 %v14571_v32  ;;  %13152 = vmatprep.mubr.msk.f32.mxu0 %vm14282_vm3, %v16816_v33 }
 0x460   : > { %v1378_v35 = vpop.xlane.xlu0 %1377  ;;  %v1391_v39 = vmul.f32 %v13954_v12, %v14677_v45  ;;  %13160 = vmatprep.subr.mxu0 %v16816_v33  ;;  %v2214_v47 = vpop.permute.xlu1 %2213 }
 0x461   : > { %13959 = vrcp.f32 %v1378_v35 }
 0x462   : > { %13148 = vmatmul.mubr.msk.f32.vlgmr.msra.gmra.mrb[14].mxu1 %vm685_vm4, %v1391_v39 }
 0x463   : > { %v13956_v31 = vpop.eup %13955  ;;  %13156 = vmatpush3.msra.mxu1 %v14579_v38  ;;  %13157 = vmatprep.mubr.msk.f32.mxu1 %vm14282_vm3, %v16816_v33 }
 0x464   : > { %v2136_v43 = vpop.permute.xlu0 %2135  ;;  %v1392_v26 = vmul.f32 %v13956_v31, %v14681_v37  ;;  %13165 = vmatprep.subr.mxu1 %v16816_v33  ;;  %v2372_v37 = vpop.permute.xlu1 %2371 }
 0x466   : > { %13153 = vmatmul.mubr.msk.f32.vlgmr.msra.gmra.mrb[34].mxu0 %vm685_vm4, %v1392_v26 }
 0x467   : > { %v13958_v45 = vpop.eup %13957  ;;  %13161 = vmatpush3.msra.mxu0 %v14587_v44  ;;  %13162 = vmatprep.mubr.msk.f32.mxu0 %vm14282_vm3, %v16816_v33 }
 0x468   : > { %v2294_v48 = vpop.permute.xlu0 %2293  ;;  %v1393_v51 = vmul.f32 %v13958_v45, %v14685_v52  ;;  %13170 = vmatprep.subr.mxu0 %v16816_v33  ;;  %v2370_v52 = vpop.permute.xlu1 %2369 }
 0x46a   : > { %13158 = vmatmul.mubr.msk.f32.vlgmr.msra.gmra.mrb[16].mxu1 %vm685_vm4, %v1393_v51 }
 0x46b   : > { %v13960_v46 = vpop.eup %13959  ;;  %13166 = vmatpush3.xpose.msk.msra.mxu1 %vm685_vm4, %v14713_v55  ;;  %13167 = vmatprep.mubr.msk.f32.mxu1 %vm14282_vm3, %v16816_v33 }
 0x46c   : > { %13175 = vmatprep.subr.mxu1 %v16816_v33  ;;  %v1394_v54 = vmul.f32 %v13960_v46, %v14689_v53  ;;  %v2292_v3 = vpop.permute.xlu0 %2291  ;;  %v2528_v55 = vpop.permute.xlu1 %2527 }
 0x46e   : > { %13163 = vmatmul.mubr.msk.f32.vlgmr.msra.gmra.mrb[36].mxu0 %vm685_vm4, %v1394_v54  ;;  %13168 = vmatmul.mubr.msk.f32.vlgmr.msra.gmra.mrb[18].mxu1 %vm685_vm4, %v14715_v59 }
 0x46f   : > { %13171 = vmatpush3.xpose.msk.msra.mxu0 %vm685_vm4, %v14719_v61  ;;  %13176 = vmatpush3.xpose.msk.msra.mxu1 %vm685_vm4, %v14723_v0 }
 0x470   : > { %13172 = vmatprep.mubr.msk.f32.mxu0 %vm14282_vm3, %v16816_v33  ;;  %13177 = vmatprep.mubr.msk.f32.mxu1 %vm14282_vm3, %v16816_v33  ;;  %v2450_v53 = vpop.permute.xlu0 %2449 }
 0x471   : > { %13180 = vmatprep.subr.mxu0 %v16816_v33  ;;  %13185 = vmatprep.subr.mxu1 %v16816_v33 }
 0x472   : > { %13173 = vmatmul.mubr.msk.f32.vlgmr.msra.gmra.mrb[38].mxu0 %vm685_vm4, %v14717_v60  ;;  %13178 = vmatmul.mubr.msk.f32.vlgmr.msra.gmra.mrb[20].mxu1 %vm685_vm4, %v2136_v43  ;;  %v2526_v60 = vpop.permute.xlu1 %2525 }
 0x473   : > { %13181 = vmatpush3.xpose.msk.msra.mxu0 %vm685_vm4, %v14721_v63  ;;  %13186 = vmatpush3.xpose.msk.msra.mxu1 %vm685_vm4, %v2294_v48 }
 0x474   : > { %13182 = vmatprep.mubr.msk.f32.mxu0 %vm14282_vm3, %v16816_v33  ;;  %13187 = vmatprep.mubr.msk.f32.mxu1 %vm14282_vm3, %v16816_v33  ;;  %v2448_v59 = vpop.permute.xlu0 %2447 }
 0x475   : > { %13190 = vmatprep.subr.mxu0 %v16816_v33  ;;  %13195 = vmatprep.subr.mxu1 %v16816_v33 }
 0x476   : > { %13183 = vmatmul.mubr.msk.f32.vlgmr.msra.gmra.mrb[40].mxu0 %vm685_vm4, %v2214_v47  ;;  %13188 = vmatmul.mubr.msk.f32.vlgmr.msra.gmra.mrb[22].mxu1 %vm685_vm4, %v2292_v3 }
 0x477   : > { %13191 = vmatpush3.xpose.msk.msra.mxu0 %vm685_vm4, %v2372_v37  ;;  %13196 = vmatpush3.xpose.msk.msra.mxu1 %vm685_vm4, %v2450_v53 }
 0x478   : > { %13192 = vmatprep.mubr.msk.f32.mxu0 %vm14282_vm3, %v16816_v33  ;;  %13197 = vmatprep.mubr.msk.f32.mxu1 %vm14282_vm3, %v16816_v33 }
 0x479   : > { %13200 = vmatprep.subr.mxu0 %v16816_v33  ;;  %13205 = vmatprep.subr.mxu1 %v16816_v33 }
 0x47a   : > { %13193 = vmatmul.mubr.msk.f32.vlgmr.msra.gmra.mrb[42].mxu0 %vm685_vm4, %v2370_v52  ;;  %13198 = vmatmul.mubr.msk.f32.vlgmr.msra.gmra.mrb[24].mxu1 %vm685_vm4, %v2448_v59 }
 0x47b   : > { %13201 = vmatpush3.xpose.msk.msra.mxu0 %vm685_vm4, %v2528_v55  ;;  %13202 = vmatprep.mubr.msk.f32.mxu0 %vm14282_vm3, %v16816_v33 }
 0x47c   : > { %13210 = vmatprep.subr.mxu0 %v16816_v33  ;;  %13207 = vmatprep.mubr.msk.f32.mxu1 %vm14282_vm3, %v16816_v33 }
 0x47e   : > { %13203 = vmatmul.mubr.msk.f32.vlgmr.msra.gmra.mrb[44].mxu0 %vm685_vm4, %v2526_v60 }
 0x47f   : > { %13212 = vmatprep.mubr.msk.f32.mxu0 %vm14282_vm3, %v16816_v33 }
 0x525   : > { %v14815_v61 = vpop.f32.mrb[10].mxu1 }
 0x526   : > { %16843 = vst [vmem:[#allocation14_spill] sm:$0xff] %v14815_v61  ;;  %v13129_v63 = vpop.f32.mrb[11].mxu1 }
 0x529   : > { %v14817_v0 = vpop.f32.mrb[30].mxu0 }
 0x52a   : > { %16844 = vst [vmem:[#allocation15_spill] sm:$0xff] %v14817_v0  ;;  %v13134_v9 = vpop.f32.mrb[31].mxu0 }
 0x52d   : > { %v14819_v10 = vpop.f32.mrb[12].mxu1 }
 0x52e   : > { %16845 = vst [vmem:[#allocation16_spill] sm:$0xff] %v14819_v10  ;;  %v13139_v14 = vpop.f32.mrb[13].mxu1 }
 0x531   : > { %v14821_v56 = vpop.f32.mrb[32].mxu0 }
 0x532   : > { %16846 = vst [vmem:[#allocation17_spill] sm:$0xff] %v14821_v56  ;;  %v13144_v62 = vpop.f32.mrb[33].mxu0 }
 0x535   : > { %v14823_v16 = vpop.f32.mrb[14].mxu1 }
 0x536   : > { %16847 = vst [vmem:[#allocation18_spill] sm:$0xff] %v14823_v16  ;;  %v13149_v6 = vpop.f32.mrb[15].mxu1 }
 0x539   : > { %v14825_v21 = vpop.f32.mrb[34].mxu0 }
 0x53a   : > { %16848 = vst [vmem:[#allocation19_spill] sm:$0xff] %v14825_v21  ;;  %v13154_v22 = vpop.f32.mrb[35].mxu0 }
 0x53d   : > { %v14827_v8 = vpop.f32.mrb[16].mxu1 }
 0x53e   : > { %16849 = vst [vmem:[#allocation20_spill] sm:$0xff] %v14827_v8  ;;  %v13159_v24 = vpop.f32.mrb[17].mxu1 }
 0x541   : > { %v14829_v15 = vpop.f32.mrb[36].mxu0  ;;  %v2053_v29 = vpop.f32.mrb[18].mxu1 }
 0x542   : > { %16850 = vst [vmem:[#allocation21_spill] sm:$0xff] %v14829_v15  ;;  %v2603_v18 = vmul.f32 0.35355338, %v2053_v29  ;;  %v13164_v12 = vpop.f32.mrb[37].mxu0  ;;  %v13169_v35 = vpop.f32.mrb[19].mxu1 }
 0x544   : > { %v2611_v39 = vsel %vm685_vm4, %v2603_v18, -inf }
 0x545   : > { %2612 = vmax.xlane.f32.xlu0 %v2611_v39  ;;  %v2131_v31 = vpop.f32.mrb[38].mxu0  ;;  %v2209_v43 = vpop.f32.mrb[20].mxu1 }
 0x546   : > { %v2604_v26 = vmul.f32 0.35355338, %v2131_v31  ;;  %v2605_v47 = vmul.f32 0.35355338, %v2209_v43  ;;  %v13174_v45 = vpop.f32.mrb[39].mxu0  ;;  %v13179_v48 = vpop.f32.mrb[21].mxu1 }
 0x548   : > { %v2614_v51 = vsel %vm685_vm4, %v2604_v26, -inf  ;;  %v2617_v46 = vsel %vm685_vm4, %v2605_v47, -inf }
 0x549   : > { %2615 = vmax.xlane.f32.xlu1 %v2614_v51  ;;  %v2287_v37 = vpop.f32.mrb[40].mxu0  ;;  %2618 = vmax.xlane.f32.xlu0 %v2617_v46  ;;  %v2365_v54 = vpop.f32.mrb[22].mxu1 }
 0x54a   : > { %v2606_v3 = vmul.f32 0.35355338, %v2287_v37  ;;  %v2607_v52 = vmul.f32 0.35355338, %v2365_v54  ;;  %v13184_v53 = vpop.f32.mrb[41].mxu0  ;;  %v13189_v55 = vpop.f32.mrb[23].mxu1 }
 0x54c   : > { %v2620_v59 = vsel %vm685_vm4, %v2606_v3, -inf  ;;  %v2623_v60 = vsel %vm685_vm4, %v2607_v52, -inf }
 0x54d   : > { %v2443_v63 = vpop.f32.mrb[42].mxu0  ;;  %2621 = vmax.xlane.f32.xlu0 %v2620_v59  ;;  %2624 = vmax.xlane.f32.xlu1 %v2623_v60  ;;  %v2521_v9 = vpop.f32.mrb[24].mxu1 }
 0x54e   : > { %v2608_v14 = vmul.f32 0.35355338, %v2443_v63  ;;  %v13194_v62 = vpop.f32.mrb[43].mxu0  ;;  %v13199_v6 = vpop.f32.mrb[25].mxu1  ;;  %v14850_v39 = vmul.f32 0.35355338, %v2521_v9 }
 0x550   : > { %v2626_v22 = vsel %vm685_vm4, %v2608_v14, -inf  ;;  %v2629_v31 = vsel %vm685_vm4, %v14850_v39, -inf }
 0x551   : > { %v2599_v24 = vpop.f32.mrb[44].mxu0  ;;  %2627 = vmax.xlane.f32.xlu0 %v2626_v22 }
 0x552   : > { %v2610_v29 = vmul.f32 0.35355338, %v2599_v24  ;;  %v13204_v12 = vpop.f32.mrb[45].mxu0 }
 0x554   : > { %v2632_v35 = vsel %vm685_vm4, %v2610_v29, -inf }
 0x555   : > { %2633 = vmax.xlane.f32.xlu0 %v2632_v35 }
 0x55e   : > { %2700 = vrot.lane.b32.xlu1 %v14543_v13, %s14285_s26 }
 0x56b   : > { %2777 = vrot.lane.b32.xlu0 %v14553_v20, %s14285_s26 }
 0x56f   : > { %3008 = vrot.lane.b32.xlu0 %v14563_v28, %s14285_s26 }
 0x573   : > { %3162 = vrot.lane.b32.xlu0 %v14579_v38, %s14285_s26 }
 0x577   : > { %3317 = vrot.lane.b32.xlu0 %v14541_v11, %s16828_s27 }
 0x57b   : > { %3315 = vrot.lane.b32.xlu0 %v14541_v11, %s14287_s28 }
 0x57f   : > { %3473 = vrot.lane.b32.xlu0 %v14557_v23, %s16828_s27 }
 0x582   : > { %2630 = vmax.xlane.f32.xlu1 %v2629_v31 }
 0x593   : > { %2854 = vrot.lane.b32.xlu1 %v14561_v27, %s14285_s26 }
 0x597   : > { %2931 = vrot.lane.b32.xlu1 %v14550_v19, %s14285_s26 }
 0x59b   : > { %3085 = vrot.lane.b32.xlu1 %v14571_v32, %s14285_s26 }
 0x59f   : > { %3239 = vrot.lane.b32.xlu1 %v14587_v44, %s14285_s26  ;;  %s14296_s26 = smov 8  }
 0x5a3   : > { %3395 = vrot.lane.b32.xlu1 %v14548_v17, %s16828_s27 }
 0x5a7   : > { %3393 = vrot.lane.b32.xlu1 %v14548_v17, %s14287_s28 }
 0x5ab   : > { %3551 = vrot.lane.b32.xlu1 %v14569_v30, %s16828_s27 }
 0x5d2   : > { %v2613_v43 = vpop.xlane.xlu0 %2612 }
 0x5d3   : > { %v2635_v45 = vsub.f32 %v2603_v18, %v2613_v43 }
 0x5d5   : > { %v2643_v48 = vmul.f32 1.442695, %v2635_v45 }
 0x5d6   : > { %v2616_v51 = vpop.xlane.xlu1 %2615  ;;  %v2619_v46 = vpop.xlane.xlu0 %2618 }
 0x5d7   : > { %13961 = vpow2.f32 %v2643_v48  ;;  %v2636_v37 = vsub.f32 %v2604_v26, %v2616_v51  ;;  %v2637_v54 = vsub.f32 %v2605_v47, %v2619_v46 }
 0x5d9   : > { %v2645_v53 = vmul.f32 1.442695, %v2636_v37  ;;  %v2647_v55 = vmul.f32 1.442695, %v2637_v54 }
 0x5da   : > { %v2625_v59 = vpop.xlane.xlu1 %2624  ;;  %v2622_v60 = vpop.xlane.xlu0 %2621 }
 0x5db   : > { %13963 = vpow2.f32 %v2645_v53  ;;  %v2639_v63 = vsub.f32 %v2607_v52, %v2625_v59  ;;  %v2638_v9 = vsub.f32 %v2606_v3, %v2622_v60 }
 0x5dc   : > { %13965 = vpow2.f32 %v2647_v55 }
 0x5dd   : > { %v2651_v62 = vmul.f32 1.442695, %v2639_v63  ;;  %v2649_v6 = vmul.f32 1.442695, %v2638_v9 }
 0x5de   : > { %v2701_v22 = vpop.permute.xlu1 %2700  ;;  %v2628_v24 = vpop.xlane.xlu0 %2627 }
 0x5df   : > { %13967 = vpow2.f32 %v2651_v62  ;;  %v2640_v18 = vsub.f32 %v2608_v14, %v2628_v24  ;;  %13206 = vmatpush3.msra.mxu1 %v2701_v22 }
 0x5e0   : > { %13969 = vpow2.f32 %v2649_v6  ;;  %13215 = vmatprep.subr.mxu1 %v16816_v33 }
 0x5e1   : > { %v14871_v26 = vpop.eup %13961  ;;  %v2653_v47 = vmul.f32 1.442695, %v2640_v18 }
 0x5e2   : > { %v2634_v12 = vpop.xlane.xlu0 %2633  ;;  %v2659_v35 = vsel %vm685_vm4, %v14871_v26, 0.0 }
 0x5e3   : > { %13971 = vpow2.f32 %v2653_v47  ;;  %v2642_v3 = vsub.f32 %v2610_v29, %v2634_v12  ;;  %2660 = vadd.xlane.f32.xlu1 %v2659_v35 }
 0x5e5   : > { %v14875_v52 = vpop.eup %13963  ;;  %v2657_v31 = vmul.f32 1.442695, %v2642_v3 }
 0x5e6   : > { %v14877_v43 = vpop.eup %13965  ;;  %v2778_v14 = vpop.permute.xlu0 %2777  ;;  %v2662_v45 = vsel %vm685_vm4, %v14875_v52, 0.0 }
 0x5e7   : > { %13973 = vpow2.f32 %v2657_v31  ;;  %2663 = vadd.xlane.f32.xlu0 %v2662_v45  ;;  %v2665_v48 = vsel %vm685_vm4, %v14877_v43, 0.0  ;;  %13211 = vmatpush3.msra.mxu0 %v2778_v14 }
 0x5e8   : > { %2666 = vadd.xlane.f32.xlu1 %v2665_v48  ;;  %13220 = vmatprep.subr.mxu0 %v16816_v33 }
 0x5e9   : > { %v14884_v29 = vpop.eup %13967 }
 0x5ea   : > { %v14886_v51 = vpop.eup %13969  ;;  %v2671_v46 = vsel %vm685_vm4, %v14884_v29, 0.0  ;;  %v3009_v18 = vpop.permute.xlu0 %3008 }
 0x5eb   : > { %v2668_v37 = vsel %vm685_vm4, %v14886_v51, 0.0 }
 0x5ec   : > { %2672 = vadd.xlane.f32.xlu1 %v2671_v46  ;;  %2669 = vadd.xlane.f32.xlu0 %v2668_v37 }
 0x5ed   : > { %v14892_v54 = vpop.eup %13971 }
 0x5ee   : > { %v2674_v53 = vsel %vm685_vm4, %v14892_v54, 0.0  ;;  %v3163_v12 = vpop.permute.xlu0 %3162 }
 0x5f0   : > { %2675 = vadd.xlane.f32.xlu0 %v2674_v53 }
 0x5f1   : > { %v14896_v55 = vpop.eup %13973 }
 0x5f2   : > { %v2680_v59 = vsel %vm685_vm4, %v14896_v55, 0.0  ;;  %v14925_v3 = vpop.permute.xlu0 %3317 }
 0x5f4   : > { %2681 = vadd.xlane.f32.xlu0 %v2680_v59 }
 0x5f6   : > { %v14927_v14 = vpop.permute.xlu0 %3315 }
 0x5fa   : > { %v14929_v48 = vpop.permute.xlu0 %3473 }
 0x60a   : > { %3471 = vrot.lane.b32.xlu0 %v14557_v23, %s14287_s28 }
 0x60e   : > { %3629 = vrot.lane.b32.xlu0 %v14559_v25, %s16828_s27 }
 0x60f   : > { %v2631_v60 = vpop.xlane.xlu1 %2630 }
 0x610   : > { %v2641_v63 = vsub.f32 %v14850_v39, %v2631_v60 }
 0x612   : > { %v2655_v9 = vmul.f32 1.442695, %v2641_v63  ;;  %3627 = vrot.lane.b32.xlu0 %v14559_v25, %s14287_s28 }
 0x613   : > { %v2855_v39 = vpop.permute.xlu1 %2854 }
 0x614   : > { %13975 = vpow2.f32 %v2655_v9 }
 0x616   : > { %3785 = vrot.lane.b32.xlu0 %v14577_v36, %s16828_s27 }
 0x617   : > { %v2932_v22 = vpop.permute.xlu1 %2931 }
 0x61a   : > { %3783 = vrot.lane.b32.xlu0 %v14577_v36, %s14287_s28 }
 0x61b   : > { %v3086_v24 = vpop.permute.xlu1 %3085 }
 0x61e   : > { %v14911_v62 = vpop.eup %13975 }
 0x61f   : > { %v2677_v6 = vsel %vm685_vm4, %v14911_v62, 0.0  ;;  %v3240_v47 = vpop.permute.xlu1 %3239 }
 0x620   : > { %2678 = vadd.xlane.f32.xlu1 %v2677_v6 }
 0x623   : > { %v3396_v35 = vpop.permute.xlu1 %3395 }
 0x627   : > { %v3394_v31 = vpop.permute.xlu1 %3393 }
 0x62b   : > { %v3552_v45 = vpop.permute.xlu1 %3551 }
 0x631   : > { %3549 = vrot.lane.b32.xlu1 %v14569_v30, %s14287_s28 }
 0x635   : > { %3707 = vrot.lane.b32.xlu1 %v14575_v34, %s16828_s27 }
 0x639   : > { %3705 = vrot.lane.b32.xlu1 %v14575_v34, %s14287_s28 }
 0x63d   : > { %3863 = vrot.lane.b32.xlu1 %v14585_v40, %s16828_s27 }
 0x641   : > { %3861 = vrot.lane.b32.xlu1 %v14585_v40, %s14287_s28 }
 0x670   : > { %v2661_v46 = vpop.xlane.xlu1 %2660 }
 0x671   : > { %13977 = vrcp.f32 %v2661_v46 }
 0x674   : > { %v2664_v37 = vpop.xlane.xlu0 %2663 }
 0x675   : > { %v2667_v53 = vpop.xlane.xlu1 %2666  ;;  %13979 = vrcp.f32 %v2664_v37 }
 0x676   : > { %13981 = vrcp.f32 %v2667_v53 }
 0x679   : > { %v2673_v59 = vpop.xlane.xlu1 %2672  ;;  %v2670_v60 = vpop.xlane.xlu0 %2669 }
 0x67a   : > { %13983 = vrcp.f32 %v2673_v59 }
 0x67b   : > { %v13978_v63 = vpop.eup %13977  ;;  %13985 = vrcp.f32 %v2670_v60 }
 0x67c   : > { %v2691_v9 = vmul.f32 %v13978_v63, %v14871_v26 }
 0x67d   : > { %v2676_v6 = vpop.xlane.xlu0 %2675 }
 0x67e   : > { %13987 = vrcp.f32 %v2676_v6  ;;  %13208 = vmatmul.mubr.msk.f32.vlgmr.msra.gmra.mrb[26].mxu1 %vm685_vm4, %v2691_v9 }
 0x67f   : > { %v13980_v7 = vpop.eup %13979  ;;  %13216 = vmatpush3.msra.mxu1 %v2855_v39  ;;  %13217 = vmatprep.mubr.msk.f32.mxu1 %vm14282_vm3, %v16816_v33 }
 0x680   : > { %v13982_v46 = vpop.eup %13981  ;;  %13225 = vmatprep.subr.mxu1 %v16816_v33  ;;  %v2692_v37 = vmul.f32 %v13980_v7, %v14875_v52 }
 0x681   : > { %v2682_v53 = vpop.xlane.xlu0 %2681  ;;  %v2693_v59 = vmul.f32 %v13982_v46, %v14877_v43 }
 0x682   : > { %13989 = vrcp.f32 %v2682_v53  ;;  %13213 = vmatmul.mubr.msk.f32.vlgmr.msra.gmra.mrb[46].mxu0 %vm685_vm4, %v2692_v37 }
 0x683   : > { %13218 = vmatmul.mubr.msk.f32.vlgmr.msra.gmra.mrb[28].mxu1 %vm685_vm4, %v2693_v59  ;;  %13221 = vmatpush3.msra.mxu0 %v2932_v22 }
 0x684   : > { %v13984_v26 = vpop.eup %13983  ;;  %13226 = vmatpush3.msra.mxu1 %v3009_v18  ;;  %13222 = vmatprep.mubr.msk.f32.mxu0 %vm14282_vm3, %v16816_v33 }
 0x685   : > { %v13986_v39 = vpop.eup %13985  ;;  %13227 = vmatprep.mubr.msk.f32.mxu1 %vm14282_vm3, %v16816_v33  ;;  %13230 = vmatprep.subr.mxu0 %v16816_v33  ;;  %v2695_v7 = vmul.f32 %v13984_v26, %v14884_v29 }
 0x686   : > { %13235 = vmatprep.subr.mxu1 %v16816_v33  ;;  %v2694_v52 = vmul.f32 %v13986_v39, %v14886_v51 }
 0x687   : > { %13228 = vmatmul.mubr.msk.f32.vlgmr.msra.gmra.mrb[30].mxu1 %vm685_vm4, %v2695_v7 }
 0x688   : > { %v13988_v43 = vpop.eup %13987  ;;  %13223 = vmatmul.mubr.msk.f32.vlgmr.msra.gmra.mrb[48].mxu0 %vm685_vm4, %v2694_v52  ;;  %13236 = vmatpush3.msra.mxu1 %v3163_v12 }
 0x689   : > { %13231 = vmatpush3.msra.mxu0 %v3086_v24  ;;  %13232 = vmatprep.mubr.msk.f32.mxu0 %vm14282_vm3, %v16816_v33  ;;  %v2696_v22 = vmul.f32 %v13988_v43, %v14892_v54  ;;  %v3472_v24 = vpop.permute.xlu0 %3471 }
 0x68a   : > { %13240 = vmatprep.subr.mxu0 %v16816_v33  ;;  %13237 = vmatprep.mubr.msk.f32.mxu1 %vm14282_vm3, %v16816_v33 }
 0x68b   : > { %13245 = vmatprep.subr.mxu1 %v16816_v33 }
 0x68c   : > { %v13990_v29 = vpop.eup %13989  ;;  %13233 = vmatmul.mubr.msk.f32.vlgmr.msra.gmra.mrb[50].mxu0 %vm685_vm4, %v2696_v22 }
 0x68d   : > { %13241 = vmatpush3.msra.mxu0 %v3240_v47  ;;  %13242 = vmatprep.mubr.msk.f32.mxu0 %vm14282_vm3, %v16816_v33  ;;  %v2698_v51 = vmul.f32 %v13990_v29, %v14896_v55  ;;  %v3630_v12 = vpop.permute.xlu0 %3629 }
 0x68e   : > { %13250 = vmatprep.subr.mxu0 %v16816_v33 }
 0x690   : > { %13243 = vmatmul.mubr.msk.f32.vlgmr.msra.gmra.mrb[52].mxu0 %vm685_vm4, %v2698_v51 }
 0x691   : > { %13252 = vmatprep.mubr.msk.f32.mxu0 %vm14282_vm3, %v16816_v33  ;;  %v3628_v60 = vpop.permute.xlu0 %3627 }
 0x694   : > { %13251 = vmatpush3.xpose.msk.msra.mxu0 %vm685_vm4, %v3396_v35 }
 0x695   : > { %13260 = vmatprep.subr.mxu0 %v16816_v33 }
 0x697   : > { %13253 = vmatmul.mubr.msk.f32.vlgmr.msra.gmra.mrb[54].mxu0 %vm685_vm4, %v3394_v31 }
 0x698   : > { %13261 = vmatpush3.xpose.msk.msra.mxu0 %vm685_vm4, %v3552_v45  ;;  %13262 = vmatprep.mubr.msk.f32.mxu0 %vm14282_vm3, %v16816_v33 }
 0x699   : > { %13270 = vmatprep.subr.mxu0 %v16816_v33 }
 0x6ad   : > { %v2679_v54 = vpop.xlane.xlu1 %2678 }
 0x6ae   : > { %13991 = vrcp.f32 %v2679_v54 }
 0x6b1   : > { %v3550_v55 = vpop.permute.xlu1 %3549 }
 0x6b2   : > { %13263 = vmatmul.mubr.msk.f32.vlgmr.msra.gmra.mrb[56].mxu0 %vm685_vm4, %v3550_v55 }
 0x6b3   : > { %13272 = vmatprep.mubr.msk.f32.mxu0 %vm14282_vm3, %v16816_v33 }
 0x6b5   : > { %v3708_v18 = vpop.permute.xlu1 %3707 }
 0x6b6   : > { %13271 = vmatpush3.xpose.msk.msra.mxu0 %vm685_vm4, %v3708_v18 }
 0x6b7   : > { %13280 = vmatprep.subr.mxu0 %v16816_v33 }
 0x6b8   : > { %v13992_v47 = vpop.eup %13991 }
 0x6b9   : > { %v3706_v35 = vpop.permute.xlu1 %3705  ;;  %v2697_v31 = vmul.f32 %v13992_v47, %v14911_v62 }
 0x6ba   : > { %13273 = vmatmul.mubr.msk.f32.vlgmr.msra.gmra.mrb[58].mxu0 %vm685_vm4, %v3706_v35 }
 0x6bb   : > { %13238 = vmatmul.mubr.msk.f32.vlgmr.msra.gmra.mrb[32].mxu1 %vm685_vm4, %v2697_v31  ;;  %13282 = vmatprep.mubr.msk.f32.mxu0 %vm14282_vm3, %v16816_v33 }
 0x6bc   : > { %13246 = vmatpush3.xpose.msk.msra.mxu1 %vm685_vm4, %v14925_v3  ;;  %13247 = vmatprep.mubr.msk.f32.mxu1 %vm14282_vm3, %v16816_v33  ;;  %v3786_v3 = vpop.permute.xlu0 %3785 }
 0x6bd   : > { %v3864_v45 = vpop.permute.xlu1 %3863  ;;  %13255 = vmatprep.subr.mxu1 %v16816_v33 }
 0x6be   : > { %13281 = vmatpush3.xpose.msk.msra.mxu0 %vm685_vm4, %v3864_v45 }
 0x6bf   : > { %13248 = vmatmul.mubr.msk.f32.vlgmr.msra.gmra.mrb[34].mxu1 %vm685_vm4, %v14927_v14  ;;  %13290 = vmatprep.subr.mxu0 %v16816_v33 }
 0x6c0   : > { %13256 = vmatpush3.xpose.msk.msra.mxu1 %vm685_vm4, %v14929_v48  ;;  %13257 = vmatprep.mubr.msk.f32.mxu1 %vm14282_vm3, %v16816_v33  ;;  %v3784_v14 = vpop.permute.xlu0 %3783 }
 0x6c1   : > { %v3862_v62 = vpop.permute.xlu1 %3861  ;;  %13265 = vmatprep.subr.mxu1 %v16816_v33 }
 0x6c2   : > { %13283 = vmatmul.mubr.msk.f32.vlgmr.msra.gmra.mrb[60].mxu0 %vm685_vm4, %v3862_v62 }
 0x6c3   : > { %13258 = vmatmul.mubr.msk.f32.vlgmr.msra.gmra.mrb[36].mxu1 %vm685_vm4, %v3472_v24  ;;  %13292 = vmatprep.mubr.msk.f32.mxu0 %vm14282_vm3, %v16816_v33 }
 0x6c4   : > { %13266 = vmatpush3.xpose.msk.msra.mxu1 %vm685_vm4, %v3630_v12  ;;  %13267 = vmatprep.mubr.msk.f32.mxu1 %vm14282_vm3, %v16816_v33 }
 0x6c5   : > { %13275 = vmatprep.subr.mxu1 %v16816_v33 }
 0x6c7   : > { %13268 = vmatmul.mubr.msk.f32.vlgmr.msra.gmra.mrb[38].mxu1 %vm685_vm4, %v3628_v60 }
 0x6c8   : > { %13276 = vmatpush3.xpose.msk.msra.mxu1 %vm685_vm4, %v3786_v3  ;;  %13277 = vmatprep.mubr.msk.f32.mxu1 %vm14282_vm3, %v16816_v33 }
 0x6c9   : > { %13285 = vmatprep.subr.mxu1 %v16816_v33 }
 0x6cb   : > { %13278 = vmatmul.mubr.msk.f32.vlgmr.msra.gmra.mrb[40].mxu1 %vm685_vm4, %v3784_v14 }
 0x6cc   : > { %13287 = vmatprep.mubr.msk.f32.mxu1 %vm14282_vm3, %v16816_v33 }
 0x751   : > { %v15012_v48 = vpop.f32.mrb[26].mxu1 }
 0x752   : > { %v13209_v63 = vpop.f32.mrb[27].mxu1 }
 0x755   : > { %v15014_v9 = vpop.f32.mrb[46].mxu0 }
 0x756   : > { %v15016_v6 = vpop.f32.mrb[28].mxu1  ;;  %v13214_v46 = vpop.f32.mrb[47].mxu0 }
 0x757   : > { %v13219_v37 = vpop.f32.mrb[29].mxu1 }
 0x75a   : > { %v15018_v53 = vpop.f32.mrb[30].mxu1 }
 0x75b   : > { %16851 = vst [vmem:[#allocation22_spill] sm:$0xff] %v15018_v53  ;;  %v15020_v59 = vpop.f32.mrb[48].mxu0  ;;  %v13229_v26 = vpop.f32.mrb[31].mxu1 }
 0x75c   : > { %v13224_v39 = vpop.f32.mrb[49].mxu0 }
 0x75f   : > { %v15022_v7 = vpop.f32.mrb[50].mxu0 }
 0x760   : > { %16852 = vst [vmem:[#allocation23_spill] sm:$0xff] %v15022_v7  ;;  %v13234_v52 = vpop.f32.mrb[51].mxu0 }
 0x763   : > { %v15024_v43 = vpop.f32.mrb[52].mxu0 }
 0x764   : > { %16853 = vst [vmem:[#allocation24_spill] sm:$0xff] %v15024_v43  ;;  %v13244_v22 = vpop.f32.mrb[53].mxu0 }
 0x76a   : > { %v3467_v29 = vpop.f32.mrb[54].mxu0 }
 0x76b   : > { %v3940_v51 = vmul.f32 0.35355338, %v3467_v29  ;;  %v13254_v54 = vpop.f32.mrb[55].mxu0 }
 0x76d   : > { %v3950_v55 = vsel %vm685_vm4, %v3940_v51, -inf }
 0x76e   : > { %3951 = vmax.xlane.f32.xlu1 %v3950_v55 }
 0x785   : > { %v3623_v24 = vpop.f32.mrb[56].mxu0 }
 0x786   : > { %v13264_v18 = vpop.f32.mrb[57].mxu0  ;;  %v3942_v39 = vmul.f32 0.35355338, %v3623_v24 }
 0x788   : > { %v3956_v18 = vsel %vm685_vm4, %v3942_v39, -inf }
 0x78d   : > { %v3779_v47 = vpop.f32.mrb[58].mxu0 }
 0x78e   : > { %v15027_v12 = vpop.f32.mrb[32].mxu1  ;;  %v13274_v35 = vpop.f32.mrb[59].mxu0  ;;  %v3944_v55 = vmul.f32 0.35355338, %v3779_v47 }
 0x78f   : > { %16854 = vst [vmem:[#allocation25_spill] sm:$0xff] %v15027_v12  ;;  %v13239_v31 = vpop.f32.mrb[33].mxu1 }
 0x792   : > { %v3389_v45 = vpop.f32.mrb[34].mxu1 }
 0x793   : > { %v3939_v60 = vmul.f32 0.35355338, %v3389_v45  ;;  %v13249_v62 = vpop.f32.mrb[35].mxu1 }
 0x795   : > { %v3935_v3 = vpop.f32.mrb[60].mxu0  ;;  %v3947_v14 = vsel %vm685_vm4, %v3939_v60, -inf }
 0x796   : > { %3948 = vmax.xlane.f32.xlu0 %v3947_v14  ;;  %v3545_v63 = vpop.f32.mrb[36].mxu1  ;;  %v13284_v46 = vpop.f32.mrb[61].mxu0  ;;  %v3946_v62 = vmul.f32 0.35355338, %v3935_v3  ;;  %v3962_v14 = vsel %vm685_vm4, %v3944_v55, -inf }
 0x797   : > { %v3941_v37 = vmul.f32 0.35355338, %v3545_v63  ;;  %v13259_v26 = vpop.f32.mrb[37].mxu1 }
 0x798   : > { %v3968_v24 = vsel %vm685_vm4, %v3946_v62, -inf }
 0x799   : > { %v3953_v52 = vsel %vm685_vm4, %v3941_v37, -inf }
 0x79a   : > { %3954 = vmax.xlane.f32.xlu0 %v3953_v52  ;;  %v3701_v22 = vpop.f32.mrb[38].mxu1 }
 0x79b   : > { %v3943_v29 = vmul.f32 0.35355338, %v3701_v22  ;;  %v13269_v54 = vpop.f32.mrb[39].mxu1 }
 0x79d   : > { %v3959_v35 = vsel %vm685_vm4, %v3943_v29, -inf }
 0x79e   : > { %3957 = vmax.xlane.f32.xlu0 %v3956_v18  ;;  %3960 = vmax.xlane.f32.xlu1 %v3959_v35  ;;  %v3857_v31 = vpop.f32.mrb[40].mxu1 }
 0x79f   : > { %v13279_v45 = vpop.f32.mrb[41].mxu1  ;;  %v15047_v47 = vmul.f32 0.35355338, %v3857_v31 }
 0x7a1   : > { %v3965_v3 = vsel %vm685_vm4, %v15047_v47, -inf }
 0x7a2   : > { %3963 = vmax.xlane.f32.xlu0 %v3962_v14 }
 0x7a6   : > { %3969 = vmax.xlane.f32.xlu0 %v3968_v24 }
 0x7af   : > { %4035 = vrot.lane.b32.xlu1 %v14543_v13, %s14287_s28 }
 0x7bc   : > { %4111 = vrot.lane.b32.xlu0 %v14553_v20, %s14287_s28 }
 0x7c0   : > { %4339 = vrot.lane.b32.xlu0 %v14563_v28, %s14287_s28 }
 0x7c4   : > { %4491 = vrot.lane.b32.xlu0 %v14579_v38, %s14287_s28 }
 0x7c8   : > { %4645 = vrot.lane.b32.xlu0 %v14541_v11, %s16830_s17 }
 0x7cc   : > { %4643 = vrot.lane.b32.xlu0 %v14541_v11, %s14289_s14 }
 0x7d0   : > { %4801 = vrot.lane.b32.xlu0 %v14557_v23, %s16830_s17 }
 0x7d3   : > { %3966 = vmax.xlane.f32.xlu1 %v3965_v3 }
 0x7e4   : > { %4187 = vrot.lane.b32.xlu1 %v14561_v27, %s14287_s28 }
 0x7e8   : > { %4263 = vrot.lane.b32.xlu1 %v14550_v19, %s14287_s28 }
 0x7ec   : > { %4415 = vrot.lane.b32.xlu1 %v14571_v32, %s14287_s28 }
 0x7f0   : > { %4567 = vrot.lane.b32.xlu1 %v14587_v44, %s14287_s28  ;;  %s14297_s28 = smov 72  }
 0x7f4   : > { %4723 = vrot.lane.b32.xlu1 %v14548_v17, %s16830_s17 }
 0x7f8   : > { %4721 = vrot.lane.b32.xlu1 %v14548_v17, %s14289_s14 }
 0x7fb   : > { %v3952_v63 = vpop.xlane.xlu1 %3951 }
 0x7fc   : > { %v3972_v46 = vsub.f32 %v3940_v51, %v3952_v63  ;;  %4879 = vrot.lane.b32.xlu1 %v14569_v30, %s16830_s17 }
 0x7fe   : > { %v3981_v26 = vmul.f32 1.442695, %v3972_v46 }
 0x800   : > { %13993 = vpow2.f32 %v3981_v26 }
 0x80a   : > { %v15067_v52 = vpop.eup %13993 }
 0x80b   : > { %v3998_v22 = vsel %vm685_vm4, %v15067_v52, 0.0 }
 0x80c   : > { %3999 = vadd.xlane.f32.xlu0 %v3998_v22  ;;  %v16855_v22 = vmov 0.0  }
 0x823   : > { %v3949_v54 = vpop.xlane.xlu0 %3948 }
 0x824   : > { %v3971_v18 = vsub.f32 %v3939_v60, %v3949_v54 }
 0x826   : > { %v3979_v35 = vmul.f32 1.442695, %v3971_v18 }
 0x827   : > { %v3955_v31 = vpop.xlane.xlu0 %3954 }
 0x828   : > { %13995 = vpow2.f32 %v3979_v35  ;;  %v3973_v45 = vsub.f32 %v3941_v37, %v3955_v31 }
 0x82a   : > { %v3983_v14 = vmul.f32 1.442695, %v3973_v45 }
 0x82b   : > { %v3961_v24 = vpop.xlane.xlu1 %3960  ;;  %v3958_v51 = vpop.xlane.xlu0 %3957 }
 0x82c   : > { %13997 = vpow2.f32 %v3983_v14  ;;  %v3975_v3 = vsub.f32 %v3943_v29, %v3961_v24  ;;  %v3974_v63 = vsub.f32 %v3942_v39, %v3958_v51 }
 0x82e   : > { %v3987_v46 = vmul.f32 1.442695, %v3975_v3  ;;  %v3985_v26 = vmul.f32 1.442695, %v3974_v63 }
 0x82f   : > { %v4036_v5 = vpop.permute.xlu1 %4035  ;;  %v3964_v33 = vpop.xlane.xlu0 %3963 }
 0x830   : > { %13999 = vpow2.f32 %v3987_v46  ;;  %v3976_v4 = vsub.f32 %v3944_v55, %v3964_v33  ;;  %13286 = vmatpush3.msra.mxu1 %v4036_v5 }
 0x831   : > { %14001 = vpow2.f32 %v3985_v26  ;;  %13295 = vmatprep.subr.mxu1 %v16855_v22 }
 0x832   : > { %v15072_v60 = vpop.eup %13995  ;;  %v3989_v54 = vmul.f32 1.442695, %v3976_v4 }
 0x833   : > { %v3970_v37 = vpop.xlane.xlu0 %3969  ;;  %v3995_v18 = vsel %vm685_vm4, %v15072_v60, 0.0 }
 0x834   : > { %14003 = vpow2.f32 %v3989_v54  ;;  %v3978_v29 = vsub.f32 %v3946_v62, %v3970_v37  ;;  %3996 = vadd.xlane.f32.xlu1 %v3995_v18 }
 0x836   : > { %v15076_v39 = vpop.eup %13997  ;;  %v3993_v35 = vmul.f32 1.442695, %v3978_v29 }
 0x837   : > { %v4112_v31 = vpop.permute.xlu0 %4111  ;;  %v4001_v33 = vsel %vm685_vm4, %v15076_v39, 0.0 }
 0x838   : > { %14005 = vpow2.f32 %v3993_v35  ;;  %4002 = vadd.xlane.f32.xlu1 %v4001_v33  ;;  %13291 = vmatpush3.msra.mxu0 %v4112_v31 }
 0x839   : > { %13300 = vmatprep.subr.mxu0 %v16855_v22 }
 0x83a   : > { %v15081_v4 = vpop.eup %13999 }
 0x83b   : > { %v15083_v5 = vpop.eup %14001  ;;  %v4007_v55 = vsel %vm685_vm4, %v15081_v4, 0.0  ;;  %v4340_v37 = vpop.permute.xlu0 %4339 }
 0x83c   : > { %4008 = vadd.xlane.f32.xlu1 %v4007_v55  ;;  %v4004_v62 = vsel %vm685_vm4, %v15083_v5, 0.0 }
 0x83d   : > { %4005 = vadd.xlane.f32.xlu0 %v4004_v62 }
 0x83e   : > { %v15089_v45 = vpop.eup %14003 }
 0x83f   : > { %v4010_v14 = vsel %vm685_vm4, %v15089_v45, 0.0 }
 0x841   : > { %4011 = vadd.xlane.f32.xlu0 %v4010_v14 }
 0x842   : > { %v15093_v24 = vpop.eup %14005 }
 0x843   : > { %v4016_v51 = vsel %vm685_vm4, %v15093_v24, 0.0 }
 0x845   : > { %4017 = vadd.xlane.f32.xlu0 %v4016_v51 }
 0x85b   : > { %4799 = vrot.lane.b32.xlu0 %v14557_v23, %s14289_s14 }
 0x85f   : > { %4957 = vrot.lane.b32.xlu0 %v14559_v25, %s16830_s17 }
 0x860   : > { %v3967_v3 = vpop.xlane.xlu1 %3966 }
 0x861   : > { %v3977_v63 = vsub.f32 %v15047_v47, %v3967_v3  ;;  %v4492_v47 = vpop.permute.xlu0 %4491 }
 0x863   : > { %v3991_v46 = vmul.f32 1.442695, %v3977_v63  ;;  %4955 = vrot.lane.b32.xlu0 %v14559_v25, %s14289_s14 }
 0x864   : > { %v4188_v31 = vpop.permute.xlu1 %4187 }
 0x865   : > { %14007 = vpow2.f32 %v3991_v46  ;;  %v15116_v18 = vpop.permute.xlu0 %4645 }
 0x867   : > { %5113 = vrot.lane.b32.xlu0 %v14577_v36, %s16830_s17 }
 0x868   : > { %v4264_v55 = vpop.permute.xlu1 %4263 }
 0x869   : > { %v15122_v29 = vpop.permute.xlu0 %4643 }
 0x86b   : > { %5111 = vrot.lane.b32.xlu0 %v14577_v36, %s14289_s14 }
 0x86c   : > { %v4416_v14 = vpop.permute.xlu1 %4415 }
 0x86d   : > { %v15126_v35 = vpop.permute.xlu0 %4801 }
 0x86f   : > { %v15108_v26 = vpop.eup %14007 }
 0x870   : > { %v4013_v54 = vsel %vm685_vm4, %v15108_v26, 0.0  ;;  %v4568_v3 = vpop.permute.xlu1 %4567 }
 0x871   : > { %4014 = vadd.xlane.f32.xlu1 %v4013_v54 }
 0x874   : > { %v4724_v63 = vpop.permute.xlu1 %4723 }
 0x878   : > { %v4722_v46 = vpop.permute.xlu1 %4721 }
 0x87c   : > { %v4880_v54 = vpop.permute.xlu1 %4879 }
 0x882   : > { %4877 = vrot.lane.b32.xlu1 %v14569_v30, %s14289_s14 }
 0x886   : > { %5035 = vrot.lane.b32.xlu1 %v14575_v34, %s16830_s17 }
 0x88a   : > { %5033 = vrot.lane.b32.xlu1 %v14575_v34, %s14289_s14 }
 0x88e   : > { %5191 = vrot.lane.b32.xlu1 %v14585_v40, %s16830_s17 }
 0x892   : > { %5189 = vrot.lane.b32.xlu1 %v14585_v40, %s14289_s14 }
 0x899   : > { %v4000_v33 = vpop.xlane.xlu0 %3999 }
 0x89a   : > { %14009 = vrcp.f32 %v4000_v33 }
 0x8a4   : > { %v14010_v62 = vpop.eup %14009 }
 0x8a5   : > { %v4028_v51 = vmul.f32 %v14010_v62, %v15067_v52 }
 0x8a7   : > { %13293 = vmatmul.mubr.msk.f32.vlgmr.msra.gmra.mrb[62].mxu0 %vm685_vm4, %v4028_v51 }
 0x8a8   : > { %13301 = vmatpush3.msra.mxu0 %v4264_v55  ;;  %13302 = vmatprep.mubr.msk.f32.mxu0 %vm14282_vm3, %v16855_v22 }
 0x8a9   : > { %13310 = vmatprep.subr.mxu0 %v16855_v22 }
 0x8c1   : > { %v3997_v2 = vpop.xlane.xlu1 %3996 }
 0x8c2   : > { %14011 = vrcp.f32 %v3997_v2 }
 0x8c5   : > { %v4003_v33 = vpop.xlane.xlu1 %4002 }
 0x8c6   : > { %14013 = vrcp.f32 %v4003_v33 }
 0x8c9   : > { %v4009_v1 = vpop.xlane.xlu1 %4008 }
 0x8ca   : > { %14015 = vrcp.f32 %v4009_v1  ;;  %v4006_v58 = vpop.xlane.xlu0 %4005 }
 0x8cb   : > { %14017 = vrcp.f32 %v4006_v58 }
 0x8cc   : > { %v14012_v52 = vpop.eup %14011 }
 0x8cd   : > { %v4027_v55 = vmul.f32 %v14012_v52, %v15072_v60 }
 0x8ce   : > { %v4012_v62 = vpop.xlane.xlu0 %4011 }
 0x8cf   : > { %14019 = vrcp.f32 %v4012_v62  ;;  %13288 = vmatmul.mubr.msk.f32.vlgmr.msra.gmra.mrb[42].mxu1 %vm685_vm4, %v4027_v55 }
 0x8d0   : > { %v14014_v51 = vpop.eup %14013  ;;  %13296 = vmatpush3.msra.mxu1 %v4188_v31  ;;  %13297 = vmatprep.mubr.msk.f32.mxu1 %vm14282_vm3, %v16855_v22 }
 0x8d1   : > { %13305 = vmatprep.subr.mxu1 %v16855_v22  ;;  %v4029_v2 = vmul.f32 %v14014_v51, %v15076_v39 }
 0x8d2   : > { %v4018_v33 = vpop.xlane.xlu0 %4017 }
 0x8d3   : > { %14021 = vrcp.f32 %v4018_v33  ;;  %13298 = vmatmul.mubr.msk.f32.vlgmr.msra.gmra.mrb[44].mxu1 %vm685_vm4, %v4029_v2 }
 0x8d4   : > { %v14016_v58 = vpop.eup %14015  ;;  %13306 = vmatpush3.msra.mxu1 %v4340_v37  ;;  %13307 = vmatprep.mubr.msk.f32.mxu1 %vm14282_vm3, %v16855_v22 }
 0x8d5   : > { %v14018_v1 = vpop.eup %14017  ;;  %13315 = vmatprep.subr.mxu1 %v16855_v22  ;;  %v4031_v60 = vmul.f32 %v14016_v58, %v15081_v4 }
 0x8d6   : > { %v4030_v31 = vmul.f32 %v14018_v1, %v15083_v5 }
 0x8d7   : > { %13308 = vmatmul.mubr.msk.f32.vlgmr.msra.gmra.mrb[46].mxu1 %vm685_vm4, %v4031_v60 }
 0x8d8   : > { %13303 = vmatmul.mubr.msk.f32.vlgmr.msra.gmra.mrb[64].mxu0 %vm685_vm4, %v4030_v31  ;;  %13316 = vmatpush3.msra.mxu1 %v4492_v47  ;;  %v4800_v47 = vpop.permute.xlu0 %4799 }
 0x8d9   : > { %v14020_v39 = vpop.eup %14019  ;;  %13311 = vmatpush3.msra.mxu0 %v4416_v14  ;;  %13312 = vmatprep.mubr.msk.f32.mxu0 %vm14282_vm3, %v16855_v22 }
 0x8da   : > { %13320 = vmatprep.subr.mxu0 %v16855_v22  ;;  %v4032_v37 = vmul.f32 %v14020_v39, %v15089_v45  ;;  %13317 = vmatprep.mubr.msk.f32.mxu1 %vm14282_vm3, %v16855_v22 }
 0x8db   : > { %13325 = vmatprep.subr.mxu1 %v16855_v22 }
 0x8dc   : > { %13313 = vmatmul.mubr.msk.f32.vlgmr.msra.gmra.mrb[66].mxu0 %vm685_vm4, %v4032_v37 }
 0x8dd   : > { %v14022_v4 = vpop.eup %14021  ;;  %13321 = vmatpush3.msra.mxu0 %v4568_v3  ;;  %13322 = vmatprep.mubr.msk.f32.mxu0 %vm14282_vm3, %v16855_v22 }
 0x8de   : > { %v4034_v5 = vmul.f32 %v14022_v4, %v15093_v24  ;;  %13330 = vmatprep.subr.mxu0 %v16855_v22 }
 0x8e0   : > { %13323 = vmatmul.mubr.msk.f32.vlgmr.msra.gmra.mrb[68].mxu0 %vm685_vm4, %v4034_v5 }
 0x8e1   : > { %13332 = vmatprep.mubr.msk.f32.mxu0 %vm14282_vm3, %v16855_v22 }
 0x8e4   : > { %13331 = vmatpush3.xpose.msk.msra.mxu0 %vm685_vm4, %v4724_v63  ;;  %v4958_v63 = vpop.permute.xlu0 %4957 }
 0x8e5   : > { %13340 = vmatprep.subr.mxu0 %v16855_v22 }
 0x8e7   : > { %13333 = vmatmul.mubr.msk.f32.vlgmr.msra.gmra.mrb[70].mxu0 %vm685_vm4, %v4722_v46 }
 0x8e8   : > { %13341 = vmatpush3.xpose.msk.msra.mxu0 %vm685_vm4, %v4880_v54  ;;  %13342 = vmatprep.mubr.msk.f32.mxu0 %vm14282_vm3, %v16855_v22  ;;  %v4956_v55 = vpop.permute.xlu0 %4955 }
 0x8e9   : > { %13350 = vmatprep.subr.mxu0 %v16855_v22 }
 0x8fe   : > { %v4015_v45 = vpop.xlane.xlu1 %4014 }
 0x8ff   : > { %14023 = vrcp.f32 %v4015_v45 }
 0x902   : > { %v4878_v24 = vpop.permute.xlu1 %4877 }
 0x903   : > { %13343 = vmatmul.mubr.msk.f32.vlgmr.msra.gmra.mrb[72].mxu0 %vm685_vm4, %v4878_v24 }
 0x904   : > { %13352 = vmatprep.mubr.msk.f32.mxu0 %vm14282_vm3, %v16855_v22 }
 0x906   : > { %v5036_v14 = vpop.permute.xlu1 %5035 }
 0x907   : > { %13351 = vmatpush3.xpose.msk.msra.mxu0 %vm685_vm4, %v5036_v14 }
 0x908   : > { %13360 = vmatprep.subr.mxu0 %v16855_v22 }
 0x909   : > { %v14024_v3 = vpop.eup %14023 }
 0x90a   : > { %v5034_v46 = vpop.permute.xlu1 %5033  ;;  %v4033_v54 = vmul.f32 %v14024_v3, %v15108_v26 }
 0x90b   : > { %13353 = vmatmul.mubr.msk.f32.vlgmr.msra.gmra.mrb[74].mxu0 %vm685_vm4, %v5034_v46 }
 0x90c   : > { %13318 = vmatmul.mubr.msk.f32.vlgmr.msra.gmra.mrb[48].mxu1 %vm685_vm4, %v4033_v54  ;;  %13362 = vmatprep.mubr.msk.f32.mxu0 %vm14282_vm3, %v16855_v22 }
 0x90d   : > { %13326 = vmatpush3.xpose.msk.msra.mxu1 %vm685_vm4, %v15116_v18  ;;  %13327 = vmatprep.mubr.msk.f32.mxu1 %vm14282_vm3, %v16855_v22  ;;  %v5114_v18 = vpop.permute.xlu0 %5113 }
 0x90e   : > { %v5192_v52 = vpop.permute.xlu1 %5191  ;;  %13335 = vmatprep.subr.mxu1 %v16855_v22 }
 0x90f   : > { %13361 = vmatpush3.xpose.msk.msra.mxu0 %vm685_vm4, %v5192_v52 }
 0x910   : > { %13328 = vmatmul.mubr.msk.f32.vlgmr.msra.gmra.mrb[50].mxu1 %vm685_vm4, %v15122_v29  ;;  %13370 = vmatprep.subr.mxu0 %v16855_v22 }
 0x911   : > { %13336 = vmatpush3.xpose.msk.msra.mxu1 %vm685_vm4, %v15126_v35  ;;  %13337 = vmatprep.mubr.msk.f32.mxu1 %vm14282_vm3, %v16855_v22  ;;  %v5112_v29 = vpop.permute.xlu0 %5111 }
 0x912   : > { %v5190_v26 = vpop.permute.xlu1 %5189  ;;  %13345 = vmatprep.subr.mxu1 %v16855_v22 }
 0x913   : > { %13363 = vmatmul.mubr.msk.f32.vlgmr.msra.gmra.mrb[76].mxu0 %vm685_vm4, %v5190_v26 }
 0x914   : > { %13338 = vmatmul.mubr.msk.f32.vlgmr.msra.gmra.mrb[52].mxu1 %vm685_vm4, %v4800_v47  ;;  %13372 = vmatprep.mubr.msk.f32.mxu0 %vm14282_vm3, %v16855_v22 }
 0x915   : > { %13346 = vmatpush3.xpose.msk.msra.mxu1 %vm685_vm4, %v4958_v63  ;;  %13347 = vmatprep.mubr.msk.f32.mxu1 %vm14282_vm3, %v16855_v22 }
 0x916   : > { %13355 = vmatprep.subr.mxu1 %v16855_v22 }
 0x918   : > { %13348 = vmatmul.mubr.msk.f32.vlgmr.msra.gmra.mrb[54].mxu1 %vm685_vm4, %v4956_v55 }
 0x919   : > { %13356 = vmatpush3.xpose.msk.msra.mxu1 %vm685_vm4, %v5114_v18  ;;  %13357 = vmatprep.mubr.msk.f32.mxu1 %vm14282_vm3, %v16855_v22 }
 0x91a   : > { %13365 = vmatprep.subr.mxu1 %v16855_v22 }
 0x91c   : > { %13358 = vmatmul.mubr.msk.f32.vlgmr.msra.gmra.mrb[56].mxu1 %vm685_vm4, %v5112_v29 }
 0x91d   : > { %13367 = vmatprep.mubr.msk.f32.mxu1 %vm14282_vm3, %v16855_v22 }
 0x97a   : > { %v15209_v35 = vpop.f32.mrb[62].mxu0 }
 0x97b   : > { %v13294_v62 = vpop.f32.mrb[63].mxu0 }
 0x9a2   : > { %v15211_v51 = vpop.f32.mrb[42].mxu1 }
 0x9a3   : > { %v13289_v2 = vpop.f32.mrb[43].mxu1 }
 0x9a6   : > { %v15213_v33 = vpop.f32.mrb[44].mxu1 }
 0x9a7   : > { %v13299_v58 = vpop.f32.mrb[45].mxu1 }
 0x9aa   : > { %v15215_v1 = vpop.f32.mrb[46].mxu1 }
 0x9ab   : > { %16856 = vst [vmem:[#allocation26_spill] sm:$0xff] %v15215_v1  ;;  %v15217_v60 = vpop.f32.mrb[64].mxu0  ;;  %v13309_v31 = vpop.f32.mrb[47].mxu1 }
 0x9ac   : > { %v13304_v39 = vpop.f32.mrb[65].mxu0 }
 0x9af   : > { %v15219_v37 = vpop.f32.mrb[66].mxu0 }
 0x9b0   : > { %16857 = vst [vmem:[#allocation27_spill] sm:$0xff] %v15219_v37  ;;  %v13314_v4 = vpop.f32.mrb[67].mxu0 }
 0x9b3   : > { %v15221_v5 = vpop.f32.mrb[68].mxu0 }
 0x9b4   : > { %16858 = vst [vmem:[#allocation28_spill] sm:$0xff] %v15221_v5  ;;  %v13324_v45 = vpop.f32.mrb[69].mxu0 }
 0x9ba   : > { %v4795_v24 = vpop.f32.mrb[70].mxu0 }
 0x9bb   : > { %v5268_v47 = vmul.f32 0.35355338, %v4795_v24  ;;  %v13334_v14 = vpop.f32.mrb[71].mxu0 }
 0x9bd   : > { %v5278_v3 = vsel %vm685_vm4, %v5268_v47, -inf }
 0x9be   : > { %5279 = vmax.xlane.f32.xlu1 %v5278_v3 }
 0x9d6   : > { %v4951_v63 = vpop.f32.mrb[72].mxu0 }
 0x9d7   : > { %v13344_v46 = vpop.f32.mrb[73].mxu0  ;;  %v5270_v24 = vmul.f32 0.35355338, %v4951_v63 }
 0x9de   : > { %v5107_v54 = vpop.f32.mrb[74].mxu0 }
 0x9df   : > { %v15224_v52 = vpop.f32.mrb[48].mxu1  ;;  %v13354_v55 = vpop.f32.mrb[75].mxu0 }
 0x9e0   : > { %16859 = vst [vmem:[#allocation29_spill] sm:$0xff] %v15224_v52  ;;  %v13319_v26 = vpop.f32.mrb[49].mxu1  ;;  %v5272_v55 = vmul.f32 0.35355338, %v5107_v54 }
 0x9e1   : > { %v5284_v26 = vsel %vm685_vm4, %v5270_v24, -inf }
 0x9e3   : > { %v4717_v18 = vpop.f32.mrb[50].mxu1 }
 0x9e4   : > { %v5267_v29 = vmul.f32 0.35355338, %v4717_v18  ;;  %v13329_v62 = vpop.f32.mrb[51].mxu1 }
 0x9e6   : > { %v5263_v2 = vpop.f32.mrb[76].mxu0  ;;  %v5275_v58 = vsel %vm685_vm4, %v5267_v29, -inf }
 0x9e7   : > { %5276 = vmax.xlane.f32.xlu0 %v5275_v58  ;;  %v4873_v31 = vpop.f32.mrb[52].mxu1  ;;  %v13364_v39 = vpop.f32.mrb[77].mxu0  ;;  %v5274_v49 = vmul.f32 0.35355338, %v5263_v2 }
 0x9e8   : > { %v5269_v4 = vmul.f32 0.35355338, %v4873_v31  ;;  %v13339_v45 = vpop.f32.mrb[53].mxu1  ;;  %v5290_v31 = vsel %vm685_vm4, %v5272_v55, -inf }
 0x9e9   : > { %v5296_v63 = vsel %vm685_vm4, %v5274_v49, -inf }
 0x9ea   : > { %v5281_v14 = vsel %vm685_vm4, %v5269_v4, -inf }
 0x9eb   : > { %5282 = vmax.xlane.f32.xlu0 %v5281_v14  ;;  %v5029_v3 = vpop.f32.mrb[54].mxu1 }
 0x9ec   : > { %v5271_v46 = vmul.f32 0.35355338, %v5029_v3  ;;  %v13349_v57 = vpop.f32.mrb[55].mxu1 }
 0x9ee   : > { %v5287_v18 = vsel %vm685_vm4, %v5271_v46, -inf }
 0x9ef   : > { %5285 = vmax.xlane.f32.xlu0 %v5284_v26  ;;  %5288 = vmax.xlane.f32.xlu1 %v5287_v18  ;;  %v5185_v62 = vpop.f32.mrb[56].mxu1 }
 0x9f0   : > { %v13359_v58 = vpop.f32.mrb[57].mxu1  ;;  %v15244_v57 = vmul.f32 0.35355338, %v5185_v62 }
 0x9f2   : > { %v5293_v54 = vsel %vm685_vm4, %v15244_v57, -inf }
 0x9f3   : > { %5291 = vmax.xlane.f32.xlu0 %v5290_v31 }
 0x9f7   : > { %5297 = vmax.xlane.f32.xlu0 %v5296_v63 }
 0xa00   : > { %5363 = vrot.lane.b32.xlu1 %v14543_v13, %s14289_s14 }
 0xa0d   : > { %5439 = vrot.lane.b32.xlu0 %v14553_v20, %s14289_s14 }
 0xa11   : > { %5667 = vrot.lane.b32.xlu0 %v14563_v28, %s14289_s14 }
 0xa15   : > { %5819 = vrot.lane.b32.xlu0 %v14579_v38, %s14289_s14 }
 0xa19   : > { %5973 = vrot.lane.b32.xlu0 %v14541_v11, %s14290_s16 }
 0xa1d   : > { %5971 = vrot.lane.b32.xlu0 %v14541_v11, %s14291_s21 }
 0xa21   : > { %6129 = vrot.lane.b32.xlu0 %v14557_v23, %s14290_s16 }
 0xa24   : > { %5294 = vmax.xlane.f32.xlu1 %v5293_v54 }
 0xa35   : > { %5515 = vrot.lane.b32.xlu1 %v14561_v27, %s14289_s14 }
 0xa39   : > { %5591 = vrot.lane.b32.xlu1 %v14550_v19, %s14289_s14 }
 0xa3d   : > { %5743 = vrot.lane.b32.xlu1 %v14571_v32, %s14289_s14 }
 0xa41   : > { %5895 = vrot.lane.b32.xlu1 %v14587_v44, %s14289_s14 }
 0xa45   : > { %6051 = vrot.lane.b32.xlu1 %v14548_v17, %s14290_s16 }
 0xa49   : > { %6049 = vrot.lane.b32.xlu1 %v14548_v17, %s14291_s21 }
 0xa4b   : > { %v5280_v2 = vpop.xlane.xlu1 %5279 }
 0xa4c   : > { %v5300_v39 = vsub.f32 %v5268_v47, %v5280_v2 }
 0xa4d   : > { %6207 = vrot.lane.b32.xlu1 %v14569_v30, %s14290_s16 }
 0xa4e   : > { %v5309_v45 = vmul.f32 1.442695, %v5300_v39 }
 0xa50   : > { %14025 = vpow2.f32 %v5309_v45 }
 0xa5a   : > { %v15264_v14 = vpop.eup %14025 }
 0xa5b   : > { %v5326_v3 = vsel %vm685_vm4, %v15264_v14, 0.0 }
 0xa5c   : > { %5327 = vadd.xlane.f32.xlu0 %v5326_v3 }
 0xa74   : > { %v5277_v26 = vpop.xlane.xlu0 %5276 }
 0xa75   : > { %v5299_v18 = vsub.f32 %v5267_v29, %v5277_v26 }
 0xa77   : > { %v5307_v62 = vmul.f32 1.442695, %v5299_v18 }
 0xa78   : > { %v5283_v58 = vpop.xlane.xlu0 %5282 }
 0xa79   : > { %14027 = vpow2.f32 %v5307_v62  ;;  %v5301_v31 = vsub.f32 %v5269_v4, %v5283_v58 }
 0xa7b   : > { %v5311_v63 = vmul.f32 1.442695, %v5301_v31 }
 0xa7c   : > { %v5289_v54 = vpop.xlane.xlu1 %5288  ;;  %v5286_v47 = vpop.xlane.xlu0 %5285 }
 0xa7d   : > { %14029 = vpow2.f32 %v5311_v63  ;;  %v5303_v2 = vsub.f32 %v5271_v46, %v5289_v54  ;;  %v5302_v50 = vsub.f32 %v5270_v24, %v5286_v47 }
 0xa7f   : > { %v5315_v39 = vmul.f32 1.442695, %v5303_v2  ;;  %v5313_v45 = vmul.f32 1.442695, %v5302_v50 }
 0xa80   : > { %v5364_v42 = vpop.permute.xlu1 %5363  ;;  %v5292_v41 = vpop.xlane.xlu0 %5291 }
 0xa81   : > { %14031 = vpow2.f32 %v5315_v39  ;;  %v5304_v56 = vsub.f32 %v5272_v55, %v5292_v41  ;;  %13366 = vmatpush3.msra.mxu1 %v5364_v42 }
 0xa82   : > { %14033 = vpow2.f32 %v5313_v45  ;;  %13375 = vmatprep.subr.mxu1 %v16855_v22 }
 0xa83   : > { %v15269_v29 = vpop.eup %14027  ;;  %v5317_v3 = vmul.f32 1.442695, %v5304_v56 }
 0xa84   : > { %v5298_v4 = vpop.xlane.xlu0 %5297  ;;  %v5323_v26 = vsel %vm685_vm4, %v15269_v29, 0.0 }
 0xa85   : > { %14035 = vpow2.f32 %v5317_v3  ;;  %v5306_v46 = vsub.f32 %v5274_v49, %v5298_v4  ;;  %5324 = vadd.xlane.f32.xlu1 %v5323_v26 }
 0xa87   : > { %v15273_v24 = vpop.eup %14029  ;;  %v5321_v50 = vmul.f32 1.442695, %v5306_v46 }
 0xa88   : > { %v5440_v18 = vpop.permute.xlu0 %5439  ;;  %v5329_v41 = vsel %vm685_vm4, %v15273_v24, 0.0 }
 0xa89   : > { %14037 = vpow2.f32 %v5321_v50  ;;  %5330 = vadd.xlane.f32.xlu1 %v5329_v41  ;;  %13371 = vmatpush3.msra.mxu0 %v5440_v18 }
 0xa8a   : > { %13380 = vmatprep.subr.mxu0 %v16855_v22 }
 0xa8b   : > { %v15278_v42 = vpop.eup %14031 }
 0xa8c   : > { %v15280_v56 = vpop.eup %14033  ;;  %v5335_v49 = vsel %vm685_vm4, %v15278_v42, 0.0  ;;  %v5668_v3 = vpop.permute.xlu0 %5667 }
 0xa8d   : > { %5336 = vadd.xlane.f32.xlu1 %v5335_v49  ;;  %v5332_v55 = vsel %vm685_vm4, %v15280_v56, 0.0 }
 0xa8e   : > { %5333 = vadd.xlane.f32.xlu0 %v5332_v55 }
 0xa8f   : > { %v15286_v62 = vpop.eup %14035 }
 0xa90   : > { %v5338_v58 = vsel %vm685_vm4, %v15286_v62, 0.0  ;;  %v5820_v4 = vpop.permute.xlu0 %5819 }
 0xa92   : > { %5339 = vadd.xlane.f32.xlu0 %v5338_v58 }
 0xa93   : > { %v15290_v31 = vpop.eup %14037 }
 0xa94   : > { %v5344_v63 = vsel %vm685_vm4, %v15290_v31, 0.0 }
 0xa96   : > { %5345 = vadd.xlane.f32.xlu0 %v5344_v63 }
 0xaac   : > { %6127 = vrot.lane.b32.xlu0 %v14557_v23, %s14291_s21 }
 0xab0   : > { %6285 = vrot.lane.b32.xlu0 %v14559_v25, %s14290_s16 }
 0xab1   : > { %v5295_v54 = vpop.xlane.xlu1 %5294 }
 0xab2   : > { %v5305_v47 = vsub.f32 %v15244_v57, %v5295_v54  ;;  %v15313_v57 = vpop.permute.xlu0 %5973 }
 0xab4   : > { %v5319_v2 = vmul.f32 1.442695, %v5305_v47  ;;  %6283 = vrot.lane.b32.xlu0 %v14559_v25, %s14291_s21 }
 0xab5   : > { %v5516_v18 = vpop.permute.xlu1 %5515 }
 0xab6   : > { %14039 = vpow2.f32 %v5319_v2  ;;  %v15317_v26 = vpop.permute.xlu0 %5971 }
 0xab8   : > { %6441 = vrot.lane.b32.xlu0 %v14577_v36, %s14290_s16 }
 0xab9   : > { %v5592_v41 = vpop.permute.xlu1 %5591 }
 0xaba   : > { %v15323_v46 = vpop.permute.xlu0 %6129 }
 0xabc   : > { %6439 = vrot.lane.b32.xlu0 %v14577_v36, %s14291_s21 }
 0xabd   : > { %v5744_v58 = vpop.permute.xlu1 %5743 }
 0xac0   : > { %v15305_v39 = vpop.eup %14039 }
 0xac1   : > { %v5341_v45 = vsel %vm685_vm4, %v15305_v39, 0.0  ;;  %v5896_v63 = vpop.permute.xlu1 %5895 }
 0xac2   : > { %5342 = vadd.xlane.f32.xlu1 %v5341_v45 }
 0xac5   : > { %v6052_v54 = vpop.permute.xlu1 %6051 }
 0xac9   : > { %v6050_v47 = vpop.permute.xlu1 %6049 }
 0xacd   : > { %v6208_v2 = vpop.permute.xlu1 %6207 }
 0xad3   : > { %6205 = vrot.lane.b32.xlu1 %v14569_v30, %s14291_s21 }
 0xad7   : > { %6363 = vrot.lane.b32.xlu1 %v14575_v34, %s14290_s16 }
 0xadb   : > { %6361 = vrot.lane.b32.xlu1 %v14575_v34, %s14291_s21 }
 0xadf   : > { %6519 = vrot.lane.b32.xlu1 %v14585_v40, %s14290_s16 }
 0xae3   : > { %6517 = vrot.lane.b32.xlu1 %v14585_v40, %s14291_s21 }
 0xae9   : > { %v5328_v50 = vpop.xlane.xlu0 %5327 }
 0xaea   : > { %14041 = vrcp.f32 %v5328_v50 }
 0xaf4   : > { %v14042_v49 = vpop.eup %14041 }
 0xaf5   : > { %v5356_v55 = vmul.f32 %v14042_v49, %v15264_v14 }
 0xaf7   : > { %13373 = vmatmul.mubr.msk.f32.vlgmr.msra.gmra.mrb[78].mxu0 %vm685_vm4, %v5356_v55 }
 0xaf8   : > { %13381 = vmatpush3.msra.mxu0 %v5592_v41  ;;  %13382 = vmatprep.mubr.msk.f32.mxu0 %vm14282_vm3, %v16855_v22 }
 0xaf9   : > { %13390 = vmatprep.subr.mxu0 %v16855_v22 }
 0xb12   : > { %v5325_v45 = vpop.xlane.xlu1 %5324 }
 0xb13   : > { %14043 = vrcp.f32 %v5325_v45 }
 0xb16   : > { %v5331_v50 = vpop.xlane.xlu1 %5330 }
 0xb17   : > { %14045 = vrcp.f32 %v5331_v50 }
 0xb1a   : > { %v5337_v10 = vpop.xlane.xlu1 %5336 }
 0xb1b   : > { %14047 = vrcp.f32 %v5337_v10  ;;  %v5334_v14 = vpop.xlane.xlu0 %5333 }
 0xb1c   : > { %14049 = vrcp.f32 %v5334_v14 }
 0xb1d   : > { %v14044_v49 = vpop.eup %14043 }
 0xb1e   : > { %v5355_v41 = vmul.f32 %v14044_v49, %v15269_v29 }
 0xb1f   : > { %v5340_v55 = vpop.xlane.xlu0 %5339 }
 0xb20   : > { %14051 = vrcp.f32 %v5340_v55  ;;  %13368 = vmatmul.mubr.msk.f32.vlgmr.msra.gmra.mrb[58].mxu1 %vm685_vm4, %v5355_v41 }
 0xb21   : > { %v14046_v8 = vpop.eup %14045  ;;  %13376 = vmatpush3.msra.mxu1 %v5516_v18  ;;  %13377 = vmatprep.mubr.msk.f32.mxu1 %vm14282_vm3, %v16855_v22 }
 0xb22   : > { %13385 = vmatprep.subr.mxu1 %v16855_v22  ;;  %v5357_v45 = vmul.f32 %v14046_v8, %v15273_v24 }
 0xb23   : > { %v5346_v50 = vpop.xlane.xlu0 %5345 }
 0xb24   : > { %14053 = vrcp.f32 %v5346_v50  ;;  %13378 = vmatmul.mubr.msk.f32.vlgmr.msra.gmra.mrb[60].mxu1 %vm685_vm4, %v5357_v45 }
 0xb25   : > { %v14048_v10 = vpop.eup %14047  ;;  %13386 = vmatpush3.msra.mxu1 %v5668_v3  ;;  %13387 = vmatprep.mubr.msk.f32.mxu1 %vm14282_vm3, %v16855_v22 }
 0xb26   : > { %v14050_v29 = vpop.eup %14049  ;;  %13395 = vmatprep.subr.mxu1 %v16855_v22  ;;  %v5359_v18 = vmul.f32 %v14048_v10, %v15278_v42 }
 0xb27   : > { %v5358_v14 = vmul.f32 %v14050_v29, %v15280_v56  ;;  %v6128_v3 = vpop.permute.xlu0 %6127 }
 0xb28   : > { %13388 = vmatmul.mubr.msk.f32.vlgmr.msra.gmra.mrb[62].mxu1 %vm685_vm4, %v5359_v18 }
 0xb29   : > { %13383 = vmatmul.mubr.msk.f32.vlgmr.msra.gmra.mrb[80].mxu0 %vm685_vm4, %v5358_v14  ;;  %13396 = vmatpush3.msra.mxu1 %v5820_v4 }
 0xb2a   : > { %v14052_v8 = vpop.eup %14051  ;;  %13391 = vmatpush3.msra.mxu0 %v5744_v58  ;;  %13392 = vmatprep.mubr.msk.f32.mxu0 %vm14282_vm3, %v16855_v22 }
 0xb2b   : > { %13400 = vmatprep.subr.mxu0 %v16855_v22  ;;  %v5360_v24 = vmul.f32 %v14052_v8, %v15286_v62  ;;  %13397 = vmatprep.mubr.msk.f32.mxu1 %vm14282_vm3, %v16855_v22 }
 0xb2c   : > { %13405 = vmatprep.subr.mxu1 %v16855_v22 }
 0xb2d   : > { %13393 = vmatmul.mubr.msk.f32.vlgmr.msra.gmra.mrb[82].mxu0 %vm685_vm4, %v5360_v24 }
 0xb2e   : > { %v14054_v42 = vpop.eup %14053  ;;  %13401 = vmatpush3.msra.mxu0 %v5896_v63  ;;  %13402 = vmatprep.mubr.msk.f32.mxu0 %vm14282_vm3, %v16855_v22  ;;  %v6286_v63 = vpop.permute.xlu0 %6285 }
 0xb2f   : > { %v5362_v56 = vmul.f32 %v14054_v42, %v15290_v31  ;;  %13410 = vmatprep.subr.mxu0 %v16855_v22 }
 0xb31   : > { %13403 = vmatmul.mubr.msk.f32.vlgmr.msra.gmra.mrb[84].mxu0 %vm685_vm4, %v5362_v56 }
 0xb32   : > { %13412 = vmatprep.mubr.msk.f32.mxu0 %vm14282_vm3, %v16855_v22  ;;  %v6284_v49 = vpop.permute.xlu0 %6283 }
 0xb35   : > { %13411 = vmatpush3.xpose.msk.msra.mxu0 %vm685_vm4, %v6052_v54 }
 0xb36   : > { %13420 = vmatprep.subr.mxu0 %v16855_v22 }
 0xb38   : > { %13413 = vmatmul.mubr.msk.f32.vlgmr.msra.gmra.mrb[86].mxu0 %vm685_vm4, %v6050_v47 }
 0xb39   : > { %13421 = vmatpush3.xpose.msk.msra.mxu0 %vm685_vm4, %v6208_v2  ;;  %13422 = vmatprep.mubr.msk.f32.mxu0 %vm14282_vm3, %v16855_v22 }
 0xb3a   : > { %13430 = vmatprep.subr.mxu0 %v16855_v22 }
 0xb4f   : > { %v5343_v62 = vpop.xlane.xlu1 %5342 }
 0xb50   : > { %14055 = vrcp.f32 %v5343_v62 }
 0xb53   : > { %v6206_v31 = vpop.permute.xlu1 %6205 }
 0xb54   : > { %13423 = vmatmul.mubr.msk.f32.vlgmr.msra.gmra.mrb[88].mxu0 %vm685_vm4, %v6206_v31 }
 0xb55   : > { %13432 = vmatprep.mubr.msk.f32.mxu0 %vm14282_vm3, %v16855_v22 }
 0xb57   : > { %v6364_v4 = vpop.permute.xlu1 %6363 }
 0xb58   : > { %13431 = vmatpush3.xpose.msk.msra.mxu0 %vm685_vm4, %v6364_v4 }
 0xb59   : > { %13440 = vmatprep.subr.mxu0 %v16855_v22 }
 0xb5a   : > { %v14056_v58 = vpop.eup %14055 }
 0xb5b   : > { %v6362_v54 = vpop.permute.xlu1 %6361  ;;  %v5361_v47 = vmul.f32 %v14056_v58, %v15305_v39 }
 0xb5c   : > { %13433 = vmatmul.mubr.msk.f32.vlgmr.msra.gmra.mrb[90].mxu0 %vm685_vm4, %v6362_v54 }
 0xb5d   : > { %13398 = vmatmul.mubr.msk.f32.vlgmr.msra.gmra.mrb[64].mxu1 %vm685_vm4, %v5361_v47  ;;  %13442 = vmatprep.mubr.msk.f32.mxu0 %vm14282_vm3, %v16855_v22 }
 0xb5e   : > { %13406 = vmatpush3.xpose.msk.msra.mxu1 %vm685_vm4, %v15313_v57  ;;  %13407 = vmatprep.mubr.msk.f32.mxu1 %vm14282_vm3, %v16855_v22  ;;  %v6442_v57 = vpop.permute.xlu0 %6441 }
 0xb5f   : > { %v6520_v2 = vpop.permute.xlu1 %6519  ;;  %13415 = vmatprep.subr.mxu1 %v16855_v22 }
 0xb60   : > { %13441 = vmatpush3.xpose.msk.msra.mxu0 %vm685_vm4, %v6520_v2 }
 0xb61   : > { %13408 = vmatmul.mubr.msk.f32.vlgmr.msra.gmra.mrb[66].mxu1 %vm685_vm4, %v15317_v26  ;;  %13450 = vmatprep.subr.mxu0 %v16855_v22 }
 0xb62   : > { %13416 = vmatpush3.xpose.msk.msra.mxu1 %vm685_vm4, %v15323_v46  ;;  %13417 = vmatprep.mubr.msk.f32.mxu1 %vm14282_vm3, %v16855_v22  ;;  %v6440_v26 = vpop.permute.xlu0 %6439 }
 0xb63   : > { %v6518_v39 = vpop.permute.xlu1 %6517  ;;  %13425 = vmatprep.subr.mxu1 %v16855_v22 }
 0xb64   : > { %13443 = vmatmul.mubr.msk.f32.vlgmr.msra.gmra.mrb[92].mxu0 %vm685_vm4, %v6518_v39 }
 0xb65   : > { %13418 = vmatmul.mubr.msk.f32.vlgmr.msra.gmra.mrb[68].mxu1 %vm685_vm4, %v6128_v3  ;;  %13452 = vmatprep.mubr.msk.f32.mxu0 %vm14282_vm3, %v16855_v22 }
 0xb66   : > { %13426 = vmatpush3.xpose.msk.msra.mxu1 %vm685_vm4, %v6286_v63  ;;  %13427 = vmatprep.mubr.msk.f32.mxu1 %vm14282_vm3, %v16855_v22 }
 0xb67   : > { %13435 = vmatprep.subr.mxu1 %v16855_v22 }
 0xb69   : > { %13428 = vmatmul.mubr.msk.f32.vlgmr.msra.gmra.mrb[70].mxu1 %vm685_vm4, %v6284_v49 }
 0xb6a   : > { %13436 = vmatpush3.xpose.msk.msra.mxu1 %vm685_vm4, %v6442_v57  ;;  %13437 = vmatprep.mubr.msk.f32.mxu1 %vm14282_vm3, %v16855_v22 }
 0xb6b   : > { %13445 = vmatprep.subr.mxu1 %v16855_v22 }
 0xb6d   : > { %13438 = vmatmul.mubr.msk.f32.vlgmr.msra.gmra.mrb[72].mxu1 %vm685_vm4, %v6440_v26 }
 0xb6e   : > { %13447 = vmatprep.mubr.msk.f32.mxu1 %vm14282_vm3, %v16855_v22 }
 0xbca   : > { %v15406_v46 = vpop.f32.mrb[78].mxu0 }
 0xbcb   : > { %v13374_v41 = vpop.f32.mrb[79].mxu0 }
 0xbf3   : > { %v15408_v55 = vpop.f32.mrb[58].mxu1 }
 0xbf4   : > { %v13369_v45 = vpop.f32.mrb[59].mxu1 }
 0xbf7   : > { %v15410_v50 = vpop.f32.mrb[60].mxu1 }
 0xbf8   : > { %v13379_v10 = vpop.f32.mrb[61].mxu1 }
 0xbfb   : > { %v15412_v29 = vpop.f32.mrb[62].mxu1 }
 0xbfc   : > { %16860 = vst [vmem:[#allocation30_spill] sm:$0xff] %v15412_v29  ;;  %v15414_v18 = vpop.f32.mrb[80].mxu0  ;;  %v13389_v14 = vpop.f32.mrb[63].mxu1 }
 0xbfd   : > { %v13384_v8 = vpop.f32.mrb[81].mxu0 }
 0xc00   : > { %v15416_v24 = vpop.f32.mrb[82].mxu0 }
 0xc01   : > { %16861 = vst [vmem:[#allocation31_spill] sm:$0xff] %v15416_v24  ;;  %v13394_v42 = vpop.f32.mrb[83].mxu0 }
 0xc04   : > { %v15418_v56 = vpop.f32.mrb[84].mxu0 }
 0xc05   : > { %16862 = vst [vmem:[#allocation32_spill] sm:$0xff] %v15418_v56  ;;  %v13404_v62 = vpop.f32.mrb[85].mxu0 }
 0xc0b   : > { %v6123_v31 = vpop.f32.mrb[86].mxu0 }
 0xc0c   : > { %v6596_v3 = vmul.f32 0.35355338, %v6123_v31  ;;  %v13414_v4 = vpop.f32.mrb[87].mxu0 }
 0xc0e   : > { %v6606_v58 = vsel %vm685_vm4, %v6596_v3, -inf }
 0xc0f   : > { %6607 = vmax.xlane.f32.xlu1 %v6606_v58 }
 0xc27   : > { %v6279_v63 = vpop.f32.mrb[88].mxu0 }
 0xc28   : > { %v13424_v54 = vpop.f32.mrb[89].mxu0  ;;  %v6598_v31 = vmul.f32 0.35355338, %v6279_v63 }
 0xc2f   : > { %v6435_v47 = vpop.f32.mrb[90].mxu0 }
 0xc30   : > { %v15421_v2 = vpop.f32.mrb[64].mxu1  ;;  %v13434_v49 = vpop.f32.mrb[91].mxu0 }
 0xc31   : > { %16863 = vst [vmem:[#allocation33_spill] sm:$0xff] %v15421_v2  ;;  %v13399_v39 = vpop.f32.mrb[65].mxu1  ;;  %v6600_v49 = vmul.f32 0.35355338, %v6435_v47 }
 0xc32   : > { %v6612_v39 = vsel %vm685_vm4, %v6598_v31, -inf }
 0xc34   : > { %v6045_v57 = vpop.f32.mrb[66].mxu1 }
 0xc35   : > { %v6595_v26 = vmul.f32 0.35355338, %v6045_v57  ;;  %v13409_v41 = vpop.f32.mrb[67].mxu1 }
 0xc37   : > { %v6591_v45 = vpop.f32.mrb[92].mxu0  ;;  %v6603_v10 = vsel %vm685_vm4, %v6595_v26, -inf }
 0xc38   : > { %6604 = vmax.xlane.f32.xlu0 %v6603_v10  ;;  %v6201_v14 = vpop.f32.mrb[68].mxu1  ;;  %v13444_v8 = vpop.f32.mrb[93].mxu0  ;;  %v6602_v16 = vmul.f32 0.35355338, %v6591_v45 }
 0xc39   : > { %v6597_v42 = vmul.f32 0.35355338, %v6201_v14  ;;  %v13419_v62 = vpop.f32.mrb[69].mxu1  ;;  %v6618_v14 = vsel %vm685_vm4, %v6600_v49, -inf }
 0xc3a   : > { %v6624_v63 = vsel %vm685_vm4, %v6602_v16, -inf }
 0xc3b   : > { %v6609_v4 = vsel %vm685_vm4, %v6597_v42, -inf }
 0xc3c   : > { %6610 = vmax.xlane.f32.xlu0 %v6609_v4  ;;  %v6357_v58 = vpop.f32.mrb[70].mxu1 }
 0xc3d   : > { %v6599_v54 = vmul.f32 0.35355338, %v6357_v58  ;;  %v13429_v15 = vpop.f32.mrb[71].mxu1 }
 0xc3f   : > { %v6615_v57 = vsel %vm685_vm4, %v6599_v54, -inf }
 0xc40   : > { %6613 = vmax.xlane.f32.xlu0 %v6612_v39  ;;  %6616 = vmax.xlane.f32.xlu1 %v6615_v57  ;;  %v6513_v41 = vpop.f32.mrb[72].mxu1 }
 0xc41   : > { %v13439_v10 = vpop.f32.mrb[73].mxu1  ;;  %v15441_v15 = vmul.f32 0.35355338, %v6513_v41 }
 0xc43   : > { %v6621_v47 = vsel %vm685_vm4, %v15441_v15, -inf }
 0xc44   : > { %6619 = vmax.xlane.f32.xlu0 %v6618_v14 }
 0xc48   : > { %6625 = vmax.xlane.f32.xlu0 %v6624_v63 }
 0xc51   : > { %6691 = vrot.lane.b32.xlu1 %v14543_v13, %s14291_s21 }
 0xc5e   : > { %6767 = vrot.lane.b32.xlu0 %v14553_v20, %s14291_s21 }
 0xc62   : > { %6995 = vrot.lane.b32.xlu0 %v14563_v28, %s14291_s21 }
 0xc66   : > { %7147 = vrot.lane.b32.xlu0 %v14579_v38, %s14291_s21 }
 0xc6a   : > { %7301 = vrot.lane.b32.xlu0 %v14541_v11, %s14292_s22 }
 0xc6e   : > { %7299 = vrot.lane.b32.xlu0 %v14541_v11, %s14293_s23 }
 0xc72   : > { %7457 = vrot.lane.b32.xlu0 %v14557_v23, %s14292_s22 }
 0xc75   : > { %6622 = vmax.xlane.f32.xlu1 %v6621_v47 }
 0xc86   : > { %6843 = vrot.lane.b32.xlu1 %v14561_v27, %s14291_s21 }
 0xc8a   : > { %6919 = vrot.lane.b32.xlu1 %v14550_v19, %s14291_s21 }
 0xc8e   : > { %7071 = vrot.lane.b32.xlu1 %v14571_v32, %s14291_s21 }
 0xc92   : > { %7223 = vrot.lane.b32.xlu1 %v14587_v44, %s14291_s21 }
 0xc96   : > { %7379 = vrot.lane.b32.xlu1 %v14548_v17, %s14292_s22 }
 0xc9a   : > { %7377 = vrot.lane.b32.xlu1 %v14548_v17, %s14293_s23 }
 0xc9c   : > { %v6608_v45 = vpop.xlane.xlu1 %6607 }
 0xc9d   : > { %v6628_v8 = vsub.f32 %v6596_v3, %v6608_v45 }
 0xc9e   : > { %7535 = vrot.lane.b32.xlu1 %v14569_v30, %s14292_s22 }
 0xc9f   : > { %v6637_v62 = vmul.f32 1.442695, %v6628_v8 }
 0xca1   : > { %14057 = vpow2.f32 %v6637_v62 }
 0xcab   : > { %v15461_v4 = vpop.eup %14057 }
 0xcac   : > { %v6654_v58 = vsel %vm685_vm4, %v15461_v4, 0.0 }
 0xcad   : > { %6655 = vadd.xlane.f32.xlu0 %v6654_v58 }
 0xcc5   : > { %v6605_v39 = vpop.xlane.xlu0 %6604 }
 0xcc6   : > { %v6627_v57 = vsub.f32 %v6595_v26, %v6605_v39 }
 0xcc8   : > { %v6635_v41 = vmul.f32 1.442695, %v6627_v57 }
 0xcc9   : > { %v6611_v10 = vpop.xlane.xlu0 %6610 }
 0xcca   : > { %14059 = vpow2.f32 %v6635_v41  ;;  %v6629_v14 = vsub.f32 %v6597_v42, %v6611_v10 }
 0xccc   : > { %v6639_v63 = vmul.f32 1.442695, %v6629_v14 }
 0xccd   : > { %v6617_v47 = vpop.xlane.xlu1 %6616  ;;  %v6614_v3 = vpop.xlane.xlu0 %6613 }
 0xcce   : > { %14061 = vpow2.f32 %v6639_v63  ;;  %v6631_v45 = vsub.f32 %v6599_v54, %v6617_v47  ;;  %v6630_v21 = vsub.f32 %v6598_v31, %v6614_v3 }
 0xcd0   : > { %v6643_v8 = vmul.f32 1.442695, %v6631_v45  ;;  %v6641_v62 = vmul.f32 1.442695, %v6630_v21 }
 0xcd1   : > { %v6692_v61 = vpop.permute.xlu1 %6691  ;;  %v6620_v0 = vpop.xlane.xlu0 %6619 }
 0xcd2   : > { %14063 = vpow2.f32 %v6643_v8  ;;  %v6632_v2 = vsub.f32 %v6600_v49, %v6620_v0  ;;  %13446 = vmatpush3.msra.mxu1 %v6692_v61 }
 0xcd3   : > { %14065 = vpow2.f32 %v6641_v62  ;;  %13455 = vmatprep.subr.mxu1 %v16855_v22 }
 0xcd4   : > { %v15466_v26 = vpop.eup %14059  ;;  %v6645_v58 = vmul.f32 1.442695, %v6632_v2 }
 0xcd5   : > { %v6626_v42 = vpop.xlane.xlu0 %6625  ;;  %v6651_v39 = vsel %vm685_vm4, %v15466_v26, 0.0 }
 0xcd6   : > { %14067 = vpow2.f32 %v6645_v58  ;;  %v6634_v54 = vsub.f32 %v6602_v16, %v6626_v42  ;;  %6652 = vadd.xlane.f32.xlu1 %v6651_v39 }
 0xcd8   : > { %v15470_v31 = vpop.eup %14061  ;;  %v6649_v21 = vmul.f32 1.442695, %v6634_v54 }
 0xcd9   : > { %v6768_v57 = vpop.permute.xlu0 %6767  ;;  %v6657_v61 = vsel %vm685_vm4, %v15470_v31, 0.0 }
 0xcda   : > { %14069 = vpow2.f32 %v6649_v21  ;;  %6658 = vadd.xlane.f32.xlu1 %v6657_v61  ;;  %13451 = vmatpush3.msra.mxu0 %v6768_v57 }
 0xcdb   : > { %13460 = vmatprep.subr.mxu0 %v16855_v22 }
 0xcdc   : > { %v15475_v0 = vpop.eup %14063 }
 0xcdd   : > { %v15477_v2 = vpop.eup %14065  ;;  %v6663_v16 = vsel %vm685_vm4, %v15475_v0, 0.0  ;;  %v6996_v58 = vpop.permute.xlu0 %6995 }
 0xcde   : > { %6664 = vadd.xlane.f32.xlu1 %v6663_v16  ;;  %v6660_v49 = vsel %vm685_vm4, %v15477_v2, 0.0 }
 0xcdf   : > { %6661 = vadd.xlane.f32.xlu0 %v6660_v49 }
 0xce0   : > { %v15483_v41 = vpop.eup %14067 }
 0xce1   : > { %v6666_v10 = vsel %vm685_vm4, %v15483_v41, 0.0  ;;  %v7148_v42 = vpop.permute.xlu0 %7147 }
 0xce3   : > { %6667 = vadd.xlane.f32.xlu0 %v6666_v10 }
 0xce4   : > { %v15487_v14 = vpop.eup %14069 }
 0xce5   : > { %v6672_v63 = vsel %vm685_vm4, %v15487_v14, 0.0 }
 0xce7   : > { %6673 = vadd.xlane.f32.xlu0 %v6672_v63 }
 0xcfd   : > { %7455 = vrot.lane.b32.xlu0 %v14557_v23, %s14293_s23 }
 0xd01   : > { %7613 = vrot.lane.b32.xlu0 %v14559_v25, %s14292_s22 }
 0xd02   : > { %v6623_v47 = vpop.xlane.xlu1 %6622 }
 0xd03   : > { %v6633_v3 = vsub.f32 %v15441_v15, %v6623_v47  ;;  %v15510_v15 = vpop.permute.xlu0 %7301 }
 0xd05   : > { %v6647_v45 = vmul.f32 1.442695, %v6633_v3  ;;  %7611 = vrot.lane.b32.xlu0 %v14559_v25, %s14293_s23 }
 0xd06   : > { %v6844_v57 = vpop.permute.xlu1 %6843 }
 0xd07   : > { %14071 = vpow2.f32 %v6647_v45  ;;  %v15514_v39 = vpop.permute.xlu0 %7299 }
 0xd09   : > { %7769 = vrot.lane.b32.xlu0 %v14577_v36, %s14292_s22 }
 0xd0a   : > { %v6920_v61 = vpop.permute.xlu1 %6919 }
 0xd0b   : > { %v15520_v54 = vpop.permute.xlu0 %7457 }
 0xd0d   : > { %7767 = vrot.lane.b32.xlu0 %v14577_v36, %s14293_s23 }
 0xd0e   : > { %v7072_v10 = vpop.permute.xlu1 %7071 }
 0xd11   : > { %v15502_v8 = vpop.eup %14071 }
 0xd12   : > { %v6669_v62 = vsel %vm685_vm4, %v15502_v8, 0.0  ;;  %v7224_v63 = vpop.permute.xlu1 %7223 }
 0xd13   : > { %6670 = vadd.xlane.f32.xlu1 %v6669_v62 }
 0xd16   : > { %v7380_v47 = vpop.permute.xlu1 %7379 }
 0xd1a   : > { %v7378_v3 = vpop.permute.xlu1 %7377 }
 0xd1e   : > { %v7536_v45 = vpop.permute.xlu1 %7535 }
 0xd24   : > { %7533 = vrot.lane.b32.xlu1 %v14569_v30, %s14293_s23 }
 0xd28   : > { %7691 = vrot.lane.b32.xlu1 %v14575_v34, %s14292_s22 }
 0xd2c   : > { %7689 = vrot.lane.b32.xlu1 %v14575_v34, %s14293_s23 }
 0xd30   : > { %7847 = vrot.lane.b32.xlu1 %v14585_v40, %s14292_s22 }
 0xd34   : > { %7845 = vrot.lane.b32.xlu1 %v14585_v40, %s14293_s23 }
 0xd3a   : > { %v6656_v21 = vpop.xlane.xlu0 %6655 }
 0xd3b   : > { %14073 = vrcp.f32 %v6656_v21 }
 0xd45   : > { %v14074_v16 = vpop.eup %14073 }
 0xd46   : > { %v6684_v49 = vmul.f32 %v14074_v16, %v15461_v4 }
 0xd48   : > { %13453 = vmatmul.mubr.msk.f32.vlgmr.msra.gmra.mrb[94].mxu0 %vm685_vm4, %v6684_v49 }
 0xd49   : > { %13461 = vmatpush3.msra.mxu0 %v6920_v61  ;;  %13462 = vmatprep.mubr.msk.f32.mxu0 %vm14282_vm3, %v16855_v22 }
 0xd4a   : > { %13470 = vmatprep.subr.mxu0 %v16855_v22 }
 0xd63   : > { %v6653_v62 = vpop.xlane.xlu1 %6652 }
 0xd64   : > { %14075 = vrcp.f32 %v6653_v62 }
 0xd67   : > { %v6659_v21 = vpop.xlane.xlu1 %6658 }
 0xd68   : > { %14077 = vrcp.f32 %v6659_v21 }
 0xd6b   : > { %v6665_v52 = vpop.xlane.xlu1 %6664 }
 0xd6c   : > { %14079 = vrcp.f32 %v6665_v52  ;;  %v6662_v4 = vpop.xlane.xlu0 %6661 }
 0xd6d   : > { %14081 = vrcp.f32 %v6662_v4 }
 0xd6e   : > { %v14076_v16 = vpop.eup %14075 }
 0xd6f   : > { %v6683_v61 = vmul.f32 %v14076_v16, %v15466_v26 }
 0xd70   : > { %v6668_v49 = vpop.xlane.xlu0 %6667 }
 0xd71   : > { %14083 = vrcp.f32 %v6668_v49  ;;  %13448 = vmatmul.mubr.msk.f32.vlgmr.msra.gmra.mrb[74].mxu1 %vm685_vm4, %v6683_v61 }
 0xd72   : > { %v14078_v12 = vpop.eup %14077  ;;  %13456 = vmatpush3.msra.mxu1 %v6844_v57  ;;  %13457 = vmatprep.mubr.msk.f32.mxu1 %vm14282_vm3, %v16855_v22 }
 0xd73   : > { %13465 = vmatprep.subr.mxu1 %v16855_v22  ;;  %v6685_v62 = vmul.f32 %v14078_v12, %v15470_v31 }
 0xd74   : > { %v6674_v21 = vpop.xlane.xlu0 %6673 }
 0xd75   : > { %14085 = vrcp.f32 %v6674_v21  ;;  %13458 = vmatmul.mubr.msk.f32.vlgmr.msra.gmra.mrb[76].mxu1 %vm685_vm4, %v6685_v62 }
 0xd76   : > { %v14080_v52 = vpop.eup %14079  ;;  %13466 = vmatpush3.msra.mxu1 %v6996_v58  ;;  %13467 = vmatprep.mubr.msk.f32.mxu1 %vm14282_vm3, %v16855_v22 }
 0xd77   : > { %v14082_v26 = vpop.eup %14081  ;;  %13475 = vmatprep.subr.mxu1 %v16855_v22  ;;  %v6687_v57 = vmul.f32 %v14080_v52, %v15475_v0 }
 0xd78   : > { %v6686_v4 = vmul.f32 %v14082_v26, %v15477_v2  ;;  %v7456_v58 = vpop.permute.xlu0 %7455 }
 0xd79   : > { %13468 = vmatmul.mubr.msk.f32.vlgmr.msra.gmra.mrb[78].mxu1 %vm685_vm4, %v6687_v57 }
 0xd7a   : > { %13463 = vmatmul.mubr.msk.f32.vlgmr.msra.gmra.mrb[96].mxu0 %vm685_vm4, %v6686_v4  ;;  %13476 = vmatpush3.msra.mxu1 %v7148_v42 }
 0xd7b   : > { %v14084_v12 = vpop.eup %14083  ;;  %13471 = vmatpush3.msra.mxu0 %v7072_v10  ;;  %13472 = vmatprep.mubr.msk.f32.mxu0 %vm14282_vm3, %v16855_v22 }
 0xd7c   : > { %13480 = vmatprep.subr.mxu0 %v16855_v22  ;;  %v6688_v31 = vmul.f32 %v14084_v12, %v15483_v41  ;;  %13477 = vmatprep.mubr.msk.f32.mxu1 %vm14282_vm3, %v16855_v22 }
 0xd7d   : > { %13485 = vmatprep.subr.mxu1 %v16855_v22 }
 0xd7e   : > { %13473 = vmatmul.mubr.msk.f32.vlgmr.msra.gmra.mrb[98].mxu0 %vm685_vm4, %v6688_v31 }
 0xd7f   : > { %v14086_v0 = vpop.eup %14085  ;;  %13481 = vmatpush3.msra.mxu0 %v7224_v63  ;;  %13482 = vmatprep.mubr.msk.f32.mxu0 %vm14282_vm3, %v16855_v22  ;;  %v7614_v63 = vpop.permute.xlu0 %7613 }
 0xd80   : > { %v6690_v2 = vmul.f32 %v14086_v0, %v15487_v14  ;;  %13490 = vmatprep.subr.mxu0 %v16855_v22 }
 0xd82   : > { %13483 = vmatmul.mubr.msk.f32.vlgmr.msra.gmra.mrb[100].mxu0 %vm685_vm4, %v6690_v2 }
 0xd83   : > { %13492 = vmatprep.mubr.msk.f32.mxu0 %vm14282_vm3, %v16855_v22  ;;  %v7612_v16 = vpop.permute.xlu0 %7611 }
 0xd86   : > { %13491 = vmatpush3.xpose.msk.msra.mxu0 %vm685_vm4, %v7380_v47 }
 0xd87   : > { %13500 = vmatprep.subr.mxu0 %v16855_v22 }
 0xd89   : > { %13493 = vmatmul.mubr.msk.f32.vlgmr.msra.gmra.mrb[102].mxu0 %vm685_vm4, %v7378_v3 }
 0xd8a   : > { %13501 = vmatpush3.xpose.msk.msra.mxu0 %vm685_vm4, %v7536_v45  ;;  %13502 = vmatprep.mubr.msk.f32.mxu0 %vm14282_vm3, %v16855_v22 }
 0xd8b   : > { %13510 = vmatprep.subr.mxu0 %v16855_v22 }
 0xda0   : > { %v6671_v41 = vpop.xlane.xlu1 %6670 }
 0xda1   : > { %14087 = vrcp.f32 %v6671_v41 }
 0xda4   : > { %v7534_v14 = vpop.permute.xlu1 %7533 }
 0xda5   : > { %13503 = vmatmul.mubr.msk.f32.vlgmr.msra.gmra.mrb[104].mxu0 %vm685_vm4, %v7534_v14 }
 0xda6   : > { %13512 = vmatprep.mubr.msk.f32.mxu0 %vm14282_vm3, %v16855_v22 }
 0xda8   : > { %v7692_v42 = vpop.permute.xlu1 %7691 }
 0xda9   : > { %13511 = vmatpush3.xpose.msk.msra.mxu0 %vm685_vm4, %v7692_v42 }
 0xdaa   : > { %13520 = vmatprep.subr.mxu0 %v16855_v22 }
 0xdab   : > { %v14088_v10 = vpop.eup %14087 }
 0xdac   : > { %v7690_v47 = vpop.permute.xlu1 %7689  ;;  %v6689_v3 = vmul.f32 %v14088_v10, %v15502_v8 }
 0xdad   : > { %13513 = vmatmul.mubr.msk.f32.vlgmr.msra.gmra.mrb[106].mxu0 %vm685_vm4, %v7690_v47 }
 0xdae   : > { %13478 = vmatmul.mubr.msk.f32.vlgmr.msra.gmra.mrb[80].mxu1 %vm685_vm4, %v6689_v3  ;;  %13522 = vmatprep.mubr.msk.f32.mxu0 %vm14282_vm3, %v16855_v22 }
 0xdaf   : > { %13486 = vmatpush3.xpose.msk.msra.mxu1 %vm685_vm4, %v15510_v15  ;;  %13487 = vmatprep.mubr.msk.f32.mxu1 %vm14282_vm3, %v16855_v22  ;;  %v7770_v15 = vpop.permute.xlu0 %7769 }
 0xdb0   : > { %v7848_v45 = vpop.permute.xlu1 %7847  ;;  %13495 = vmatprep.subr.mxu1 %v16855_v22 }
 0xdb1   : > { %13521 = vmatpush3.xpose.msk.msra.mxu0 %vm685_vm4, %v7848_v45 }
 0xdb2   : > { %13488 = vmatmul.mubr.msk.f32.vlgmr.msra.gmra.mrb[82].mxu1 %vm685_vm4, %v15514_v39  ;;  %13530 = vmatprep.subr.mxu0 %v16855_v22 }
 0xdb3   : > { %13496 = vmatpush3.xpose.msk.msra.mxu1 %vm685_vm4, %v15520_v54  ;;  %13497 = vmatprep.mubr.msk.f32.mxu1 %vm14282_vm3, %v16855_v22  ;;  %v7768_v39 = vpop.permute.xlu0 %7767 }
 0xdb4   : > { %v7846_v8 = vpop.permute.xlu1 %7845  ;;  %13505 = vmatprep.subr.mxu1 %v16855_v22 }
 0xdb5   : > { %13523 = vmatmul.mubr.msk.f32.vlgmr.msra.gmra.mrb[108].mxu0 %vm685_vm4, %v7846_v8 }
 0xdb6   : > { %13498 = vmatmul.mubr.msk.f32.vlgmr.msra.gmra.mrb[84].mxu1 %vm685_vm4, %v7456_v58  ;;  %13532 = vmatprep.mubr.msk.f32.mxu0 %vm14282_vm3, %v16855_v22 }
 0xdb7   : > { %13506 = vmatpush3.xpose.msk.msra.mxu1 %vm685_vm4, %v7614_v63  ;;  %13507 = vmatprep.mubr.msk.f32.mxu1 %vm14282_vm3, %v16855_v22 }
 0xdb8   : > { %13515 = vmatprep.subr.mxu1 %v16855_v22 }
 0xdba   : > { %13508 = vmatmul.mubr.msk.f32.vlgmr.msra.gmra.mrb[86].mxu1 %vm685_vm4, %v7612_v16 }
 0xdbb   : > { %13516 = vmatpush3.xpose.msk.msra.mxu1 %vm685_vm4, %v7770_v15  ;;  %13517 = vmatprep.mubr.msk.f32.mxu1 %vm14282_vm3, %v16855_v22 }
 0xdbc   : > { %13525 = vmatprep.subr.mxu1 %v16855_v22 }
 0xdbe   : > { %13518 = vmatmul.mubr.msk.f32.vlgmr.msra.gmra.mrb[88].mxu1 %vm685_vm4, %v7768_v39 }
 0xdbf   : > { %13527 = vmatprep.mubr.msk.f32.mxu1 %vm14282_vm3, %v16855_v22 }
 0xe1b   : > { %v15603_v54 = vpop.f32.mrb[94].mxu0 }
 0xe1c   : > { %v13454_v61 = vpop.f32.mrb[95].mxu0 }
 0xe44   : > { %v15605_v49 = vpop.f32.mrb[74].mxu1 }
 0xe45   : > { %v13449_v62 = vpop.f32.mrb[75].mxu1 }
 0xe48   : > { %v15607_v21 = vpop.f32.mrb[76].mxu1 }
 0xe49   : > { %v13459_v52 = vpop.f32.mrb[77].mxu1 }
 0xe4c   : > { %v15609_v26 = vpop.f32.mrb[78].mxu1 }
 0xe4d   : > { %16864 = vst [vmem:[#allocation34_spill] sm:$0xff] %v15609_v26  ;;  %v15611_v57 = vpop.f32.mrb[96].mxu0  ;;  %v13469_v4 = vpop.f32.mrb[79].mxu1 }
 0xe4e   : > { %v13464_v12 = vpop.f32.mrb[97].mxu0 }
 0xe51   : > { %v15613_v31 = vpop.f32.mrb[98].mxu0 }
 0xe52   : > { %16865 = vst [vmem:[#allocation35_spill] sm:$0xff] %v15613_v31  ;;  %v13474_v0 = vpop.f32.mrb[99].mxu0 }
 0xe55   : > { %v15615_v2 = vpop.f32.mrb[100].mxu0 }
 0xe56   : > { %16866 = vst [vmem:[#allocation36_spill] sm:$0xff] %v15615_v2  ;;  %v13484_v41 = vpop.f32.mrb[101].mxu0 }
 0xe5c   : > { %v7451_v14 = vpop.f32.mrb[102].mxu0 }
 0xe5d   : > { %v7924_v58 = vmul.f32 0.35355338, %v7451_v14  ;;  %v13494_v42 = vpop.f32.mrb[103].mxu0 }
 0xe5f   : > { %v7934_v10 = vsel %vm685_vm4, %v7924_v58, -inf }
 0xe60   : > { %7935 = vmax.xlane.f32.xlu1 %v7934_v10 }
 0xe78   : > { %v7607_v63 = vpop.f32.mrb[104].mxu0 }
 0xe79   : > { %v13504_v47 = vpop.f32.mrb[105].mxu0  ;;  %v7926_v14 = vmul.f32 0.35355338, %v7607_v63 }
 0xe80   : > { %v7763_v3 = vpop.f32.mrb[106].mxu0 }
 0xe81   : > { %v15618_v45 = vpop.f32.mrb[80].mxu1  ;;  %v13514_v16 = vpop.f32.mrb[107].mxu0 }
 0xe82   : > { %16867 = vst [vmem:[#allocation37_spill] sm:$0xff] %v15618_v45  ;;  %v13479_v8 = vpop.f32.mrb[81].mxu1  ;;  %v7928_v16 = vmul.f32 0.35355338, %v7763_v3 }
 0xe83   : > { %v7940_v8 = vsel %vm685_vm4, %v7926_v14, -inf }
 0xe85   : > { %v7373_v15 = vpop.f32.mrb[82].mxu1 }
 0xe86   : > { %v7923_v39 = vmul.f32 0.35355338, %v7373_v15  ;;  %v13489_v61 = vpop.f32.mrb[83].mxu1 }
 0xe88   : > { %v7919_v62 = vpop.f32.mrb[108].mxu0  ;;  %v7931_v52 = vsel %vm685_vm4, %v7923_v39, -inf }
 0xe89   : > { %7932 = vmax.xlane.f32.xlu0 %v7931_v52  ;;  %v7529_v4 = vpop.f32.mrb[84].mxu1  ;;  %v13524_v12 = vpop.f32.mrb[109].mxu0  ;;  %v7930_v45 = vmul.f32 0.35355338, %v7919_v62 }
 0xe8a   : > { %v7925_v0 = vmul.f32 0.35355338, %v7529_v4  ;;  %v13499_v41 = vpop.f32.mrb[85].mxu1  ;;  %v7946_v4 = vsel %vm685_vm4, %v7928_v16, -inf }
 0xe8b   : > { %v7952_v63 = vsel %vm685_vm4, %v7930_v45, -inf }
 0xe8c   : > { %v7937_v42 = vsel %vm685_vm4, %v7925_v0, -inf }
 0xe8d   : > { %7938 = vmax.xlane.f32.xlu0 %v7937_v42  ;;  %v7685_v10 = vpop.f32.mrb[86].mxu1 }
 0xe8e   : > { %v7927_v47 = vmul.f32 0.35355338, %v7685_v10  ;;  %v13509_v2 = vpop.f32.mrb[87].mxu1 }
 0xe90   : > { %v7943_v15 = vsel %vm685_vm4, %v7927_v47, -inf }
 0xe91   : > { %7941 = vmax.xlane.f32.xlu0 %v7940_v8  ;;  %7944 = vmax.xlane.f32.xlu1 %v7943_v15  ;;  %v7841_v61 = vpop.f32.mrb[88].mxu1 }
 0xe92   : > { %v13519_v52 = vpop.f32.mrb[89].mxu1  ;;  %v15638_v2 = vmul.f32 0.35355338, %v7841_v61 }
 0xe94   : > { %v7949_v3 = vsel %vm685_vm4, %v15638_v2, -inf }
 0xe95   : > { %7947 = vmax.xlane.f32.xlu0 %v7946_v4 }
 0xe99   : > { %7953 = vmax.xlane.f32.xlu0 %v7952_v63 }
 0xea2   : > { %8019 = vrot.lane.b32.xlu1 %v14543_v13, %s14293_s23 }
 0xeaf   : > { %8095 = vrot.lane.b32.xlu0 %v14553_v20, %s14293_s23 }
 0xeb3   : > { %8323 = vrot.lane.b32.xlu0 %v14563_v28, %s14293_s23 }
 0xeb7   : > { %8475 = vrot.lane.b32.xlu0 %v14579_v38, %s14293_s23 }
 0xebb   : > { %8629 = vrot.lane.b32.xlu0 %v14541_v11, %s14294_s29 }
 0xebf   : > { %8627 = vrot.lane.b32.xlu0 %v14541_v11, %s14295_s24 }
 0xec3   : > { %8785 = vrot.lane.b32.xlu0 %v14557_v23, %s14294_s29 }
 0xec6   : > { %7950 = vmax.xlane.f32.xlu1 %v7949_v3 }
 0xed7   : > { %8171 = vrot.lane.b32.xlu1 %v14561_v27, %s14293_s23 }
 0xedb   : > { %8247 = vrot.lane.b32.xlu1 %v14550_v19, %s14293_s23 }
 0xedf   : > { %8399 = vrot.lane.b32.xlu1 %v14571_v32, %s14293_s23 }
 0xee3   : > { %8551 = vrot.lane.b32.xlu1 %v14587_v44, %s14293_s23 }
 0xee7   : > { %8707 = vrot.lane.b32.xlu1 %v14548_v17, %s14294_s29 }
 0xeeb   : > { %8705 = vrot.lane.b32.xlu1 %v14548_v17, %s14295_s24 }
 0xeed   : > { %v7936_v62 = vpop.xlane.xlu1 %7935 }
 0xeee   : > { %v7956_v12 = vsub.f32 %v7924_v58, %v7936_v62 }
 0xeef   : > { %8863 = vrot.lane.b32.xlu1 %v14569_v30, %s14294_s29 }
 0xef0   : > { %v7965_v41 = vmul.f32 1.442695, %v7956_v12 }
 0xef2   : > { %14089 = vpow2.f32 %v7965_v41 }
 0xefc   : > { %v15658_v42 = vpop.eup %14089 }
 0xefd   : > { %v7982_v10 = vsel %vm685_vm4, %v15658_v42, 0.0 }
 0xefe   : > { %7983 = vadd.xlane.f32.xlu0 %v7982_v10 }
 0xf16   : > { %v7933_v8 = vpop.xlane.xlu0 %7932 }
 0xf17   : > { %v7955_v15 = vsub.f32 %v7923_v39, %v7933_v8 }
 0xf19   : > { %v7963_v61 = vmul.f32 1.442695, %v7955_v15 }
 0xf1a   : > { %v7939_v52 = vpop.xlane.xlu0 %7938 }
 0xf1b   : > { %14091 = vpow2.f32 %v7963_v61  ;;  %v7957_v4 = vsub.f32 %v7925_v0, %v7939_v52 }
 0xf1d   : > { %v7967_v63 = vmul.f32 1.442695, %v7957_v4 }
 0xf1e   : > { %v7945_v3 = vpop.xlane.xlu1 %7944  ;;  %v7942_v58 = vpop.xlane.xlu0 %7941 }
 0xf1f   : > { %14093 = vpow2.f32 %v7967_v63  ;;  %v7959_v62 = vsub.f32 %v7927_v47, %v7945_v3  ;;  %v7958_v56 = vsub.f32 %v7926_v14, %v7942_v58 }
 0xf21   : > { %v7971_v12 = vmul.f32 1.442695, %v7959_v62  ;;  %v7969_v41 = vmul.f32 1.442695, %v7958_v56 }
 0xf22   : > { %v8020_v5 = vpop.permute.xlu1 %8019  ;;  %v7948_v43 = vpop.xlane.xlu0 %7947 }
 0xf23   : > { %14095 = vpow2.f32 %v7971_v12  ;;  %v7960_v26 = vsub.f32 %v7928_v16, %v7948_v43  ;;  %13526 = vmatpush3.msra.mxu1 %v8020_v5 }
 0xf24   : > { %14097 = vpow2.f32 %v7969_v41  ;;  %13535 = vmatprep.subr.mxu1 %v16855_v22 }
 0xf25   : > { %v15663_v39 = vpop.eup %14091  ;;  %v7973_v10 = vmul.f32 1.442695, %v7960_v26 }
 0xf26   : > { %v7954_v0 = vpop.xlane.xlu0 %7953  ;;  %v7979_v8 = vsel %vm685_vm4, %v15663_v39, 0.0 }
 0xf27   : > { %14099 = vpow2.f32 %v7973_v10  ;;  %v7962_v47 = vsub.f32 %v7930_v45, %v7954_v0  ;;  %7980 = vadd.xlane.f32.xlu1 %v7979_v8 }
 0xf29   : > { %v15667_v14 = vpop.eup %14093  ;;  %v7977_v56 = vmul.f32 1.442695, %v7962_v47 }
 0xf2a   : > { %v8096_v15 = vpop.permute.xlu0 %8095  ;;  %v7985_v43 = vsel %vm685_vm4, %v15667_v14, 0.0 }
 0xf2b   : > { %14101 = vpow2.f32 %v7977_v56  ;;  %7986 = vadd.xlane.f32.xlu1 %v7985_v43  ;;  %13531 = vmatpush3.msra.mxu0 %v8096_v15 }
 0xf2c   : > { %13540 = vmatprep.subr.mxu0 %v16855_v22 }
 0xf2d   : > { %v15672_v5 = vpop.eup %14095 }
 0xf2e   : > { %v15674_v26 = vpop.eup %14097  ;;  %v7991_v45 = vsel %vm685_vm4, %v15672_v5, 0.0 }
 0xf2f   : > { %7992 = vadd.xlane.f32.xlu1 %v7991_v45  ;;  %v7988_v16 = vsel %vm685_vm4, %v15674_v26, 0.0 }
 0xf30   : > { %7989 = vadd.xlane.f32.xlu0 %v7988_v16 }
 0xf31   : > { %v15680_v61 = vpop.eup %14099 }
 0xf32   : > { %v7994_v52 = vsel %vm685_vm4, %v15680_v61, 0.0 }
 0xf34   : > { %7995 = vadd.xlane.f32.xlu0 %v7994_v52 }
 0xf35   : > { %v15684_v4 = vpop.eup %14101 }
 0xf36   : > { %v8000_v63 = vsel %vm685_vm4, %v15684_v4, 0.0 }
 0xf38   : > { %8001 = vadd.xlane.f32.xlu0 %v8000_v63 }
 0xf4e   : > { %8783 = vrot.lane.b32.xlu0 %v14557_v23, %s14295_s24 }
 0xf52   : > { %8941 = vrot.lane.b32.xlu0 %v14559_v25, %s14294_s29 }
 0xf53   : > { %v7951_v3 = vpop.xlane.xlu1 %7950 }
 0xf54   : > { %v7961_v58 = vsub.f32 %v15638_v2, %v7951_v3  ;;  %v8324_v2 = vpop.permute.xlu0 %8323 }
 0xf56   : > { %v7975_v62 = vmul.f32 1.442695, %v7961_v58  ;;  %8939 = vrot.lane.b32.xlu0 %v14559_v25, %s14295_s24 }
 0xf57   : > { %v8172_v15 = vpop.permute.xlu1 %8171 }
 0xf58   : > { %14103 = vpow2.f32 %v7975_v62  ;;  %v8476_v10 = vpop.permute.xlu0 %8475 }
 0xf5a   : > { %9097 = vrot.lane.b32.xlu0 %v14577_v36, %s14294_s29 }
 0xf5b   : > { %v8248_v43 = vpop.permute.xlu1 %8247 }
 0xf5c   : > { %v15711_v0 = vpop.permute.xlu0 %8629 }
 0xf5e   : > { %9095 = vrot.lane.b32.xlu0 %v14577_v36, %s14295_s24 }
 0xf5f   : > { %v8400_v52 = vpop.permute.xlu1 %8399 }
 0xf60   : > { %v15715_v8 = vpop.permute.xlu0 %8627 }
 0xf62   : > { %v15699_v12 = vpop.eup %14103  ;;  %9423 = vrot.lane.b32.xlu0 %v14553_v20, %s14295_s24 }
 0xf63   : > { %v7997_v41 = vsel %vm685_vm4, %v15699_v12, 0.0  ;;  %v8552_v63 = vpop.permute.xlu1 %8551 }
 0xf64   : > { %7998 = vadd.xlane.f32.xlu1 %v7997_v41  ;;  %v15721_v47 = vpop.permute.xlu0 %8785 }
 0xf66   : > { %9651 = vrot.lane.b32.xlu0 %v14563_v28, %s14295_s24 }
 0xf67   : > { %v8708_v3 = vpop.permute.xlu1 %8707 }
 0xf6b   : > { %v8706_v58 = vpop.permute.xlu1 %8705 }
 0xf6f   : > { %v8864_v62 = vpop.permute.xlu1 %8863 }
 0xf75   : > { %8861 = vrot.lane.b32.xlu1 %v14569_v30, %s14295_s24 }
 0xf79   : > { %9019 = vrot.lane.b32.xlu1 %v14575_v34, %s14294_s29 }
 0xf7d   : > { %9017 = vrot.lane.b32.xlu1 %v14575_v34, %s14295_s24 }
 0xf81   : > { %9175 = vrot.lane.b32.xlu1 %v14585_v40, %s14294_s29 }
 0xf85   : > { %9173 = vrot.lane.b32.xlu1 %v14585_v40, %s14295_s24 }
 0xf89   : > { %9347 = vrot.lane.b32.xlu1 %v14543_v13, %s14295_s24 }
 0xf8b   : > { %v7984_v56 = vpop.xlane.xlu0 %7983 }
 0xf8c   : > { %14105 = vrcp.f32 %v7984_v56 }
 0xf8d   : > { %9499 = vrot.lane.b32.xlu1 %v14561_v27, %s14295_s24 }
 0xf91   : > { %9575 = vrot.lane.b32.xlu1 %v14550_v19, %s14295_s24 }
 0xf95   : > { %9727 = vrot.lane.b32.xlu1 %v14571_v32, %s14295_s24 }
 0xf96   : > { %v14106_v45 = vpop.eup %14105 }
 0xf97   : > { %v8012_v16 = vmul.f32 %v14106_v45, %v15658_v42 }
 0xf99   : > { %13533 = vmatmul.mubr.msk.f32.vlgmr.msra.gmra.mrb[110].mxu0 %vm685_vm4, %v8012_v16 }
 0xf9a   : > { %13541 = vmatpush3.msra.mxu0 %v8248_v43  ;;  %13542 = vmatprep.mubr.msk.f32.mxu0 %vm14282_vm3, %v16855_v22 }
 0xf9b   : > { %13550 = vmatprep.subr.mxu0 %v16855_v22 }
 0xfb4   : > { %v7981_v41 = vpop.xlane.xlu1 %7980 }
 0xfb5   : > { %14107 = vrcp.f32 %v7981_v41 }
 0xfb8   : > { %v7987_v56 = vpop.xlane.xlu1 %7986 }
 0xfb9   : > { %14109 = vrcp.f32 %v7987_v56 }
 0xfbc   : > { %v7993_v29 = vpop.xlane.xlu1 %7992 }
 0xfbd   : > { %14111 = vrcp.f32 %v7993_v29  ;;  %v7990_v42 = vpop.xlane.xlu0 %7989 }
 0xfbe   : > { %14113 = vrcp.f32 %v7990_v42 }
 0xfbf   : > { %v14108_v45 = vpop.eup %14107 }
 0xfc0   : > { %v8011_v43 = vmul.f32 %v14108_v45, %v15663_v39 }
 0xfc1   : > { %v7996_v16 = vpop.xlane.xlu0 %7995 }
 0xfc2   : > { %14115 = vrcp.f32 %v7996_v16  ;;  %13528 = vmatmul.mubr.msk.f32.vlgmr.msra.gmra.mrb[90].mxu1 %vm685_vm4, %v8011_v43 }
 0xfc3   : > { %v14110_v1 = vpop.eup %14109  ;;  %13536 = vmatpush3.msra.mxu1 %v8172_v15  ;;  %13537 = vmatprep.mubr.msk.f32.mxu1 %vm14282_vm3, %v16855_v22 }
 0xfc4   : > { %13545 = vmatprep.subr.mxu1 %v16855_v22  ;;  %v8013_v41 = vmul.f32 %v14110_v1, %v15667_v14 }
 0xfc5   : > { %v8002_v56 = vpop.xlane.xlu0 %8001 }
 0xfc6   : > { %14117 = vrcp.f32 %v8002_v56  ;;  %13538 = vmatmul.mubr.msk.f32.vlgmr.msra.gmra.mrb[92].mxu1 %vm685_vm4, %v8013_v41 }
 0xfc7   : > { %v14112_v29 = vpop.eup %14111  ;;  %13546 = vmatpush3.msra.mxu1 %v8324_v2  ;;  %13547 = vmatprep.mubr.msk.f32.mxu1 %vm14282_vm3, %v16855_v22 }
 0xfc8   : > { %v14114_v39 = vpop.eup %14113  ;;  %13555 = vmatprep.subr.mxu1 %v16855_v22  ;;  %v8015_v15 = vmul.f32 %v14112_v29, %v15672_v5 }
 0xfc9   : > { %v8014_v42 = vmul.f32 %v14114_v39, %v15674_v26 }
 0xfca   : > { %13548 = vmatmul.mubr.msk.f32.vlgmr.msra.gmra.mrb[94].mxu1 %vm685_vm4, %v8015_v15 }
 0xfcb   : > { %13543 = vmatmul.mubr.msk.f32.vlgmr.msra.gmra.mrb[112].mxu0 %vm685_vm4, %v8014_v42  ;;  %13556 = vmatpush3.msra.mxu1 %v8476_v10 }
 0xfcc   : > { %v14116_v1 = vpop.eup %14115  ;;  %13551 = vmatpush3.msra.mxu0 %v8400_v52  ;;  %13552 = vmatprep.mubr.msk.f32.mxu0 %vm14282_vm3, %v16855_v22 }
 0xfcd   : > { %13560 = vmatprep.subr.mxu0 %v16855_v22  ;;  %v8016_v14 = vmul.f32 %v14116_v1, %v15680_v61  ;;  %13557 = vmatprep.mubr.msk.f32.mxu1 %vm14282_vm3, %v16855_v22  ;;  %v8784_v61 = vpop.permute.xlu0 %8783 }
 0xfce   : > { %13565 = vmatprep.subr.mxu1 %v16855_v22 }
 0xfcf   : > { %13553 = vmatmul.mubr.msk.f32.vlgmr.msra.gmra.mrb[114].mxu0 %vm685_vm4, %v8016_v14 }
 0xfd0   : > { %v14118_v5 = vpop.eup %14117  ;;  %13561 = vmatpush3.msra.mxu0 %v8552_v63  ;;  %13562 = vmatprep.mubr.msk.f32.mxu0 %vm14282_vm3, %v16855_v22 }
 0xfd1   : > { %v8018_v26 = vmul.f32 %v14118_v5, %v15684_v4  ;;  %13570 = vmatprep.subr.mxu0 %v16855_v22  ;;  %v8942_v4 = vpop.permute.xlu0 %8941 }
 0xfd3   : > { %13563 = vmatmul.mubr.msk.f32.vlgmr.msra.gmra.mrb[116].mxu0 %vm685_vm4, %v8018_v26 }
 0xfd4   : > { %13572 = vmatprep.mubr.msk.f32.mxu0 %vm14282_vm3, %v16855_v22 }
 0xfd5   : > { %v8940_v10 = vpop.permute.xlu0 %8939 }
 0xfd7   : > { %13571 = vmatpush3.xpose.msk.msra.mxu0 %vm685_vm4, %v8708_v3 }
 0xfd8   : > { %13580 = vmatprep.subr.mxu0 %v16855_v22 }
 0xfd9   : > { %v9098_v3 = vpop.permute.xlu0 %9097 }
 0xfda   : > { %13573 = vmatmul.mubr.msk.f32.vlgmr.msra.gmra.mrb[118].mxu0 %vm685_vm4, %v8706_v58 }
 0xfdb   : > { %13581 = vmatpush3.xpose.msk.msra.mxu0 %vm685_vm4, %v8864_v62  ;;  %13582 = vmatprep.mubr.msk.f32.mxu0 %vm14282_vm3, %v16855_v22 }
 0xfdc   : > { %13590 = vmatprep.subr.mxu0 %v16855_v22 }
 0xfdd   : > { %v9096_v43 = vpop.permute.xlu0 %9095 }
 0xff1   : > { %v7999_v2 = vpop.xlane.xlu1 %7998 }
 0xff2   : > { %14119 = vrcp.f32 %v7999_v2 }
 0xff5   : > { %v8862_v52 = vpop.permute.xlu1 %8861 }
 0xff6   : > { %13583 = vmatmul.mubr.msk.f32.vlgmr.msra.gmra.mrb[120].mxu0 %vm685_vm4, %v8862_v52 }
 0xff7   : > { %13592 = vmatprep.mubr.msk.f32.mxu0 %vm14282_vm3, %v16855_v22 }
 0xff9   : > { %v9020_v63 = vpop.permute.xlu1 %9019 }
 0xffa   : > { %13591 = vmatpush3.xpose.msk.msra.mxu0 %vm685_vm4, %v9020_v63 }
 0xffb   : > { %13600 = vmatprep.subr.mxu0 %v16855_v22 }
 0xffc   : > { %v14120_v58 = vpop.eup %14119 }
 0xffd   : > { %v9018_v62 = vpop.permute.xlu1 %9017  ;;  %v8017_v45 = vmul.f32 %v14120_v58, %v15699_v12 }
 0xffe   : > { %13593 = vmatmul.mubr.msk.f32.vlgmr.msra.gmra.mrb[122].mxu0 %vm685_vm4, %v9018_v62 }
 0xfff   : > { %13558 = vmatmul.mubr.msk.f32.vlgmr.msra.gmra.mrb[96].mxu1 %vm685_vm4, %v8017_v45  ;;  %13602 = vmatprep.mubr.msk.f32.mxu0 %vm14282_vm3, %v16855_v22 }
0x1000   : > { %13566 = vmatpush3.xpose.msk.msra.mxu1 %vm685_vm4, %v15711_v0  ;;  %13567 = vmatprep.mubr.msk.f32.mxu1 %vm14282_vm3, %v16855_v22  ;;  %v9424_v0 = vpop.permute.xlu0 %9423 }
0x1001   : > { %v9176_v16 = vpop.permute.xlu1 %9175  ;;  %13575 = vmatprep.subr.mxu1 %v16855_v22 }
0x1002   : > { %13601 = vmatpush3.xpose.msk.msra.mxu0 %vm685_vm4, %v9176_v16 }
0x1003   : > { %13568 = vmatmul.mubr.msk.f32.vlgmr.msra.gmra.mrb[98].mxu1 %vm685_vm4, %v15715_v8  ;;  %13610 = vmatprep.subr.mxu0 %v16855_v22 }
0x1004   : > { %13576 = vmatpush3.xpose.msk.msra.mxu1 %vm685_vm4, %v15721_v47  ;;  %13577 = vmatprep.mubr.msk.f32.mxu1 %vm14282_vm3, %v16855_v22 }
0x1005   : > { %v9174_v12 = vpop.permute.xlu1 %9173  ;;  %13585 = vmatprep.subr.mxu1 %v16855_v22 }
0x1006   : > { %13603 = vmatmul.mubr.msk.f32.vlgmr.msra.gmra.mrb[124].mxu0 %vm685_vm4, %v9174_v12 }
0x1007   : > { %13611 = vmatpush3.msra.mxu0 %v9424_v0  ;;  %13578 = vmatmul.mubr.msk.f32.vlgmr.msra.gmra.mrb[100].mxu1 %vm685_vm4, %v8784_v61 }
0x1008   : > { %13586 = vmatpush3.xpose.msk.msra.mxu1 %vm685_vm4, %v8942_v4  ;;  %13587 = vmatprep.mubr.msk.f32.mxu1 %vm14282_vm3, %v16855_v22 }
0x1009   : > { %13595 = vmatprep.subr.mxu1 %v16855_v22  ;;  %13612 = vmatprep.mubr.msk.f32.mxu0 %vm14282_vm3, %v16855_v22  ;;  %v9348_v8 = vpop.permute.xlu1 %9347 }
0x100a   : > { %13620 = vmatprep.subr.mxu0 %v16855_v22 }
0x100b   : > { %13588 = vmatmul.mubr.msk.f32.vlgmr.msra.gmra.mrb[102].mxu1 %vm685_vm4, %v8940_v10 }
0x100c   : > { %13596 = vmatpush3.xpose.msk.msra.mxu1 %vm685_vm4, %v9098_v3  ;;  %13597 = vmatprep.mubr.msk.f32.mxu1 %vm14282_vm3, %v16855_v22 }
0x100d   : > { %13605 = vmatprep.subr.mxu1 %v16855_v22 }
0x100f   : > { %13598 = vmatmul.mubr.msk.f32.vlgmr.msra.gmra.mrb[104].mxu1 %vm685_vm4, %v9096_v43 }
0x1010   : > { %13606 = vmatpush3.msra.mxu1 %v9348_v8  ;;  %13607 = vmatprep.mubr.msk.f32.mxu1 %vm14282_vm3, %v16855_v22 }
0x1011   : > { %13615 = vmatprep.subr.mxu1 %v16855_v22 }
0x106c   : > { %v15814_v47 = vpop.f32.mrb[110].mxu0 }
0x106d   : > { %v13534_v41 = vpop.f32.mrb[111].mxu0 }
0x1095   : > { %v15816_v56 = vpop.f32.mrb[90].mxu1 }
0x1096   : > { %v13529_v29 = vpop.f32.mrb[91].mxu1 }
0x1099   : > { %v15818_v39 = vpop.f32.mrb[92].mxu1 }
0x109a   : > { %16868 = vst [vmem:[#allocation38_spill] sm:$0xff] %v15818_v39  ;;  %v13539_v15 = vpop.f32.mrb[93].mxu1 }
0x109d   : > { %v15820_v42 = vpop.f32.mrb[94].mxu1 }
0x109e   : > { %16869 = vst [vmem:[#allocation39_spill] sm:$0xff] %v15820_v42  ;;  %v15822_v1 = vpop.f32.mrb[112].mxu0  ;;  %v13549_v14 = vpop.f32.mrb[95].mxu1 }
0x109f   : > { %v13544_v5 = vpop.f32.mrb[113].mxu0 }
0x10a2   : > { %v15824_v26 = vpop.f32.mrb[114].mxu0 }
0x10a3   : > { %16870 = vst [vmem:[#allocation40_spill] sm:$0xff] %v15824_v26  ;;  %v13554_v61 = vpop.f32.mrb[115].mxu0 }
0x10a6   : > { %v15826_v4 = vpop.f32.mrb[116].mxu0 }
0x10a7   : > { %16871 = vst [vmem:[#allocation41_spill] sm:$0xff] %v15826_v4  ;;  %v13564_v2 = vpop.f32.mrb[117].mxu0 }
0x10ad   : > { %v8779_v10 = vpop.f32.mrb[118].mxu0 }
0x10ae   : > { %v9252_v52 = vmul.f32 0.35355338, %v8779_v10  ;;  %v13574_v63 = vpop.f32.mrb[119].mxu0 }
0x10b0   : > { %v9262_v3 = vsel %vm685_vm4, %v9252_v52, -inf }
0x10b1   : > { %9263 = vmax.xlane.f32.xlu1 %v9262_v3 }
0x10c9   : > { %v8935_v58 = vpop.f32.mrb[120].mxu0 }
0x10ca   : > { %v13584_v62 = vpop.f32.mrb[121].mxu0  ;;  %v9254_v10 = vmul.f32 0.35355338, %v8935_v58 }
0x10d1   : > { %v9091_v45 = vpop.f32.mrb[122].mxu0 }
0x10d2   : > { %v15829_v43 = vpop.f32.mrb[96].mxu1  ;;  %v13594_v16 = vpop.f32.mrb[123].mxu0 }
0x10d3   : > { %16872 = vst [vmem:[#allocation42_spill] sm:$0xff] %v15829_v43  ;;  %v13559_v12 = vpop.f32.mrb[97].mxu1  ;;  %v9256_v16 = vmul.f32 0.35355338, %v9091_v45  ;;  %v15848_v45 = vpop.permute.xlu1 %9499 }
0x10d4   : > { %v9268_v12 = vsel %vm685_vm4, %v9254_v10, -inf }
0x10d5   : > { %v9274_v58 = vsel %vm685_vm4, %v9256_v16, -inf }
0x10d6   : > { %v8701_v0 = vpop.f32.mrb[98].mxu1 }
0x10d7   : > { %v9251_v8 = vmul.f32 0.35355338, %v8701_v0  ;;  %v13569_v41 = vpop.f32.mrb[99].mxu1 }
0x10d9   : > { %v9247_v29 = vpop.f32.mrb[124].mxu0  ;;  %v9259_v15 = vsel %vm685_vm4, %v9251_v8, -inf }
0x10da   : > { %9260 = vmax.xlane.f32.xlu0 %v9259_v15  ;;  %v8857_v14 = vpop.f32.mrb[100].mxu1  ;;  %v13604_v5 = vpop.f32.mrb[125].mxu0 }
0x10db   : > { %v9253_v61 = vmul.f32 0.35355338, %v8857_v14  ;;  %v13579_v2 = vpop.f32.mrb[101].mxu1  ;;  %v15837_v14 = vmul.f32 0.35355338, %v9247_v29  ;;  %v15850_v29 = vpop.permute.xlu1 %9575 }
0x10dd   : > { %v9265_v63 = vsel %vm685_vm4, %v9253_v61, -inf }
0x10de   : > { %9266 = vmax.xlane.f32.xlu0 %v9265_v63  ;;  %v9013_v3 = vpop.f32.mrb[102].mxu1 }
0x10df   : > { %v9255_v62 = vmul.f32 0.35355338, %v9013_v3  ;;  %v13589_v4 = vpop.f32.mrb[103].mxu1  ;;  %v15852_v63 = vpop.permute.xlu1 %9727 }
0x10e0   : > { %v9280_v4 = vsel %vm685_vm4, %v15837_v14, -inf }
0x10e1   : > { %v9271_v0 = vsel %vm685_vm4, %v9255_v62, -inf }
0x10e2   : > { %9269 = vmax.xlane.f32.xlu0 %v9268_v12  ;;  %9272 = vmax.xlane.f32.xlu1 %v9271_v0  ;;  %v9169_v41 = vpop.f32.mrb[104].mxu1 }
0x10e3   : > { %v15835_v15 = vmul.f32 0.35355338, %v9169_v41  ;;  %v13599_v5 = vpop.f32.mrb[105].mxu1 }
0x10e5   : > { %v9277_v2 = vsel %vm685_vm4, %v15835_v15, -inf }
0x10e6   : > { %9275 = vmax.xlane.f32.xlu0 %v9274_v58  ;;  %9278 = vmax.xlane.f32.xlu1 %v9277_v2  ;;  %v15858_v58 = vpop.permute.xlu0 %9651 }
0x10ea   : > { %9281 = vmax.xlane.f32.xlu0 %v9280_v4 }
0x10f7   : > { %9879 = vrot.lane.b32.xlu1 %v14587_v44, %s14295_s24 }
0x1100   : > { %9803 = vrot.lane.b32.xlu0 %v14579_v38, %s14295_s24 }
0x113e   : > { %v9264_v3 = vpop.xlane.xlu1 %9263 }
0x113f   : > { %v9284_v12 = vsub.f32 %v9252_v52, %v9264_v3 }
0x1141   : > { %v9293_v0 = vmul.f32 1.442695, %v9284_v12 }
0x1143   : > { %14121 = vpow2.f32 %v9293_v0 }
0x114d   : > { %v15854_v41 = vpop.eup %14121 }
0x114e   : > { %v9310_v5 = vsel %vm685_vm4, %v15854_v41, 0.0 }
0x114f   : > { %9311 = vadd.xlane.f32.xlu0 %v9310_v5 }
0x1167   : > { %v9261_v2 = vpop.xlane.xlu0 %9260 }
0x1168   : > { %v9283_v4 = vsub.f32 %v9251_v8, %v9261_v2 }
0x116a   : > { %v9291_v43 = vmul.f32 1.442695, %v9283_v4 }
0x116b   : > { %v9267_v42 = vpop.xlane.xlu0 %9266 }
0x116c   : > { %14123 = vpow2.f32 %v9291_v43  ;;  %v9285_v26 = vsub.f32 %v9253_v61, %v9267_v42 }
0x116e   : > { %v9295_v31 = vmul.f32 1.442695, %v9285_v26 }
0x116f   : > { %v9273_v53 = vpop.xlane.xlu1 %9272  ;;  %v9270_v24 = vpop.xlane.xlu0 %9269 }
0x1170   : > { %14125 = vpow2.f32 %v9295_v31  ;;  %v9287_v52 = vsub.f32 %v9255_v62, %v9273_v53  ;;  %v9286_v3 = vsub.f32 %v9254_v10, %v9270_v24 }
0x1172   : > { %v9299_v12 = vmul.f32 1.442695, %v9287_v52  ;;  %v9297_v0 = vmul.f32 1.442695, %v9286_v3 }
0x1173   : > { %v9276_v37 = vpop.xlane.xlu0 %9275  ;;  %v9279_v43 = vpop.xlane.xlu1 %9278 }
0x1174   : > { %14127 = vpow2.f32 %v9299_v12  ;;  %v9288_v39 = vsub.f32 %v9256_v16, %v9276_v37  ;;  %v9289_v61 = vsub.f32 %v15835_v15, %v9279_v43 }
0x1175   : > { %14129 = vpow2.f32 %v9297_v0 }
0x1176   : > { %v15860_v5 = vpop.eup %14123  ;;  %v9301_v7 = vmul.f32 1.442695, %v9288_v39  ;;  %v9303_v62 = vmul.f32 1.442695, %v9289_v61 }
0x1177   : > { %v9307_v8 = vsel %vm685_vm4, %v15860_v5, 0.0  ;;  %v9282_v10 = vpop.xlane.xlu0 %9281 }
0x1178   : > { %9308 = vadd.xlane.f32.xlu1 %v9307_v8  ;;  %14131 = vpow2.f32 %v9301_v7  ;;  %v9290_v16 = vsub.f32 %v15837_v14, %v9282_v10 }
0x1179   : > { %14133 = vpow2.f32 %v9303_v62 }
0x117a   : > { %v15864_v42 = vpop.eup %14125  ;;  %v9305_v2 = vmul.f32 1.442695, %v9290_v16 }
0x117b   : > { %v9313_v53 = vsel %vm685_vm4, %v15864_v42, 0.0  ;;  %v9804_v15 = vpop.permute.xlu0 %9803 }
0x117c   : > { %9314 = vadd.xlane.f32.xlu1 %v9313_v53  ;;  %14135 = vpow2.f32 %v9305_v2 }
0x117e   : > { %v15868_v24 = vpop.eup %14127 }
0x117f   : > { %v15870_v31 = vpop.eup %14129  ;;  %v9319_v37 = vsel %vm685_vm4, %v15868_v24, 0.0 }
0x1180   : > { %9320 = vadd.xlane.f32.xlu1 %v9319_v37  ;;  %v9316_v39 = vsel %vm685_vm4, %v15870_v31, 0.0 }
0x1181   : > { %9317 = vadd.xlane.f32.xlu0 %v9316_v39 }
0x1182   : > { %v15876_v26 = vpop.eup %14131 }
0x1183   : > { %v9322_v7 = vsel %vm685_vm4, %v15876_v26, 0.0  ;;  %v15886_v4 = vpop.eup %14133 }
0x1184   : > { %v9325_v52 = vsel %vm685_vm4, %v15886_v4, 0.0 }
0x1185   : > { %9323 = vadd.xlane.f32.xlu0 %v9322_v7 }
0x1186   : > { %v15890_v3 = vpop.eup %14135 }
0x1187   : > { %v9328_v12 = vsel %vm685_vm4, %v15890_v3, 0.0 }
0x1191   : > { %10035 = vrot.lane.b32.xlu1 %v14548_v17, %s14296_s26 }
0x119b   : > { %9957 = vrot.lane.b32.xlu0 %v14541_v11, %s14296_s26 }
0x11b5   : > { %9326 = vadd.xlane.f32.xlu1 %v9325_v52 }
0x11ba   : > { %9329 = vadd.xlane.f32.xlu0 %v9328_v12 }
0x11c6   : > { %10033 = vrot.lane.b32.xlu1 %v14548_v17, %s14297_s28 }
0x11ca   : > { %10191 = vrot.lane.b32.xlu1 %v14569_v30, %s14296_s26 }
0x11ce   : > { %10189 = vrot.lane.b32.xlu1 %v14569_v30, %s14297_s28 }
0x11d0   : > { %9955 = vrot.lane.b32.xlu0 %v14541_v11, %s14297_s28 }
0x11d2   : > { %10347 = vrot.lane.b32.xlu1 %v14575_v34, %s14296_s26 }
0x11d4   : > { %10113 = vrot.lane.b32.xlu0 %v14557_v23, %s14296_s26 }
0x11d6   : > { %10345 = vrot.lane.b32.xlu1 %v14575_v34, %s14297_s28 }
0x11d8   : > { %10111 = vrot.lane.b32.xlu0 %v14557_v23, %s14297_s28 }
0x11da   : > { %10503 = vrot.lane.b32.xlu1 %v14585_v40, %s14296_s26 }
0x11dc   : > { %v9312_v17 = vpop.xlane.xlu0 %9311  ;;  %10269 = vrot.lane.b32.xlu0 %v14559_v25, %s14296_s26 }
0x11dd   : > { %14137 = vrcp.f32 %v9312_v17 }
0x11de   : > { %10501 = vrot.lane.b32.xlu1 %v14585_v40, %s14297_s28 }
0x11e0   : > { %10267 = vrot.lane.b32.xlu0 %v14559_v25, %s14297_s28  ;;  %v9880_v25 = vpop.permute.xlu1 %9879 }
0x11e2   : > { %10675 = vrot.lane.b32.xlu1 %v14543_v13, %s14297_s28 }
0x11e4   : > { %10425 = vrot.lane.b32.xlu0 %v14577_v36, %s14296_s26 }
0x11e7   : > { %v14138_v11 = vpop.eup %14137 }
0x11e8   : > { %10423 = vrot.lane.b32.xlu0 %v14577_v36, %s14297_s28  ;;  %v9340_v23 = vmul.f32 %v14138_v11, %v15854_v41 }
0x11ea   : > { %13613 = vmatmul.mubr.msk.f32.vlgmr.msra.gmra.mrb[126].mxu0 %vm685_vm4, %v9340_v23 }
0x11eb   : > { %13621 = vmatpush3.msra.mxu0 %v15850_v29  ;;  %13622 = vmatprep.mubr.msk.f32.mxu0 %vm14282_vm3, %v16855_v22 }
0x11ec   : > { %13630 = vmatprep.subr.mxu0 %v16855_v22 }
0x1205   : > { %v9309_v13 = vpop.xlane.xlu1 %9308 }
0x1206   : > { %14139 = vrcp.f32 %v9309_v13 }
0x1209   : > { %v9315_v30 = vpop.xlane.xlu1 %9314 }
0x120a   : > { %14141 = vrcp.f32 %v9315_v30 }
0x120d   : > { %v9321_v34 = vpop.xlane.xlu1 %9320 }
0x120e   : > { %14143 = vrcp.f32 %v9321_v34  ;;  %v9318_v40 = vpop.xlane.xlu0 %9317 }
0x120f   : > { %14145 = vrcp.f32 %v9318_v40 }
0x1210   : > { %v14140_v36 = vpop.eup %14139 }
0x1211   : > { %v9339_v14 = vmul.f32 %v14140_v36, %v15860_v5 }
0x1212   : > { %v9324_v41 = vpop.xlane.xlu0 %9323 }
0x1213   : > { %14147 = vrcp.f32 %v9324_v41  ;;  %13608 = vmatmul.mubr.msk.f32.vlgmr.msra.gmra.mrb[106].mxu1 %vm685_vm4, %v9339_v14 }
0x1214   : > { %v14142_v29 = vpop.eup %14141  ;;  %13616 = vmatpush3.msra.mxu1 %v15848_v45  ;;  %13617 = vmatprep.mubr.msk.f32.mxu1 %vm14282_vm3, %v16855_v22 }
0x1215   : > { %13625 = vmatprep.subr.mxu1 %v16855_v22  ;;  %v9341_v0 = vmul.f32 %v14142_v29, %v15864_v42 }
0x1217   : > { %13618 = vmatmul.mubr.msk.f32.vlgmr.msra.gmra.mrb[108].mxu1 %vm685_vm4, %v9341_v0 }
0x1218   : > { %v14144_v8 = vpop.eup %14143  ;;  %13626 = vmatpush3.msra.mxu1 %v15858_v58  ;;  %13627 = vmatprep.mubr.msk.f32.mxu1 %vm14282_vm3, %v16855_v22 }
0x1219   : > { %v14146_v5 = vpop.eup %14145  ;;  %13635 = vmatprep.subr.mxu1 %v16855_v22  ;;  %v9343_v45 = vmul.f32 %v14144_v8, %v15868_v24 }
0x121a   : > { %v9342_v53 = vmul.f32 %v14146_v5, %v15870_v31  ;;  %v9958_v31 = vpop.permute.xlu0 %9957 }
0x121b   : > { %13628 = vmatmul.mubr.msk.f32.vlgmr.msra.gmra.mrb[110].mxu1 %vm685_vm4, %v9343_v45 }
0x121c   : > { %13623 = vmatmul.mubr.msk.f32.vlgmr.msra.gmra.mrb[128].mxu0 %vm685_vm4, %v9342_v53  ;;  %13636 = vmatpush3.msra.mxu1 %v9804_v15 }
0x121d   : > { %v14148_v42 = vpop.eup %14147  ;;  %13631 = vmatpush3.msra.mxu0 %v15852_v63  ;;  %13632 = vmatprep.mubr.msk.f32.mxu0 %vm14282_vm3, %v16855_v22  ;;  %v10036_v63 = vpop.permute.xlu1 %10035 }
0x121e   : > { %13640 = vmatprep.subr.mxu0 %v16855_v22  ;;  %v9344_v58 = vmul.f32 %v14148_v42, %v15876_v26  ;;  %13637 = vmatprep.mubr.msk.f32.mxu1 %vm14282_vm3, %v16855_v22 }
0x121f   : > { %13645 = vmatprep.subr.mxu1 %v16855_v22 }
0x1220   : > { %13633 = vmatmul.mubr.msk.f32.vlgmr.msra.gmra.mrb[130].mxu0 %vm685_vm4, %v9344_v58 }
0x1221   : > { %13641 = vmatpush3.msra.mxu0 %v9880_v25  ;;  %13642 = vmatprep.mubr.msk.f32.mxu0 %vm14282_vm3, %v16855_v22 }
0x1222   : > { %13650 = vmatprep.subr.mxu0 %v16855_v22 }
0x1242   : > { %v9327_v24 = vpop.xlane.xlu1 %9326 }
0x1243   : > { %14149 = vrcp.f32 %v9327_v24 }
0x1246   : > { %v10034_v37 = vpop.permute.xlu1 %10033 }
0x1247   : > { %v9330_v39 = vpop.xlane.xlu0 %9329 }
0x1248   : > { %14151 = vrcp.f32 %v9330_v39 }
0x124a   : > { %v10192_v26 = vpop.permute.xlu1 %10191 }
0x124b   : > { %v9956_v7 = vpop.permute.xlu0 %9955 }
0x124d   : > { %v14150_v43 = vpop.eup %14149 }
0x124e   : > { %v10190_v61 = vpop.permute.xlu1 %10189  ;;  %v9345_v10 = vmul.f32 %v14150_v43, %v15886_v4 }
0x124f   : > { %v10114_v62 = vpop.permute.xlu0 %10113 }
0x1250   : > { %13638 = vmatmul.mubr.msk.f32.vlgmr.msra.gmra.mrb[112].mxu1 %vm685_vm4, %v9345_v10 }
0x1251   : > { %13646 = vmatpush3.xpose.msk.msra.mxu1 %vm685_vm4, %v9958_v31  ;;  %13647 = vmatprep.mubr.msk.f32.mxu1 %vm14282_vm3, %v16855_v22 }
0x1252   : > { %v14152_v16 = vpop.eup %14151  ;;  %v10348_v2 = vpop.permute.xlu1 %10347  ;;  %13655 = vmatprep.subr.mxu1 %v16855_v22 }
0x1253   : > { %v10112_v52 = vpop.permute.xlu0 %10111  ;;  %v9346_v12 = vmul.f32 %v14152_v16, %v15890_v3 }
0x1254   : > { %13648 = vmatmul.mubr.msk.f32.vlgmr.msra.gmra.mrb[114].mxu1 %vm685_vm4, %v9956_v7 }
0x1255   : > { %13643 = vmatmul.mubr.msk.f32.vlgmr.msra.gmra.mrb[132].mxu0 %vm685_vm4, %v9346_v12  ;;  %13656 = vmatpush3.xpose.msk.msra.mxu1 %vm685_vm4, %v10114_v62 }
0x1256   : > { %13651 = vmatpush3.xpose.msk.msra.mxu0 %vm685_vm4, %v10036_v63  ;;  %v10346_v4 = vpop.permute.xlu1 %10345  ;;  %13652 = vmatprep.mubr.msk.f32.mxu0 %vm14282_vm3, %v16855_v22 }
0x1257   : > { %v10270_v15 = vpop.permute.xlu0 %10269  ;;  %13657 = vmatprep.mubr.msk.f32.mxu1 %vm14282_vm3, %v16855_v22  ;;  %13660 = vmatprep.subr.mxu0 %v16855_v22 }
0x1258   : > { %13665 = vmatprep.subr.mxu1 %v16855_v22  ;;  %13658 = vmatmul.mubr.msk.f32.vlgmr.msra.gmra.mrb[116].mxu1 %vm685_vm4, %v10112_v52 }
0x1259   : > { %13653 = vmatmul.mubr.msk.f32.vlgmr.msra.gmra.mrb[134].mxu0 %vm685_vm4, %v10034_v37  ;;  %13666 = vmatpush3.xpose.msk.msra.mxu1 %vm685_vm4, %v10270_v15 }
0x125a   : > { %13661 = vmatpush3.xpose.msk.msra.mxu0 %vm685_vm4, %v10192_v26  ;;  %v10504_v3 = vpop.permute.xlu1 %10503  ;;  %13662 = vmatprep.mubr.msk.f32.mxu0 %vm14282_vm3, %v16855_v22 }
0x125b   : > { %v10268_v17 = vpop.permute.xlu0 %10267  ;;  %13667 = vmatprep.mubr.msk.f32.mxu1 %vm14282_vm3, %v16855_v22  ;;  %13670 = vmatprep.subr.mxu0 %v16855_v22 }
0x125c   : > { %13668 = vmatmul.mubr.msk.f32.vlgmr.msra.gmra.mrb[118].mxu1 %vm685_vm4, %v10268_v17  ;;  %13675 = vmatprep.subr.mxu1 %v16855_v22 }
0x125d   : > { %13663 = vmatmul.mubr.msk.f32.vlgmr.msra.gmra.mrb[136].mxu0 %vm685_vm4, %v10190_v61  ;;  %13677 = vmatprep.mubr.msk.f32.mxu1 %vm14282_vm3, %v16855_v22 }
0x125e   : > { %13671 = vmatpush3.xpose.msk.msra.mxu0 %vm685_vm4, %v10348_v2  ;;  %v10502_v11 = vpop.permute.xlu1 %10501  ;;  %13672 = vmatprep.mubr.msk.f32.mxu0 %vm14282_vm3, %v16855_v22 }
0x125f   : > { %v10426_v23 = vpop.permute.xlu0 %10425  ;;  %13680 = vmatprep.subr.mxu0 %v16855_v22 }
0x1260   : > { %13676 = vmatpush3.xpose.msk.msra.mxu1 %vm685_vm4, %v10426_v23 }
0x1261   : > { %13673 = vmatmul.mubr.msk.f32.vlgmr.msra.gmra.mrb[138].mxu0 %vm685_vm4, %v10346_v4  ;;  %13685 = vmatprep.subr.mxu1 %v16855_v22 }
0x1262   : > { %13681 = vmatpush3.xpose.msk.msra.mxu0 %vm685_vm4, %v10504_v3  ;;  %v10676_v25 = vpop.permute.xlu1 %10675  ;;  %13682 = vmatprep.mubr.msk.f32.mxu0 %vm14282_vm3, %v16855_v22 }
0x1263   : > { %v10424_v13 = vpop.permute.xlu0 %10423  ;;  %13690 = vmatprep.subr.mxu0 %v16855_v22 }
0x1264   : > { %13678 = vmatmul.mubr.msk.f32.vlgmr.msra.gmra.mrb[120].mxu1 %vm685_vm4, %v10424_v13 }
0x1265   : > { %13686 = vmatpush3.msra.mxu1 %v10676_v25  ;;  %13683 = vmatmul.mubr.msk.f32.vlgmr.msra.gmra.mrb[140].mxu0 %vm685_vm4, %v10502_v11 }
0x1266   : > { %13687 = vmatprep.mubr.msk.f32.mxu1 %vm14282_vm3, %v16855_v22  ;;  %13695 = vmatprep.subr.mxu1 %v16855_v22 }
0x1267   : > { %13692 = vmatprep.mubr.msk.f32.mxu0 %vm14282_vm3, %v16855_v22 }
0x12bd   : > { %v16007_v30 = vpop.f32.mrb[126].mxu0 }
0x12be   : > { %v13614_v34 = vpop.f32.mrb[127].mxu0 }
0x12e6   : > { %v16009_v40 = vpop.f32.mrb[106].mxu1 }
0x12e7   : > { %v13609_v36 = vpop.f32.mrb[107].mxu1 }
0x12ea   : > { %v16011_v14 = vpop.f32.mrb[108].mxu1 }
0x12eb   : > { %v13619_v41 = vpop.f32.mrb[109].mxu1 }
0x12ee   : > { %v16013_v29 = vpop.f32.mrb[110].mxu1 }
0x12ef   : > { %v16015_v0 = vpop.f32.mrb[128].mxu0  ;;  %v13629_v8 = vpop.f32.mrb[111].mxu1 }
0x12f0   : > { %v13624_v5 = vpop.f32.mrb[129].mxu0 }
0x12f3   : > { %v16017_v45 = vpop.f32.mrb[130].mxu0 }
0x12f4   : > { %v13634_v53 = vpop.f32.mrb[131].mxu0 }
0x1323   : > { %v16019_v42 = vpop.f32.mrb[112].mxu1 }
0x1324   : > { %v13639_v58 = vpop.f32.mrb[113].mxu1 }
0x1327   : > { %v10029_v63 = vpop.f32.mrb[114].mxu1 }
0x1328   : > { %v16021_v24 = vpop.f32.mrb[132].mxu0  ;;  %v10579_v31 = vmul.f32 0.35355338, %v10029_v63  ;;  %v13649_v37 = vpop.f32.mrb[115].mxu1 }
0x1329   : > { %v13644_v39 = vpop.f32.mrb[133].mxu0 }
0x132a   : > { %v10587_v26 = vsel %vm685_vm4, %v10579_v31, -inf }
0x132b   : > { %10588 = vmax.xlane.f32.xlu0 %v10587_v26  ;;  %v10185_v7 = vpop.f32.mrb[116].mxu1 }
0x132c   : > { %v10107_v43 = vpop.f32.mrb[134].mxu0  ;;  %v10581_v61 = vmul.f32 0.35355338, %v10185_v7  ;;  %v13659_v10 = vpop.f32.mrb[117].mxu1 }
0x132d   : > { %v10580_v62 = vmul.f32 0.35355338, %v10107_v43  ;;  %v13654_v16 = vpop.f32.mrb[135].mxu0 }
0x132e   : > { %v10593_v2 = vsel %vm685_vm4, %v10581_v61, -inf }
0x132f   : > { %v10590_v52 = vsel %vm685_vm4, %v10580_v62, -inf  ;;  %10594 = vmax.xlane.f32.xlu0 %v10593_v2  ;;  %v10341_v12 = vpop.f32.mrb[118].mxu1 }
0x1330   : > { %10591 = vmax.xlane.f32.xlu1 %v10590_v52  ;;  %v10263_v4 = vpop.f32.mrb[136].mxu0  ;;  %v16026_v15 = vmul.f32 0.35355338, %v10341_v12  ;;  %v13669_v3 = vpop.f32.mrb[119].mxu1 }
0x1331   : > { %v10582_v17 = vmul.f32 0.35355338, %v10263_v4  ;;  %v13664_v11 = vpop.f32.mrb[137].mxu0 }
0x1332   : > { %v10599_v23 = vsel %vm685_vm4, %v16026_v15, -inf }
0x1333   : > { %v10596_v25 = vsel %vm685_vm4, %v10582_v17, -inf }
0x1334   : > { %v10419_v13 = vpop.f32.mrb[138].mxu0  ;;  %10597 = vmax.xlane.f32.xlu0 %v10596_v25  ;;  %10600 = vmax.xlane.f32.xlu1 %v10599_v23 }
0x1335   : > { %v10584_v34 = vmul.f32 0.35355338, %v10419_v13  ;;  %v13674_v36 = vpop.f32.mrb[139].mxu0 }
0x1337   : > { %v10497_v41 = vpop.f32.mrb[120].mxu1  ;;  %v10602_v8 = vsel %vm685_vm4, %v10584_v34, -inf }
0x1338   : > { %v10585_v5 = vmul.f32 0.35355338, %v10497_v41  ;;  %v10575_v53 = vpop.f32.mrb[140].mxu0  ;;  %10603 = vmax.xlane.f32.xlu0 %v10602_v8  ;;  %v13679_v58 = vpop.f32.mrb[121].mxu1 }
0x1339   : > { %v10586_v63 = vmul.f32 0.35355338, %v10575_v53  ;;  %v13684_v37 = vpop.f32.mrb[141].mxu0 }
0x133a   : > { %v10605_v39 = vsel %vm685_vm4, %v10585_v5, -inf }
0x133b   : > { %10606 = vmax.xlane.f32.xlu1 %v10605_v39  ;;  %v10608_v26 = vsel %vm685_vm4, %v10586_v63, -inf }
0x133c   : > { %10609 = vmax.xlane.f32.xlu0 %v10608_v26 }
0x134c   : > { %10827 = vrot.lane.b32.xlu1 %v14561_v27, %s14297_s28 }
0x1350   : > { %10903 = vrot.lane.b32.xlu1 %v14550_v19, %s14297_s28 }
0x1352   : > { %10751 = vrot.lane.b32.xlu0 %v14553_v20, %s14297_s28 }
0x13b8   : > { %v10589_v7 = vpop.xlane.xlu0 %10588 }
0x13b9   : > { %v10611_v43 = vsub.f32 %v10579_v31, %v10589_v7 }
0x13bb   : > { %v10619_v10 = vmul.f32 1.442695, %v10611_v43 }
0x13bc   : > { %v10595_v16 = vpop.xlane.xlu0 %10594 }
0x13bd   : > { %14153 = vpow2.f32 %v10619_v10  ;;  %v10592_v2 = vpop.xlane.xlu1 %10591  ;;  %v10613_v52 = vsub.f32 %v10581_v61, %v10595_v16 }
0x13be   : > { %v10612_v12 = vsub.f32 %v10580_v62, %v10592_v2 }
0x13bf   : > { %v10623_v4 = vmul.f32 1.442695, %v10613_v52 }
0x13c0   : > { %v10621_v3 = vmul.f32 1.442695, %v10612_v12 }
0x13c1   : > { %14155 = vpow2.f32 %v10623_v4  ;;  %v10598_v11 = vpop.xlane.xlu0 %10597  ;;  %v10601_v53 = vpop.xlane.xlu1 %10600 }
0x13c2   : > { %14157 = vpow2.f32 %v10621_v3  ;;  %v10614_v27 = vsub.f32 %v10582_v17, %v10598_v11  ;;  %v10615_v58 = vsub.f32 %v16026_v15, %v10601_v53  ;;  %v16886_v3 = vld [vmem:[#allocation32_spill] sm:$0xff] }
0x13c4   : > { %v10625_v23 = vmul.f32 1.442695, %v10614_v27  ;;  %v10627_v39 = vmul.f32 1.442695, %v10615_v58 }
0x13c5   : > { %v10604_v25 = vpop.xlane.xlu0 %10603 }
0x13c6   : > { %14159 = vpow2.f32 %v10625_v23  ;;  %v10616_v7 = vsub.f32 %v10584_v34, %v10604_v25  ;;  %v16888_v23 = vld [vmem:[#allocation29_spill] sm:$0xff] }
0x13c7   : > { %v16040_v19 = vpop.eup %14153  ;;  %14161 = vpow2.f32 %v10627_v39  ;;  %v16889_v25 = vld [vmem:[#allocation33_spill] sm:$0xff] }
0x13c8   : > { %v10635_v20 = vsel %vm685_vm4, %v16040_v19, 0.0  ;;  %v10607_v37 = vpop.xlane.xlu1 %10606  ;;  %v10629_v10 = vmul.f32 1.442695, %v10616_v7 }
0x13c9   : > { %v10610_v31 = vpop.xlane.xlu0 %10609  ;;  %10636 = vadd.xlane.f32.xlu1 %v10635_v20  ;;  %v10617_v26 = vsub.f32 %v10585_v5, %v10607_v37 }
0x13ca   : > { %v10618_v16 = vsub.f32 %v10586_v63, %v10610_v31 }
0x13cb   : > { %v16044_v13 = vpop.eup %14155  ;;  %v10631_v43 = vmul.f32 1.442695, %v10617_v26 }
0x13cc   : > { %v16046_v61 = vpop.eup %14157  ;;  %v10641_v62 = vsel %vm685_vm4, %v16044_v13, 0.0  ;;  %v10633_v2 = vmul.f32 1.442695, %v10618_v16  ;;  %v16891_v16 = vld [vmem:[#allocation14_spill] sm:$0xff] }
0x13cd   : > { %v10752_v36 = vpop.permute.xlu0 %10751  ;;  %v10638_v17 = vsel %vm685_vm4, %v16046_v61, 0.0  ;;  %10642 = vadd.xlane.f32.xlu1 %v10641_v62  ;;  %14163 = vpow2.f32 %v10631_v43 }
0x13ce   : > { %10639 = vadd.xlane.f32.xlu0 %v10638_v17  ;;  %13691 = vmatpush3.msra.mxu0 %v10752_v36  ;;  %14165 = vpow2.f32 %v10629_v10 }
0x13cf   : > { %13700 = vmatprep.subr.mxu0 %v16855_v22  ;;  %14167 = vpow2.f32 %v10633_v2 }
0x13d0   : > { %v16053_v41 = vpop.eup %14159 }
0x13d1   : > { %v10644_v8 = vsel %vm685_vm4, %v16053_v41, 0.0  ;;  %v16062_v52 = vpop.eup %14161 }
0x13d2   : > { %10645 = vadd.xlane.f32.xlu0 %v10644_v8 }
0x13de   : > { %11055 = vrot.lane.b32.xlu1 %v14571_v32, %s14297_s28  ;;  %v10647_v32 = vsel %vm685_vm4, %v16062_v52, 0.0 }
0x13e8   : > { %10979 = vrot.lane.b32.xlu0 %v14563_v28, %s14297_s28  ;;  %v16066_v28 = vpop.eup %14163 }
0x13e9   : > { %v16068_v15 = vpop.eup %14165  ;;  %v10653_v34 = vsel %vm685_vm4, %v16066_v28, 0.0 }
0x13ea   : > { %v10650_v5 = vsel %vm685_vm4, %v16068_v15, 0.0  ;;  %v16074_v63 = vpop.eup %14167 }
0x13eb   : > { %v10656_v12 = vsel %vm685_vm4, %v16074_v63, 0.0 }
0x1402   : > { %10648 = vadd.xlane.f32.xlu1 %v10647_v32 }
0x1406   : > { %10654 = vadd.xlane.f32.xlu1 %v10653_v34 }
0x1407   : > { %10651 = vadd.xlane.f32.xlu0 %v10650_v5 }
0x140b   : > { %10657 = vadd.xlane.f32.xlu0 %v10656_v12 }
0x1417   : > { %11207 = vrot.lane.b32.xlu1 %v14587_v44, %s14297_s28  ;;  %v10828_v44 = vpop.permute.xlu1 %10827 }
0x141b   : > { %11293 = vrot.lane.b32.xlu1 %v15014_v9, %s14296_s26  ;;  %v16875_v9 = vld [vmem:[#allocation27_spill] sm:$0xff] }
0x141f   : > { %11325 = vrot.lane.b32.xlu1 %v15209_v35, %s14294_s29  ;;  %v16877_v35 = vld [vmem:[#allocation22_spill] sm:$0xff] }
0x1421   : > { %11131 = vrot.lane.b32.xlu0 %v14579_v38, %s14297_s28  ;;  %v16873_v38 = vld [vmem:[#allocation23_spill] sm:$0xff] }
0x1423   : > { %11357 = vrot.lane.b32.xlu1 %v15406_v46, %s14292_s22 }
0x1425   : > { %11291 = vrot.lane.b32.xlu0 %v15012_v48, %s14296_s26  ;;  %v16874_v48 = vld [vmem:[#allocation38_spill] sm:$0xff] }
0x1427   : > { %11389 = vrot.lane.b32.xlu1 %v15603_v54, %s14290_s16 }
0x1429   : > { %11323 = vrot.lane.b32.xlu0 %v15211_v51, %s14294_s29 }
0x142b   : > { %11421 = vrot.lane.b32.xlu1 %v15814_v47, %s16830_s17  ;;  %v16883_v47 = vld [vmem:[#allocation24_spill] sm:$0xff] }
0x142d   : > { %11355 = vrot.lane.b32.xlu0 %v15408_v55, %s14292_s22 }
0x142f   : > { %11453 = vrot.lane.b32.xlu1 %v16007_v30, %s16828_s27 }
0x1431   : > { %11387 = vrot.lane.b32.xlu0 %v15605_v49, %s14290_s16 }
0x1433   : > { %11297 = vrot.lane.b32.xlu1 %v15020_v59, %s14296_s26  ;;  %v16876_v59 = vld [vmem:[#allocation31_spill] sm:$0xff] }
0x1435   : > { %11419 = vrot.lane.b32.xlu0 %v15816_v56, %s16830_s17 }
0x1437   : > { %11329 = vrot.lane.b32.xlu1 %v15217_v60, %s14294_s29  ;;  %v16879_v60 = vld [vmem:[#allocation26_spill] sm:$0xff] }
0x1439   : > { %11451 = vrot.lane.b32.xlu0 %v16009_v40, %s16828_s27  ;;  %v16884_v40 = vld [vmem:[#allocation39_spill] sm:$0xff] }
0x143b   : > { %11361 = vrot.lane.b32.xlu1 %v15414_v18, %s14292_s22  ;;  %v16881_v18 = vld [vmem:[#allocation30_spill] sm:$0xff] }
0x143d   : > { %11295 = vrot.lane.b32.xlu0 %v15016_v6, %s14296_s26  ;;  %v10904_v6 = vpop.permute.xlu1 %10903 }
0x143f   : > { %11393 = vrot.lane.b32.xlu1 %v15611_v57, %s14290_s16  ;;  %v16882_v57 = vld [vmem:[#allocation34_spill] sm:$0xff] }
0x1441   : > { %11327 = vrot.lane.b32.xlu0 %v15213_v33, %s14294_s29  ;;  %v16878_v33 = vld [vmem:[#allocation35_spill] sm:$0xff] }
0x1443   : > { %11425 = vrot.lane.b32.xlu1 %v15822_v1, %s16830_s17 }
0x1445   : > { %11359 = vrot.lane.b32.xlu0 %v15410_v50, %s14292_s22  ;;  %v16880_v50 = vld [vmem:[#allocation40_spill] sm:$0xff] }
0x1447   : > { %11457 = vrot.lane.b32.xlu1 %v16015_v0, %s16828_s27 }
0x1449   : > { %11391 = vrot.lane.b32.xlu0 %v15607_v21, %s14290_s16 }
0x144b   : > { %11301 = vrot.lane.b32.xlu1 %v16873_v38, %s14296_s26 }
0x144d   : > { %11423 = vrot.lane.b32.xlu0 %v16874_v48, %s16830_s17 }
0x144f   : > { %11333 = vrot.lane.b32.xlu1 %v16875_v9, %s14294_s29 }
0x1451   : > { %11455 = vrot.lane.b32.xlu0 %v16011_v14, %s16828_s27  ;;  %v16885_v14 = vld [vmem:[#allocation28_spill] sm:$0xff] }
0x1453   : > { %11365 = vrot.lane.b32.xlu1 %v16876_v59, %s14292_s22 }
0x1455   : > { %11299 = vrot.lane.b32.xlu0 %v16877_v35, %s14296_s26 }
0x1456   : > { %v10637_v51 = vpop.xlane.xlu1 %10636 }
0x1457   : > { %14169 = vrcp.f32 %v10637_v51  ;;  %11397 = vrot.lane.b32.xlu1 %v16878_v33, %s14290_s16 }
0x1459   : > { %11331 = vrot.lane.b32.xlu0 %v16879_v60, %s14294_s29 }
0x145a   : > { %v10643_v46 = vpop.xlane.xlu1 %10642 }
0x145b   : > { %14171 = vrcp.f32 %v10643_v46  ;;  %v10640_v55 = vpop.xlane.xlu0 %10639  ;;  %11429 = vrot.lane.b32.xlu1 %v16880_v50, %s16830_s17 }
0x145c   : > { %14173 = vrcp.f32 %v10640_v55 }
0x145d   : > { %11363 = vrot.lane.b32.xlu0 %v16881_v18, %s14292_s22 }
0x145e   : > { %v11056_v27 = vpop.permute.xlu1 %11055 }
0x145f   : > { %11461 = vrot.lane.b32.xlu1 %v16017_v45, %s16828_s27  ;;  %v10646_v54 = vpop.xlane.xlu0 %10645 }
0x1460   : > { %14175 = vrcp.f32 %v10646_v54 }
0x1461   : > { %v14170_v49 = vpop.eup %14169  ;;  %11395 = vrot.lane.b32.xlu0 %v16882_v57, %s14290_s16 }
0x1462   : > { %v10667_v21 = vmul.f32 %v14170_v49, %v16040_v19 }
0x1463   : > { %11305 = vrot.lane.b32.xlu1 %v16883_v47, %s14296_s26  ;;  %v10980_v45 = vpop.permute.xlu0 %10979 }
0x1464   : > { %13688 = vmatmul.mubr.msk.f32.vlgmr.msra.gmra.mrb[122].mxu1 %vm685_vm4, %v10667_v21 }
0x1465   : > { %v14172_v56 = vpop.eup %14171  ;;  %13696 = vmatpush3.msra.mxu1 %v10828_v44  ;;  %13697 = vmatprep.mubr.msk.f32.mxu1 %vm14282_vm3, %v16855_v22 }
0x1466   : > { %v14174_v1 = vpop.eup %14173  ;;  %v10669_v30 = vmul.f32 %v14172_v56, %v16044_v13  ;;  %11427 = vrot.lane.b32.xlu0 %v16884_v40, %s16830_s17  ;;  %13705 = vmatprep.subr.mxu1 %v16855_v22  ;;  %v16892_v40 = vld [vmem:[#allocation19_spill] sm:$0xff]  ;;  %s16901_s17 = smov 48  }
0x1467   : > { %11337 = vrot.lane.b32.xlu1 %v16885_v14, %s14294_s29  ;;  %v10668_v0 = vmul.f32 %v14174_v1, %v16046_v61 }
0x1468   : > { %13698 = vmatmul.mubr.msk.f32.vlgmr.msra.gmra.mrb[124].mxu1 %vm685_vm4, %v10669_v30 }
0x1469   : > { %13693 = vmatmul.mubr.msk.f32.vlgmr.msra.gmra.mrb[142].mxu0 %vm685_vm4, %v10668_v0  ;;  %13706 = vmatpush3.msra.mxu1 %v10980_v45 }
0x146a   : > { %11459 = vrot.lane.b32.xlu0 %v16013_v29, %s16828_s27  ;;  %13701 = vmatpush3.msra.mxu0 %v10904_v6  ;;  %v14176_v4 = vpop.eup %14175  ;;  %v16887_v29 = vld [vmem:[#allocation25_spill] sm:$0xff]  ;;  %s16898_s27 = smov 40  }
0x146b   : > { %11369 = vrot.lane.b32.xlu1 %v16886_v3, %s14292_s22  ;;  %13702 = vmatprep.mubr.msk.f32.mxu0 %vm14282_vm3, %v16855_v22  ;;  %v10670_v11 = vmul.f32 %v14176_v4, %v16053_v41  ;;  %v16890_v41 = vld [vmem:[#allocation15_spill] sm:$0xff] }
0x146c   : > { %13710 = vmatprep.subr.mxu0 %v16855_v22  ;;  %13707 = vmatprep.mubr.msk.f32.mxu1 %vm14282_vm3, %v16855_v22 }
0x146d   : > { %13715 = vmatprep.subr.mxu1 %v16855_v22  ;;  %13703 = vmatmul.mubr.msk.f32.vlgmr.msra.gmra.mrb[144].mxu0 %vm685_vm4, %v10670_v11  ;;  %v16893_v11 = vld [vmem:[#allocation18_spill] sm:$0xff] }
0x146e   : > { %11303 = vrot.lane.b32.xlu0 %v16887_v29, %s14296_s26  ;;  %13711 = vmatpush3.msra.mxu0 %v11056_v27 }
0x146f   : > { %13712 = vmatprep.mubr.msk.f32.mxu0 %vm14282_vm3, %v16855_v22  ;;  %13720 = vmatprep.subr.mxu0 %v16855_v22 }
0x1472   : > { %11335 = vrot.lane.b32.xlu0 %v16888_v23, %s14294_s29 }
0x1476   : > { %11367 = vrot.lane.b32.xlu0 %v16889_v25, %s14292_s22  ;;  %s340_s22 = sand.u32 1, %s14271_s10  }
0x1477   : > { %s12488_s23 = sshll.u32 %s340_s22, 3  ;;  %s12400_s14 = scalar_lea.sflag [#allocation3], %s340_s22 }
0x148f   : > { %v10649_v19 = vpop.xlane.xlu1 %10648 }
0x1490   : > { %14177 = vrcp.f32 %v10649_v19 }
0x1493   : > { %v10655_v20 = vpop.xlane.xlu1 %10654 }
0x1494   : > { %14179 = vrcp.f32 %v10655_v20  ;;  %v10652_v31 = vpop.xlane.xlu0 %10651 }
0x1495   : > { %14181 = vrcp.f32 %v10652_v31 }
0x1497   : > { %v11208_v13 = vpop.permute.xlu1 %11207 }
0x1498   : > { %v10658_v61 = vpop.xlane.xlu0 %10657 }
0x1499   : > { %14183 = vrcp.f32 %v10658_v61 }
0x149a   : > { %v14178_v62 = vpop.eup %14177 }
0x149b   : > { %v10671_v36 = vmul.f32 %v14178_v62, %v16062_v52  ;;  %v11294_v17 = vpop.permute.xlu1 %11293 }
0x149c   : > { %v11508_v8 = vsel %vm685_vm4, %v16890_v41, %v11294_v17  ;;  %v11132_v53 = vpop.permute.xlu0 %11131 }
0x149d   : > { %13708 = vmatmul.mubr.msk.f32.vlgmr.msra.gmra.mrb[126].mxu1 %vm685_vm4, %v10671_v36 }
0x149e   : > { %v14180_v58 = vpop.eup %14179  ;;  %13716 = vmatpush3.msra.mxu1 %v11132_v53  ;;  %13717 = vmatprep.mubr.msk.f32.mxu1 %vm14282_vm3, %v16855_v22 }
0x149f   : > { %v10673_v37 = vmul.f32 %v14180_v58, %v16066_v28  ;;  %v11326_v39 = vpop.permute.xlu1 %11325  ;;  %v14182_v26 = vpop.eup %14181 }
0x14a0   : > { %v11517_v7 = vsel %vm11515_vm5, %v11508_v8, %v11326_v39  ;;  %v10672_v43 = vmul.f32 %v14182_v26, %v16068_v15  ;;  %v11292_v10 = vpop.permute.xlu0 %11291  ;;  %v16894_v26 = vld [vmem:[#allocation21_spill] sm:$0xff] }
0x14a1   : > { %13718 = vmatmul.mubr.msk.f32.vlgmr.msra.gmra.mrb[128].mxu1 %vm685_vm4, %v10673_v37  ;;  %v11507_v2 = vsel %vm685_vm4, %v16891_v16, %v11292_v10 }
0x14a2   : > { %13713 = vmatmul.mubr.msk.f32.vlgmr.msra.gmra.mrb[146].mxu0 %vm685_vm4, %v10672_v43 }
0x14a3   : > { %v11358_v52 = vpop.permute.xlu1 %11357  ;;  %v14184_v32 = vpop.eup %14183  ;;  %13721 = vmatpush3.msra.mxu0 %v11208_v13  ;;  %13722 = vmatprep.mubr.msk.f32.mxu0 %vm14282_vm3, %v16855_v22 }
0x14a4   : > { %v11526_v28 = vsel %vm11524_vm6, %v11517_v7, %v11358_v52  ;;  %v10674_v34 = vmul.f32 %v14184_v32, %v16074_v63  ;;  %v11324_v15 = vpop.permute.xlu0 %11323  ;;  %v16895_v32 = vld [vmem:[#allocation20_spill] sm:$0xff] }
0x14a5   : > { %v11516_v5 = vsel %vm11515_vm5, %v11507_v2, %v11324_v15 }
0x14a6   : > { %13723 = vmatmul.mubr.msk.f32.vlgmr.msra.gmra.mrb[148].mxu0 %vm685_vm4, %v10674_v34 }
0x14a7   : > { %v11390_v12 = vpop.permute.xlu1 %11389  ;;  %11955 = vmatprep.mubr.f32.mxu0 %v16855_v22 }
0x14a8   : > { %v11535_v38 = vsel %vm11533_vm7, %v11526_v28, %v11390_v12  ;;  %v11356_v44 = vpop.permute.xlu0 %11355 }
0x14a9   : > { %v11525_v48 = vsel %vm11524_vm6, %v11516_v5, %v11356_v44 }
0x14ab   : > { %v11422_v9 = vpop.permute.xlu1 %11421 }
0x14ac   : > { %v16209_v6 = vsel %vm11542_vm8, %v11535_v38, %v11422_v9  ;;  %v11388_v63 = vpop.permute.xlu0 %11387  ;;  %v11570_v9 = vld [vmem:[%s16808_s4 + $0x8] sm:$0xff] }
0x14ad   : > { %v11534_v59 = vsel %vm11533_vm7, %v11525_v48, %v11388_v63  ;;  %v11569_v48 = vld [vmem:[%s16808_s4] sm:$0xff]  ;;  %v11571_v63 = vld [vmem:[%s16808_s4 + $0x10] sm:$0xff] }
0x14af   : > { %v16212_v35 = vpop.permute.xlu1 %11453 }
0x14b0   : > { %v11420_v51 = vpop.permute.xlu0 %11419 }
0x14b1   : > { %v16215_v33 = vsel %vm11542_vm8, %v11534_v59, %v11420_v51  ;;  %v13788_v59 = vpack.c.bf16 %v11570_v9, %v11569_v48  ;;  %v11572_v51 = vld [vmem:[%s16808_s4 + $0x18] sm:$0xff] }
0x14b3   : > { %v16217_v60 = vpop.permute.xlu1 %11297  ;;  %13789 = vmatprep.subr.bf16.mxu1 %v13788_v59 }
0x14b4   : > { %v16219_v46 = vpop.permute.xlu0 %11451  ;;  %13791 = vmatpush3.bf16.msra.mxu1 %v13788_v59 }
0x14b7   : > { %v16221_v55 = vpop.permute.xlu1 %11329 }
0x14b8   : > { %v16223_v50 = vpop.permute.xlu0 %11295 }
0x14bb   : > { %v16225_v18 = vpop.permute.xlu1 %11361 }
0x14bc   : > { %v16227_v54 = vpop.permute.xlu0 %11327 }
0x14bf   : > { %v16229_v49 = vpop.permute.xlu1 %11393 }
0x14c0   : > { %v16231_v21 = vpop.permute.xlu0 %11359 }
0x14c3   : > { %v16233_v57 = vpop.permute.xlu1 %11425 }
0x14c4   : > { %v16235_v47 = vpop.permute.xlu0 %11391 }
0x14c7   : > { %v16237_v56 = vpop.permute.xlu1 %11457 }
0x14c8   : > { %v16239_v1 = vpop.permute.xlu0 %11423 }
0x14cb   : > { %v11302_v30 = vpop.permute.xlu1 %11301 }
0x14cc   : > { %v11512_v14 = vsel %vm685_vm4, %v16892_v40, %v11302_v30  ;;  %v16243_v0 = vpop.permute.xlu0 %11455  ;;  %v13792_v30 = vpack.c.bf16 %v11572_v51, %v11571_v63  ;;  %v11573_v40 = vld [vmem:[%s16808_s4 + $0x20] sm:$0xff] }
0x14ce   : > { %13793 = vmatprep.subr.bf16.mxu1 %v13792_v30 }
0x14cf   : > { %v11334_v45 = vpop.permute.xlu1 %11333  ;;  %13795 = vmatpush3.bf16.msra.mxu1 %v13792_v30 }
0x14d0   : > { %v11521_v4 = vsel %vm11515_vm5, %v11512_v14, %v11334_v45  ;;  %v11300_v3 = vpop.permute.xlu0 %11299  ;;  %v11574_v14 = vld [vmem:[%s16808_s4 + $0x28] sm:$0xff] }
0x14d1   : > { %v11511_v27 = vsel %vm685_vm4, %v16893_v11, %v11300_v3  ;;  %v13796_v45 = vpack.c.bf16 %v11574_v14, %v11573_v40  ;;  %v11576_v3 = vld [vmem:[%s16808_s4 + $0x38] sm:$0xff] }
0x14d3   : > { %v11366_v29 = vpop.permute.xlu1 %11365  ;;  %13797 = vmatprep.subr.bf16.mxu1 %v13796_v45 }
0x14d4   : > { %v11530_v23 = vsel %vm11524_vm6, %v11521_v4, %v11366_v29  ;;  %v11332_v25 = vpop.permute.xlu0 %11331  ;;  %13799 = vmatpush3.bf16.msra.mxu1 %v13796_v45  ;;  %v11575_v4 = vld [vmem:[%s16808_s4 + $0x30] sm:$0xff] }
0x14d5   : > { %v11520_v19 = vsel %vm11515_vm5, %v11511_v27, %v11332_v25  ;;  %v13800_v11 = vpack.c.bf16 %v11576_v3, %v11575_v4 }
0x14d7   : > { %v11398_v20 = vpop.permute.xlu1 %11397  ;;  %13801 = vmatprep.subr.bf16.mxu1 %v13800_v11 }
0x14d8   : > { %v11539_v31 = vsel %vm11533_vm7, %v11530_v23, %v11398_v20  ;;  %v11364_v13 = vpop.permute.xlu0 %11363  ;;  %13803 = vmatpush3.bf16.msra.mxu1 %v13800_v11  ;;  %v16896_v20 = vld [vmem:[#allocation37_spill] sm:$0xff] }
0x14d9   : > { %v11529_v61 = vsel %vm11524_vm6, %v11520_v19, %v11364_v13 }
0x14db   : > { %v11430_v62 = vpop.permute.xlu1 %11429 }
0x14dc   : > { %v11548_v36 = vsel %vm11542_vm8, %v11539_v31, %v11430_v62  ;;  %v11396_v17 = vpop.permute.xlu0 %11395 }
0x14dd   : > { %v11538_v41 = vsel %vm11533_vm7, %v11529_v61, %v11396_v17  ;;  %v16897_v61 = vld [vmem:[#allocation36_spill] sm:$0xff]  ;;  %v16900_v17 = vld [vmem:[#allocation41_spill] sm:$0xff] }
0x14df   : > { %v11462_v8 = vpop.permute.xlu1 %11461 }
0x14e0   : > { %v16255_v53 = vsel %vm11551_vm9, %v11548_v36, %v11462_v8  ;;  %v11428_v58 = vpop.permute.xlu0 %11427  ;;  %v16899_v36 = vld [vmem:[#allocation42_spill] sm:$0xff] }
0x14e1   : > { %v11547_v37 = vsel %vm11542_vm8, %v11538_v41, %v11428_v58 }
0x14e3   : > { %v11306_v39 = vpop.permute.xlu1 %11305 }
0x14e4   : > { %v11514_v7 = vsel %vm685_vm4, %v16894_v26, %v11306_v39  ;;  %v11460_v43 = vpop.permute.xlu0 %11459 }
0x14e5   : > { %v16261_v10 = vsel %vm11551_vm9, %v11547_v37, %v11460_v43 }
0x14e7   : > { %v11338_v16 = vpop.permute.xlu1 %11337 }
0x14e8   : > { %v11523_v2 = vsel %vm11515_vm5, %v11514_v7, %v11338_v16  ;;  %v11304_v52 = vpop.permute.xlu0 %11303  ;;  %v11552_v16 = vsel %vm11551_vm9, %v16215_v33, %v16219_v46 }
0x14e9   : > { %v11513_v28 = vsel %vm685_vm4, %v16895_v32, %v11304_v52  ;;  %v16902_v52 = vld [vmem:[#allocation16_spill] sm:$0xff] }
0x14ea   : > { %v11509_v32 = vsel %vm685_vm4, %v16902_v52, %v16223_v50 }
0x14eb   : > { %v11370_v34 = vpop.permute.xlu1 %11369 }
0x14ec   : > { %v16267_v15 = vsel %vm11524_vm6, %v11523_v2, %v11370_v34  ;;  %v11336_v5 = vpop.permute.xlu0 %11335  ;;  %v11553_v34 = vsel %vm11551_vm9, %v16209_v6, %v16212_v35 }
0x14ed   : > { %v11522_v12 = vsel %vm11515_vm5, %v11513_v28, %v11336_v5 }
0x14f0   : > { %v11368_v38 = vpop.permute.xlu0 %11367 }
0x14f1   : > { %v16271_v44 = vsel %vm11524_vm6, %v11522_v12, %v11368_v38 }
0x1537   : > { %v10747_v27 = vpop.f32.mrb[122].mxu1 }
0x1538   : > { %v13689_v29 = vpop.f32.mrb[123].mxu1  ;;  %11483 = vrot.lane.b32.xlu0 %v10747_v27, %s14284_s25 }
0x153b   : > { %v10899_v23 = vpop.f32.mrb[124].mxu1 }
0x153c   : > { %v10823_v25 = vpop.f32.mrb[142].mxu0  ;;  %v13699_v19 = vpop.f32.mrb[125].mxu1  ;;  %11399 = vrot.lane.b32.xlu0 %v16896_v20, %s14290_s16 }
0x153d   : > { %11485 = vrot.lane.b32.xlu1 %v10823_v25, %s14284_s25  ;;  %v13694_v31 = vpop.f32.mrb[143].mxu0 }
0x1540   : > { %11487 = vrot.lane.b32.xlu0 %v10899_v23, %s14284_s25  ;;  %v10975_v13 = vpop.f32.mrb[144].mxu0  ;;  %v11577_v23 = vld [vmem:[%s16812_s8 + $0x2] ss:$0 sm:$0xff] }
0x1541   : > { %11401 = vrot.lane.b32.xlu1 %v16897_v61, %s14290_s16  ;;  %v13704_v62 = vpop.f32.mrb[145].mxu0 }
0x1544   : > { %11431 = vrot.lane.b32.xlu0 %v16899_v36, %s16898_s27 }
0x1545   : > { %11489 = vrot.lane.b32.xlu1 %v10975_v13, %s14284_s25  ;;  %v16904_v13 = vld [vmem:[#allocation5_spill] sm:$0xff] }
0x1549   : > { %11433 = vrot.lane.b32.xlu1 %v16900_v17, %s16898_s27  ;;  %s12722_s27 = sshll.u32 %s14371_s13, 7  ;;  %s14299_s13 = smov [#allocation2]  }
0x154a   : > { %s16762_s28 = scalar_lea.hbm %s16813_s9, %s12722_s27 }
0x1570   : > { %v11051_v41 = vpop.f32.mrb[126].mxu1 }
0x1571   : > { %11491 = vrot.lane.b32.xlu0 %v11051_v41, %s14284_s25  ;;  %v13709_v8 = vpop.f32.mrb[127].mxu1 }
0x1574   : > { %v11203_v58 = vpop.f32.mrb[128].mxu1 }
0x1575   : > { %11463 = vrot.lane.b32.xlu0 %v16019_v42, %s16901_s17  ;;  %v13719_v37 = vpop.f32.mrb[129].mxu1  ;;  %v11127_v39 = vpop.f32.mrb[146].mxu0 }
0x1576   : > { %11493 = vrot.lane.b32.xlu1 %v11127_v39, %s14284_s25  ;;  %v13714_v26 = vpop.f32.mrb[147].mxu0  ;;  %v16906_v39 = vld [vmem:[#allocation8_spill] sm:$0xff] }
0x1579   : > { %11495 = vrot.lane.b32.xlu0 %v11203_v58, %s14284_s25  ;;  %v11279_v7 = vpop.f32.mrb[148].mxu0 }
0x157a   : > { %11465 = vrot.lane.b32.xlu1 %v16021_v24, %s16901_s17  ;;  %v13724_v43 = vpop.f32.mrb[149].mxu0  ;;  %v11518_v24 = vsel %vm11515_vm5, %v11509_v32, %v16227_v54  ;;  %v16903_v54 = vld [vmem:[#allocation17_spill] sm:$0xff]  ;;  %s342_s17 = scalar_lea.vmem [#allocation2], %s12488_s23  ;;  %s14221_s23 = sshll.u32 %s14299_s13, 4  ;;  %s14222_s23 = int_to_ptr.vmem [resolvable:$false] %s14221_s23 }
0x157b   : > { %v11527_v33 = vsel %vm11524_vm6, %v11518_v24, %v16231_v21  ;;  %v11510_v38 = vsel %vm685_vm4, %v16903_v54, %v16217_v60  ;;  %s14223_s29 = scalar_lea.vmem %s14222_s23, 256 }
0x157c   : > { %v11536_v5 = vsel %vm11533_vm7, %v11527_v33, %v16235_v47  ;;  %v11519_v21 = vsel %vm11515_vm5, %v11510_v38, %v16221_v55  ;;  %v16909_v33 = vld [vmem:[#allocation10_spill] sm:$0xff] }
0x157d   : > { %v11545_v50 = vsel %vm11542_vm8, %v11536_v5, %v16239_v1  ;;  %v11528_v9 = vsel %vm11524_vm6, %v11519_v21, %v16225_v18 }
0x157e   : > { %11497 = vrot.lane.b32.xlu1 %v11279_v7, %s14284_s25  ;;  %v11554_v6 = vsel %vm11551_vm9, %v11545_v50, %v16243_v0  ;;  %v11537_v1 = vsel %vm11533_vm7, %v11528_v9, %v16229_v49  ;;  %v16907_v7 = vld [vmem:[#allocation7_spill] sm:$0xff]  ;;  %s12413_s25 = sshll.u32 %s342_s17, 4  ;;  %s16764_s25 = int_to_ptr.vmem [resolvable:$true] %s12413_s25 }
0x157f   : > { %v11546_v60 = vsel %vm11542_vm8, %v11537_v1, %v16233_v57  ;;  %s14217_s21 = scalar_lea.vmem %s16764_s25, 128  ;;  %p14224_p0 = scmp.lt.s32.totalorder %s16764_s25, %s14222_s23 }
0x1580   : > { %v11555_v0 = vsel %vm11551_vm9, %v11546_v60, %v16237_v56  ;;  %p14218_p11 = scmp.ne.s32.totalorder %s16764_s25, %s14217_s21  ;;  %p14225_p1 = scmp.lt.s32.totalorder %s14223_s29, %s14217_s21 }
0x1582   : > { %p14219_p12 = pnand %p14218_p11, %p14388_p5  ;;  %p14226_p2 = por %p14225_p1, %p14224_p0 }
0x1584   : > { %p14220_p13 = pneg %p14219_p12 }
0x1586   : > { %p14227_p3 = pnand %p14226_p2, %p14220_p13 }
0x15aa   : > { %v11484_v42 = vpop.permute.xlu0 %11483 }
0x15ab   : > { %v11561_v2 = vsel %vm11560_vm10, %v11552_v16, %v11484_v42 }
0x15ac   : > { %13741 = vmatprep.mubr.msk.f32.mxu1 %vm544_vm2, %v11561_v2 }
0x15ae   : > { %v11400_v28 = vpop.permute.xlu0 %11399 }
0x15af   : > { %v11486_v46 = vpop.permute.xlu1 %11485  ;;  %v11540_v57 = vsel %vm11533_vm7, %v16271_v44, %v11400_v28  ;;  %v16908_v28 = vld [vmem:[#allocation9_spill] sm:$0xff] }
0x15b0   : > { %v11562_v12 = vsel %vm11560_vm10, %v11553_v34, %v11486_v46 }
0x15b1   : > { %13742 = vmatmul.mubr.msk.f32.vlgmr.msra.gmra.mrb[130].mxu1 %vm544_vm2, %v11562_v12 }
0x15b2   : > { %v11488_v35 = vpop.permute.xlu0 %11487 }
0x15b3   : > { %v11402_v48 = vpop.permute.xlu1 %11401  ;;  %v11563_v47 = vsel %vm11560_vm10, %v11554_v6, %v11488_v35  ;;  %v16910_v35 = vld [vmem:[#allocation11_spill] sm:$0xff] }
0x15b4   : > { %13744 = vmatprep.mubr.msk.f32.mxu1 %vm544_vm2, %v11563_v47  ;;  %v11541_v11 = vsel %vm11533_vm7, %v16267_v15, %v11402_v48  ;;  %v16905_v15 = vld [vmem:[#allocation6_spill] sm:$0xff]  ;;  %v16911_v48 = vld [vmem:[#allocation12_spill] sm:$0xff] }
0x15b6   : > { %v11432_v59 = vpop.permute.xlu0 %11431 }
0x15b7   : > { %v11490_v63 = vpop.permute.xlu1 %11489  ;;  %v11549_v56 = vsel %vm11542_vm8, %v11540_v57, %v11432_v59 }
0x15b8   : > { %v11564_v55 = vsel %vm11560_vm10, %v11555_v0, %v11490_v63 }
0x15b9   : > { %13745 = vmatmul.mubr.msk.f32.gmra.mrb[132].mxu1 %vm544_vm2, %v11564_v55 }
0x15bb   : > { %v11434_v30 = vpop.permute.xlu1 %11433 }
0x15bc   : > { %v11550_v44 = vsel %vm11542_vm8, %v11541_v11, %v11434_v30 }
0x15e3   : > { %v11492_v51 = vpop.permute.xlu0 %11491 }
0x15e4   : > { %v11565_v18 = vsel %vm11560_vm10, %v16261_v10, %v11492_v51 }
0x15e5   : > { %13747 = vmatprep.mubr.msk.f32.mxu1 %vm544_vm2, %v11565_v18 }
0x15e7   : > { %v11464_v49 = vpop.permute.xlu0 %11463 }
0x15e8   : > { %v11494_v40 = vpop.permute.xlu1 %11493  ;;  %v11558_v45 = vsel %vm11551_vm9, %v11549_v56, %v11464_v49 }
0x15e9   : > { %v11566_v14 = vsel %vm11560_vm10, %v16255_v53, %v11494_v40 }
0x15ea   : > { %13748 = vmatmul.mubr.msk.f32.gmra.mrb[134].mxu1 %vm544_vm2, %v11566_v14 }
0x15eb   : > { %v11496_v4 = vpop.permute.xlu0 %11495 }
0x15ec   : > { %v11567_v10 = vsel %vm11560_vm10, %v11558_v45, %v11496_v4  ;;  %v11466_v3 = vpop.permute.xlu1 %11465 }
0x15ed   : > { %13750 = vmatprep.mubr.msk.f32.mxu1 %vm544_vm2, %v11567_v10  ;;  %v11559_v27 = vsel %vm11551_vm9, %v11550_v44, %v11466_v3 }
0x15f0   : > { %v11498_v29 = vpop.permute.xlu1 %11497 }
0x15f1   : > { %v11568_v53 = vsel %vm11560_vm10, %v11559_v27, %v11498_v29  ;;  %v11839_v29 = vld [vmem:[%s16809_s5 + $0x8] sm:$0xff] }
0x15f2   : > { %13751 = vmatmul.mubr.msk.f32.gmra.mrb[136].mxu1 %vm544_vm2, %v11568_v53  ;;  %v11841_v53 = vld [vmem:[%s16809_s5 + $0x18] sm:$0xff] }
0x1684   : > { %v13743_v25 = vpop.f32.mrb[130].mxu1 }
0x1685   : > { %v11674_v19 = vadd.f32 %v13743_v25, %v11577_v23  ;;  %v11668_v20 = vpop.f32.mrb[131].mxu1  ;;  %v11838_v25 = vld [vmem:[%s16809_s5] sm:$0xff] }
0x1686   : > { %v11669_v31 = vadd.f32 %v11668_v20, %v11577_v23 }
0x1687   : > { %v11708_v61 = vadd.f32 %v11674_v19, %v16904_v13  ;;  %v11840_v19 = vld [vmem:[%s16809_s5 + $0x10] sm:$0xff]  ;;  %v11845_v13 = vld [vmem:[%s16809_s5 + $0x38] sm:$0xff] }
0x1688   : > { %v11707_v62 = vadd.f32 %v11669_v31, %v16905_v15  ;;  %v13806_v20 = vpack.c.bf16 %v11840_v19, %v11838_v25  ;;  %v11843_v31 = vld [vmem:[%s16809_s5 + $0x28] sm:$0xff]  ;;  %v11842_v15 = vld [vmem:[%s16809_s5 + $0x20] sm:$0xff]  ;;  %v12043_v25 = vld [vmem:[%s16810_s6 + $0xb8] sm:$0xff] }
0x1689   : > { %v11718_v36 = vsel %vm544_vm2, %v11708_v61, 0.0 }
0x168a   : > { %11719 = vadd.xlane.f32.xlu1 %v11718_v36  ;;  %v11715_v17 = vsel %vm544_vm2, %v11707_v62, 0.0 }
0x168b   : > { %11716 = vadd.xlane.f32.xlu0 %v11715_v17  ;;  %v11847_v17 = vld [vmem:[%s16809_s5 + $0x48] sm:$0xff] }
0x168c   : > { %v13746_v41 = vpop.f32.mrb[132].mxu1 }
0x168d   : > { %v11678_v8 = vpop.f32.mrb[133].mxu1  ;;  %v11684_v58 = vadd.f32 %v13746_v41, %v11577_v23  ;;  %v11849_v41 = vld [vmem:[%s16809_s5 + $0x58] sm:$0xff] }
0x168e   : > { %v11679_v37 = vadd.f32 %v11678_v8, %v11577_v23  ;;  %v13812_v8 = vpack.c.bf16 %v11849_v41, %v11847_v17  ;;  %v12028_v17 = vld [vmem:[%s16810_s6 + $0x40] sm:$0xff]  ;;  %v12029_v41 = vld [vmem:[%s16810_s6 + $0x48] sm:$0xff] }
0x168f   : > { %v11710_v43 = vadd.f32 %v11684_v58, %v16907_v7  ;;  %v11846_v58 = vld [vmem:[%s16809_s5 + $0x40] sm:$0xff]  ;;  %v11853_v7 = vld [vmem:[%s16809_s5 + $0x78] sm:$0xff] }
0x1690   : > { %v11709_v26 = vadd.f32 %v11679_v37, %v16906_v39  ;;  %v11848_v37 = vld [vmem:[%s16809_s5 + $0x50] sm:$0xff] }
0x1691   : > { %v11724_v42 = vsel %vm544_vm2, %v11710_v43, 0.0  ;;  %v13814_v39 = vpack.c.bf16 %v11848_v37, %v11846_v58  ;;  %v12047_v58 = vld [vmem:[%s16810_s6 + $0xd8] sm:$0xff]  ;;  %v13838_v37 = vpack.c.bf16 %v12029_v41, %v12028_v17 }
0x1692   : > { %v11721_v16 = vsel %vm544_vm2, %v11709_v26, 0.0 }
0x1693   : > { %11722 = vadd.xlane.f32.xlu0 %v11721_v16 }
0x1697   : > { %11725 = vadd.xlane.f32.xlu0 %v11724_v42  ;;  %v11852_v42 = vld [vmem:[%s16809_s5 + $0x70] sm:$0xff] }
0x16bd   : > { %v13749_v2 = vpop.f32.mrb[134].mxu1 }
0x16be   : > { %v11694_v52 = vadd.f32 %v13749_v2, %v11577_v23  ;;  %v11688_v32 = vpop.f32.mrb[135].mxu1 }
0x16bf   : > { %v11689_v24 = vadd.f32 %v11688_v32, %v11577_v23 }
0x16c0   : > { %v16387_v34 = vadd.f32 %v11694_v52, %v16908_v28 }
0x16c1   : > { %v16390_v46 = vadd.f32 %v11689_v24, %v16909_v33 }
0x16c2   : > { %v11730_v5 = vsel %vm544_vm2, %v16387_v34, 0.0 }
0x16c3   : > { %11731 = vadd.xlane.f32.xlu0 %v11730_v5  ;;  %v11727_v12 = vsel %vm544_vm2, %v16390_v46, 0.0 }
0x16c4   : > { %11728 = vadd.xlane.f32.xlu1 %v11727_v12 }
0x16c5   : > { %v13752_v50 = vpop.f32.mrb[136].mxu1 }
0x16c6   : > { %v11704_v54 = vadd.f32 %v13752_v50, %v11577_v23  ;;  %v11698_v38 = vpop.f32.mrb[137].mxu1 }
0x16c7   : > { %v11699_v6 = vadd.f32 %v11698_v38, %v11577_v23  ;;  %v13804_v23 = vpack.c.bf16 %v11841_v53, %v11839_v29  ;;  %v12024_v29 = vld [vmem:[%s16810_s6 + $0x20] sm:$0xff]  ;;  %v12025_v53 = vld [vmem:[%s16810_s6 + $0x28] sm:$0xff] }
0x16c8   : > { %v16397_v21 = vadd.f32 %v11704_v54, %v16910_v35  ;;  %v13830_v19 = vpack.c.bf16 %v12025_v53, %v12024_v29 }
0x16c9   : > { %v16400_v47 = vadd.f32 %v11699_v6, %v16911_v48  ;;  %13805 = vmatprep.subr.bf16.mxu0 %v13804_v23  ;;  %v12042_v23 = vld [vmem:[%s16810_s6 + $0xb0] sm:$0xff] }
0x16ca   : > { %v11736_v9 = vsel %vm544_vm2, %v16397_v21, 0.0  ;;  %13807 = vmatpush1.bf16.msra.mxu0 %v13806_v20  ;;  %v13832_v20 = vpack.c.bf16 %v12043_v25, %v12042_v23 }
0x16cb   : > { %11737 = vadd.xlane.f32.xlu0 %v11736_v9  ;;  %v11733_v1 = vsel %vm544_vm2, %v16400_v47, 0.0 }
0x16cc   : > { %11734 = vadd.xlane.f32.xlu1 %v11733_v1 }
0x1717   : > { %v11720_v60 = vpop.xlane.xlu1 %11719 }
0x1718   : > { %v11741_v0 = vmul.f32 0.015625, %v11720_v60  ;;  %v11717_v63 = vpop.xlane.xlu0 %11716 }
0x1719   : > { %v11740_v55 = vmul.f32 0.015625, %v11717_v63 }
0x171a   : > { %v16406_v59 = vsub.f32 %v11708_v61, %v11741_v0  ;;  %v13808_v61 = vpack.c.bf16 %v11845_v13, %v11843_v31  ;;  %v12026_v31 = vld [vmem:[%s16810_s6 + $0x30] sm:$0xff]  ;;  %v12027_v13 = vld [vmem:[%s16810_s6 + $0x38] sm:$0xff] }
0x171b   : > { %v16408_v51 = vsub.f32 %v11707_v62, %v11740_v55  ;;  %v11844_v62 = vld [vmem:[%s16809_s5 + $0x30] sm:$0xff]  ;;  %v12020_v55 = vld [vmem:[%s16810_s6] sm:$0xff] }
0x171c   : > { %v11757_v18 = vmul.f32 %v16406_v59, %v16406_v59  ;;  %v13810_v36 = vpack.c.bf16 %v11844_v62, %v11842_v15  ;;  %13809 = vmatprep.subr.bf16.mxu0 %v13808_v61  ;;  %v12044_v61 = vld [vmem:[%s16810_s6 + $0xc0] sm:$0xff]  ;;  %v12045_v15 = vld [vmem:[%s16810_s6 + $0xc8] sm:$0xff]  ;;  %v13834_v62 = vpack.c.bf16 %v12027_v13, %v12026_v31 }
0x171d   : > { %v11756_v30 = vmul.f32 %v16408_v51, %v16408_v51 }
0x171e   : > { %v11767_v49 = vsel %vm544_vm2, %v11757_v18, 0.0  ;;  %13811 = vmatpush1.bf16.msra.mxu0 %v13810_v36  ;;  %v13836_v36 = vpack.c.bf16 %v12045_v15, %v12044_v61 }
0x171f   : > { %11768 = vadd.xlane.f32.xlu0 %v11767_v49  ;;  %v11764_v57 = vsel %vm544_vm2, %v11756_v30, 0.0  ;;  %13813 = vmatprep.subr.bf16.mxu0 %v13812_v8  ;;  %v12021_v30 = vld [vmem:[%s16810_s6 + $0x8] sm:$0xff]  ;;  %v12038_v49 = vld [vmem:[%s16810_s6 + $0x90] sm:$0xff] }
0x1720   : > { %11765 = vadd.xlane.f32.xlu1 %v11764_v57  ;;  %v11723_v40 = vpop.xlane.xlu0 %11722  ;;  %v12039_v57 = vld [vmem:[%s16810_s6 + $0x98] sm:$0xff]  ;;  %v12046_v8 = vld [vmem:[%s16810_s6 + $0xd0] sm:$0xff] }
0x1721   : > { %v11742_v56 = vmul.f32 0.015625, %v11723_v40  ;;  %v13822_v40 = vpack.c.bf16 %v12021_v30, %v12020_v55 }
0x1722   : > { %13815 = vmatpush1.bf16.msra.mxu0 %v13814_v39  ;;  %v13840_v39 = vpack.c.bf16 %v12047_v58, %v12046_v8 }
0x1723   : > { %v16416_v14 = vsub.f32 %v11709_v26, %v11742_v56  ;;  %v11851_v26 = vld [vmem:[%s16809_s5 + $0x68] sm:$0xff]  ;;  %v13824_v56 = vpack.c.bf16 %v12039_v57, %v12038_v49 }
0x1724   : > { %v11726_v45 = vpop.xlane.xlu0 %11725  ;;  %v13816_v16 = vpack.c.bf16 %v11853_v7, %v11851_v26  ;;  %v12030_v26 = vld [vmem:[%s16810_s6 + $0x50] sm:$0xff]  ;;  %v12031_v7 = vld [vmem:[%s16810_s6 + $0x58] sm:$0xff] }
0x1725   : > { %v11743_v4 = vmul.f32 0.015625, %v11726_v45  ;;  %v11758_v10 = vmul.f32 %v16416_v14, %v16416_v14  ;;  %v12022_v45 = vld [vmem:[%s16810_s6 + $0x10] sm:$0xff] }
0x1726   : > { %13817 = vmatprep.subr.bf16.mxu0 %v13816_v16  ;;  %v12049_v16 = vld [vmem:[%s16810_s6 + $0xe8] sm:$0xff] }
0x1727   : > { %v16420_v3 = vsub.f32 %v11710_v43, %v11743_v4  ;;  %v11770_v11 = vsel %vm544_vm2, %v11758_v10, 0.0  ;;  %v11850_v43 = vld [vmem:[%s16809_s5 + $0x60] sm:$0xff]  ;;  %v12023_v4 = vld [vmem:[%s16810_s6 + $0x18] sm:$0xff] }
0x1728   : > { %11771 = vadd.xlane.f32.xlu1 %v11770_v11  ;;  %v13818_v2 = vpack.c.bf16 %v11852_v42, %v11850_v43  ;;  %v12040_v10 = vld [vmem:[%s16810_s6 + $0xa0] sm:$0xff]  ;;  %v12041_v11 = vld [vmem:[%s16810_s6 + $0xa8] sm:$0xff]  ;;  %v13842_v42 = vpack.c.bf16 %v12031_v7, %v12030_v26 }
0x1729   : > { %v11759_v44 = vmul.f32 %v16420_v3, %v16420_v3  ;;  %v12048_v43 = vld [vmem:[%s16810_s6 + $0xe0] sm:$0xff] }
0x172a   : > { %13819 = vmatpush1.bf16.msra.mxu0 %v13818_v2  ;;  %v13844_v2 = vpack.c.bf16 %v12049_v16, %v12048_v43 }
0x172b   : > { %v11773_v27 = vsel %vm544_vm2, %v11759_v44, 0.0  ;;  %v13826_v44 = vpack.c.bf16 %v12023_v4, %v12022_v45 }
0x172c   : > { %11774 = vadd.xlane.f32.xlu0 %v11773_v27  ;;  %v13828_v27 = vpack.c.bf16 %v12041_v11, %v12040_v10 }
0x1750   : > { %v11732_v52 = vpop.xlane.xlu0 %11731 }
0x1751   : > { %v11745_v32 = vmul.f32 0.015625, %v11732_v52  ;;  %v11729_v24 = vpop.xlane.xlu1 %11728 }
0x1752   : > { %v11744_v28 = vmul.f32 0.015625, %v11729_v24 }
0x1753   : > { %v16475_v33 = vsub.f32 %v16387_v34, %v11745_v32 }
0x1754   : > { %v16478_v5 = vsub.f32 %v16390_v46, %v11744_v28 }
0x1755   : > { %v11761_v12 = vmul.f32 %v16475_v33, %v16475_v33 }
0x1756   : > { %v11760_v50 = vmul.f32 %v16478_v5, %v16478_v5 }
0x1757   : > { %v11779_v54 = vsel %vm544_vm2, %v11761_v12, 0.0 }
0x1758   : > { %11780 = vadd.xlane.f32.xlu0 %v11779_v54  ;;  %v11738_v38 = vpop.xlane.xlu0 %11737  ;;  %v11776_v6 = vsel %vm544_vm2, %v11760_v50, 0.0 }
0x1759   : > { %v11747_v35 = vmul.f32 0.015625, %v11738_v38  ;;  %v11735_v48 = vpop.xlane.xlu1 %11734  ;;  %11777 = vadd.xlane.f32.xlu1 %v11776_v6 }
0x175a   : > { %v11746_v34 = vmul.f32 0.015625, %v11735_v48 }
0x175b   : > { %v16487_v9 = vsub.f32 %v16397_v21, %v11747_v35  ;;  %v12036_v21 = vld [vmem:[%s16810_s6 + $0x80] sm:$0xff] }
0x175c   : > { %v16490_v46 = vsub.f32 %v16400_v47, %v11746_v34  ;;  %v12037_v47 = vld [vmem:[%s16810_s6 + $0x88] sm:$0xff] }
0x175d   : > { %v11763_v1 = vmul.f32 %v16487_v9, %v16487_v9  ;;  %v13820_v18 = vpack.c.bf16 %v12037_v47, %v12036_v21  ;;  %v11829_v47 = vld [vmem:[%s16812_s8 + $0x4] ss:$0 sm:$0xff] }
0x175e   : > { %v11762_v60 = vmul.f32 %v16490_v46, %v16490_v46 }
0x175f   : > { %v11785_v0 = vsel %vm544_vm2, %v11763_v1, 0.0  ;;  %13821 = vmatprep.subr.bf16.mxu1 %v13820_v18 }
0x1760   : > { %11786 = vadd.xlane.f32.xlu0 %v11785_v0  ;;  %v11782_v63 = vsel %vm544_vm2, %v11762_v60, 0.0  ;;  %13823 = vmatpush3.bf16.msra.mxu1 %v13822_v40  ;;  %v11820_v0 = vld [vmem:[%s16812_s8 + $0x3] ss:$0 sm:$0xff] }
0x1761   : > { %11783 = vadd.xlane.f32.xlu1 %v11782_v63  ;;  %13825 = vmatprep.subr.bf16.mxu1 %v13824_v56 }
0x1764   : > { %13827 = vmatpush3.bf16.msra.mxu1 %v13826_v44 }
0x1765   : > { %13829 = vmatprep.subr.bf16.mxu1 %v13828_v27 }
0x1768   : > { %13831 = vmatpush3.bf16.msra.mxu1 %v13830_v19 }
0x1769   : > { %13833 = vmatprep.subr.bf16.mxu1 %v13832_v20 }
0x176c   : > { %13835 = vmatpush3.bf16.msra.mxu1 %v13834_v62 }
0x176d   : > { %13837 = vmatprep.subr.bf16.mxu1 %v13836_v36 }
0x1770   : > { %13839 = vmatpush3.bf16.msra.mxu1 %v13838_v37 }
0x1771   : > { %13841 = vmatprep.subr.bf16.mxu1 %v13840_v39 }
0x1774   : > { %13843 = vmatpush3.bf16.msra.mxu1 %v13842_v42  ;;  %v12050_v42 = vld [vmem:[%s16810_s6 + $0xf0] sm:$0xff] }
0x1775   : > { %13845 = vmatprep.subr.bf16.mxu1 %v13844_v2  ;;  %v12051_v2 = vld [vmem:[%s16810_s6 + $0xf8] sm:$0xff] }
0x17ac   : > { %v11769_v52 = vpop.xlane.xlu0 %11768 }
0x17ad   : > { %v11789_v32 = vmul.f32 0.015625, %v11769_v52  ;;  %v11766_v24 = vpop.xlane.xlu1 %11765  ;;  %v13848_v52 = vpack.c.bf16 %v12051_v2, %v12050_v42 }
0x17ae   : > { %v11788_v28 = vmul.f32 0.015625, %v11766_v24 }
0x17af   : > { %v11797_v12 = vadd.f32 1e-05, %v11789_v32  ;;  %v12035_v32 = vld [vmem:[%s16810_s6 + $0x78] sm:$0xff] }
0x17b0   : > { %v11796_v50 = vadd.f32 1e-05, %v11788_v28  ;;  %v12711_v28 = vld [vmem:[%s16812_s8 + $0x5] ss:$8 sm:$0x3] }
0x17b1   : > { %14185 = vrsqrt.f32 %v11797_v12  ;;  %v16912_v12 = vld [vmem:[#allocation13_spill] sm:$0xff] }
0x17b2   : > { %14187 = vrsqrt.f32 %v11796_v50  ;;  %v16913_v50 = vsub.s32 0, %v16912_v12 }
0x17b5   : > { %v11772_v54 = vpop.xlane.xlu1 %11771 }
0x17b6   : > { %v11790_v38 = vmul.f32 0.015625, %v11772_v54  ;;  %v11860_v54 = vrot.slane %v12711_v28, %v16913_v50 }
0x17b8   : > { %v11798_v6 = vadd.f32 1e-05, %v11790_v38  ;;  %v16914_v38 = vsub.s32 1, %v16912_v12 }
0x17b9   : > { %v11775_v35 = vpop.xlane.xlu0 %11774 }
0x17ba   : > { %14189 = vrsqrt.f32 %v11798_v6  ;;  %v11791_v48 = vmul.f32 0.015625, %v11775_v35  ;;  %v11864_v6 = vrot.slane %v12711_v28, %v16914_v38 }
0x17bb   : > { %v14186_v34 = vpop.eup %14185 }
0x17bc   : > { %v14188_v1 = vpop.eup %14187  ;;  %v11799_v60 = vadd.f32 1e-05, %v11791_v48  ;;  %v11813_v21 = vmul.f32 %v14186_v34, %v16406_v59 }
0x17bd   : > { %v11812_v63 = vmul.f32 %v14188_v1, %v16408_v51 }
0x17be   : > { %14191 = vrsqrt.f32 %v11799_v60  ;;  %v11822_v30 = vmul.f32 %v11820_v0, %v11813_v21 }
0x17bf   : > { %v11821_v55 = vmul.f32 %v11820_v0, %v11812_v63 }
0x17c0   : > { %v16589_v57 = vadd.f32 %v11829_v47, %v11822_v30 }
0x17c1   : > { %v16584_v18 = vadd.f32 %v11829_v47, %v11821_v55 }
0x17c3   : > { %12712 = vmatmul.mubr.msk.f32.vlgmr.msra.gmra.mrb[150].mxu0 %vm544_vm2, %v16584_v18 }
0x17c4   : > { %v14190_v49 = vpop.eup %14189  ;;  %11961 = vmatprep.mubr.f32.mxu0 %v16855_v22 }
0x17c5   : > { %v11814_v51 = vmul.f32 %v14190_v49, %v16416_v14 }
0x17c7   : > { %12713 = vmatmul.mubr.msk.f32.gmra.mrb[152].mxu0 %vm544_vm2, %v16589_v57  ;;  %v11823_v59 = vmul.f32 %v11820_v0, %v11814_v51 }
0x17c8   : > { %v14192_v40 = vpop.eup %14191  ;;  %11967 = vmatprep.mubr.f32.mxu0 %v16855_v22 }
0x17c9   : > { %v16595_v56 = vadd.f32 %v11829_v47, %v11823_v59  ;;  %v11815_v45 = vmul.f32 %v14192_v40, %v16420_v3 }
0x17cb   : > { %12714 = vmatmul.mubr.msk.f32.gmra.mrb[154].mxu0 %vm544_vm2, %v16595_v56  ;;  %v11824_v4 = vmul.f32 %v11820_v0, %v11815_v45 }
0x17cc   : > { %11973 = vmatprep.mubr.f32.mxu0 %v16855_v22 }
0x17cd   : > { %v16601_v10 = vadd.f32 %v11829_v47, %v11824_v4 }
0x17cf   : > { %12715 = vmatmul.mubr.msk.f32.gmra.mrb[156].mxu0 %vm544_vm2, %v16601_v10 }
0x17d0   : > { %11979 = vmatprep.mubr.f32.mxu0 %v16855_v22 }
0x17e5   : > { %v11781_v14 = vpop.xlane.xlu0 %11780 }
0x17e6   : > { %v11793_v11 = vmul.f32 0.015625, %v11781_v14  ;;  %v11778_v44 = vpop.xlane.xlu1 %11777 }
0x17e7   : > { %v11792_v27 = vmul.f32 0.015625, %v11778_v44 }
0x17e8   : > { %v11801_v29 = vadd.f32 1e-05, %v11793_v11 }
0x17e9   : > { %v11800_v53 = vadd.f32 1e-05, %v11792_v27 }
0x17ea   : > { %14193 = vrsqrt.f32 %v11801_v29 }
0x17eb   : > { %14195 = vrsqrt.f32 %v11800_v53 }
0x17ed   : > { %v11787_v3 = vpop.xlane.xlu0 %11786 }
0x17ee   : > { %v11795_v23 = vmul.f32 0.015625, %v11787_v3  ;;  %v11784_v25 = vpop.xlane.xlu1 %11783 }
0x17ef   : > { %v11794_v19 = vmul.f32 0.015625, %v11784_v25 }
0x17f0   : > { %v11803_v20 = vadd.f32 1e-05, %v11795_v23 }
0x17f1   : > { %v11802_v31 = vadd.f32 1e-05, %v11794_v19 }
0x17f2   : > { %14197 = vrsqrt.f32 %v11803_v20 }
0x17f3   : > { %14199 = vrsqrt.f32 %v11802_v31 }
0x17f4   : > { %v14194_v13 = vpop.eup %14193 }
0x17f5   : > { %v14196_v61 = vpop.eup %14195  ;;  %v11817_v62 = vmul.f32 %v14194_v13, %v16475_v33 }
0x17f6   : > { %v11816_v15 = vmul.f32 %v14196_v61, %v16478_v5 }
0x17f7   : > { %v11826_v41 = vmul.f32 %v11820_v0, %v11817_v62 }
0x17f8   : > { %v11825_v36 = vmul.f32 %v11820_v0, %v11816_v15 }
0x17f9   : > { %v16613_v37 = vadd.f32 %v11829_v47, %v11826_v41 }
0x17fa   : > { %v16608_v17 = vadd.f32 %v11829_v47, %v11825_v36 }
0x17fc   : > { %v14198_v8 = vpop.eup %14197  ;;  %12716 = vmatmul.mubr.msk.f32.gmra.mrb[158].mxu0 %vm544_vm2, %v16608_v17 }
0x17fd   : > { %v14200_v58 = vpop.eup %14199  ;;  %11985 = vmatprep.mubr.f32.mxu0 %v16855_v22  ;;  %v11819_v26 = vmul.f32 %v14198_v8, %v16487_v9  ;;  %v12032_v9 = vld [vmem:[%s16810_s6 + $0x60] sm:$0xff] }
0x17fe   : > { %v11818_v39 = vmul.f32 %v14200_v58, %v16490_v46  ;;  %v12033_v46 = vld [vmem:[%s16810_s6 + $0x68] sm:$0xff] }
0x17ff   : > { %v11828_v7 = vmul.f32 %v11820_v0, %v11819_v26  ;;  %v13846_v16 = vpack.c.bf16 %v12033_v46, %v12032_v9 }
0x1800   : > { %12717 = vmatmul.mubr.msk.f32.gmra.mrb[160].mxu0 %vm544_vm2, %v16613_v37  ;;  %v11827_v33 = vmul.f32 %v11820_v0, %v11818_v39 }
0x1801   : > { %11991 = vmatprep.mubr.f32.mxu0 %v16855_v22  ;;  %v16625_v43 = vadd.f32 %v11829_v47, %v11828_v7  ;;  %13847 = vmatpush3.bf16.msra.mxu1 %v13846_v16 }
0x1802   : > { %v16620_v5 = vadd.f32 %v11829_v47, %v11827_v33  ;;  %13849 = vmatprep.subr.bf16.mxu1 %v13848_v52 }
0x1804   : > { %12718 = vmatmul.mubr.msk.f32.gmra.mrb[162].mxu0 %vm544_vm2, %v16620_v5 }
0x1805   : > { %11997 = vmatprep.mubr.f32.mxu0 %v16855_v22 }
0x1808   : > { %12719 = vmatmul.mubr.msk.f32.gmra.mrb[164].mxu0 %vm544_vm2, %v16625_v43 }
0x1809   : > { %13769 = vmatprep.mubr.msk.f32.mxu0 %vm14282_vm3, %v16855_v22  ;;  %v12034_v22 = vld [vmem:[%s16810_s6 + $0x70] sm:$0xff] }
0x180a   : > { %v13850_v24 = vpack.c.bf16 %v12035_v32, %v12034_v22 }
0x180c   : > { %13851 = vmatpush3.bf16.msra.mxu1 %v13850_v24  ;;  %v12052_v24 = vld [vmem:[%s16812_s8 + $0x6] ss:$0 sm:$0xff] }
0x1896   : > { %v11957_v35 = vpop.f32.mrb[150].mxu0 }
0x1897   : > { %v11958_v48 = vadd.f32 %v11957_v35, %v11860_v54  ;;  %v11959_v34 = vpop.f32.mrb[151].mxu0 }
0x1898   : > { %v11960_v1 = vadd.f32 %v11959_v34, %v11864_v6 }
0x1899   : > { %v12004_v63 = vmax.f32 %v11958_v48, 0.0 }
0x189a   : > { %v12005_v60 = vmax.f32 %v11960_v1, 0.0  ;;  %v11963_v0 = vpop.f32.mrb[152].mxu0 }
0x189b   : > { %v11964_v21 = vadd.f32 %v11963_v0, %v11860_v54  ;;  %v11965_v47 = vpop.f32.mrb[153].mxu0 }
0x189c   : > { %v11966_v55 = vadd.f32 %v11965_v47, %v11864_v6  ;;  %12117 = vmatprep.mubr.f32.mxu1 %v12005_v60 }
0x189d   : > { %12118 = vmatmul.mubr.f32.vlgmr.msra.gmra.mrb[138].mxu1 %v12004_v63  ;;  %v12006_v51 = vmax.f32 %v11964_v21, 0.0 }
0x189e   : > { %v12007_v30 = vmax.f32 %v11966_v55, 0.0  ;;  %v11969_v49 = vpop.f32.mrb[154].mxu0 }
0x189f   : > { %v11970_v59 = vadd.f32 %v11969_v49, %v11860_v54  ;;  %v11971_v40 = vpop.f32.mrb[155].mxu0 }
0x18a0   : > { %v11972_v45 = vadd.f32 %v11971_v40, %v11864_v6  ;;  %12122 = vmatprep.mubr.f32.mxu1 %v12007_v30 }
0x18a1   : > { %12123 = vmatmul.mubr.f32.gmra.mrb[140].mxu1 %v12006_v51  ;;  %v12008_v11 = vmax.f32 %v11970_v59, 0.0 }
0x18a2   : > { %v12009_v4 = vmax.f32 %v11972_v45, 0.0  ;;  %v11975_v14 = vpop.f32.mrb[156].mxu0 }
0x18a3   : > { %v11976_v44 = vadd.f32 %v11975_v14, %v11860_v54  ;;  %v11977_v27 = vpop.f32.mrb[157].mxu0 }
0x18a4   : > { %v11978_v29 = vadd.f32 %v11977_v27, %v11864_v6  ;;  %12127 = vmatprep.mubr.f32.mxu1 %v12009_v4 }
0x18a5   : > { %12128 = vmatmul.mubr.f32.gmra.mrb[142].mxu1 %v12008_v11  ;;  %v12010_v3 = vmax.f32 %v11976_v44, 0.0 }
0x18a6   : > { %v12011_v53 = vmax.f32 %v11978_v29, 0.0 }
0x18a8   : > { %12132 = vmatprep.mubr.f32.mxu1 %v12011_v53 }
0x18a9   : > { %12133 = vmatmul.mubr.f32.gmra.mrb[144].mxu1 %v12010_v3 }
0x18cf   : > { %v11981_v23 = vpop.f32.mrb[158].mxu0 }
0x18d0   : > { %v11982_v25 = vadd.f32 %v11981_v23, %v11860_v54  ;;  %v11983_v19 = vpop.f32.mrb[159].mxu0 }
0x18d1   : > { %v11984_v20 = vadd.f32 %v11983_v19, %v11864_v6 }
0x18d2   : > { %v12012_v61 = vmax.f32 %v11982_v25, 0.0 }
0x18d3   : > { %v12013_v31 = vmax.f32 %v11984_v20, 0.0  ;;  %v11987_v13 = vpop.f32.mrb[160].mxu0 }
0x18d4   : > { %v11988_v15 = vadd.f32 %v11987_v13, %v11860_v54  ;;  %v11989_v62 = vpop.f32.mrb[161].mxu0 }
0x18d5   : > { %v11990_v36 = vadd.f32 %v11989_v62, %v11864_v6  ;;  %12137 = vmatprep.mubr.f32.mxu1 %v12013_v31 }
0x18d6   : > { %12138 = vmatmul.mubr.f32.gmra.mrb[146].mxu1 %v12012_v61  ;;  %v12014_v58 = vmax.f32 %v11988_v15, 0.0 }
0x18d7   : > { %v12015_v41 = vmax.f32 %v11990_v36, 0.0  ;;  %v11993_v8 = vpop.f32.mrb[162].mxu0 }
0x18d8   : > { %v11994_v39 = vadd.f32 %v11993_v8, %v11860_v54  ;;  %v11995_v26 = vpop.f32.mrb[163].mxu0 }
0x18d9   : > { %v11996_v33 = vadd.f32 %v11995_v26, %v11864_v6  ;;  %12142 = vmatprep.mubr.f32.mxu1 %v12015_v41 }
0x18da   : > { %12143 = vmatmul.mubr.f32.gmra.mrb[148].mxu1 %v12014_v58  ;;  %v12016_v46 = vmax.f32 %v11994_v39, 0.0 }
0x18db   : > { %v12017_v7 = vmax.f32 %v11996_v33, 0.0  ;;  %v11999_v9 = vpop.f32.mrb[164].mxu0 }
0x18dc   : > { %v12000_v16 = vadd.f32 %v11999_v9, %v11860_v54  ;;  %v12001_v42 = vpop.f32.mrb[165].mxu0 }
0x18dd   : > { %v12002_v2 = vadd.f32 %v12001_v42, %v11864_v6  ;;  %12147 = vmatprep.mubr.f32.mxu1 %v12017_v7 }
0x18de   : > { %12148 = vmatmul.mubr.f32.gmra.mrb[150].mxu1 %v12016_v46  ;;  %v12018_v22 = vmax.f32 %v12000_v16, 0.0 }
0x18df   : > { %v12019_v52 = vmax.f32 %v12002_v2, 0.0 }
0x18e1   : > { %12152 = vmatprep.mubr.f32.mxu1 %v12019_v52 }
0x18e2   : > { %12153 = vmatmul.mubr.f32.gmra.mrb[152].mxu1 %v12018_v22 }
0x1970   : > { %v13038_v32 = vpop.f32.mrb[138].mxu1 }
0x1971   : > { %v13039_v28 = vpop.f32.mrb[139].mxu1 }
0x1972   : > { %v13040_v12 = vadd.f32 %v13039_v28, %v13038_v32 }
0x1974   : > { %v12120_v50 = vadd.f32 %v13040_v12, %v12052_v24  ;;  %v13041_v38 = vpop.f32.mrb[140].mxu1 }
0x1975   : > { %v13042_v35 = vpop.f32.mrb[141].mxu1 }
0x1976   : > { %v13043_v48 = vadd.f32 %v13042_v35, %v13041_v38  ;;  %v12158_v54 = vadd.f32 %v12120_v50, %v16584_v18 }
0x1978   : > { %v12125_v6 = vadd.f32 %v13043_v48, %v12052_v24  ;;  %v13044_v34 = vpop.f32.mrb[142].mxu1  ;;  %v12166_v1 = vsel %vm544_vm2, %v12158_v54, 0.0 }
0x1979   : > { %12167 = vadd.xlane.f32.xlu1 %v12166_v1  ;;  %v13045_v60 = vpop.f32.mrb[143].mxu1 }
0x197a   : > { %v13046_v0 = vadd.f32 %v13045_v60, %v13044_v34  ;;  %v12159_v63 = vadd.f32 %v12125_v6, %v16589_v57 }
0x197c   : > { %v12130_v21 = vadd.f32 %v13046_v0, %v12052_v24  ;;  %v13047_v47 = vpop.f32.mrb[144].mxu1  ;;  %v12169_v55 = vsel %vm544_vm2, %v12159_v63, 0.0 }
0x197d   : > { %12170 = vadd.xlane.f32.xlu0 %v12169_v55  ;;  %v13048_v30 = vpop.f32.mrb[145].mxu1 }
0x197e   : > { %v13049_v49 = vadd.f32 %v13048_v30, %v13047_v47  ;;  %v12160_v51 = vadd.f32 %v12130_v21, %v16595_v56 }
0x1980   : > { %v12135_v59 = vadd.f32 %v13049_v49, %v12052_v24  ;;  %v12172_v18 = vsel %vm544_vm2, %v12160_v51, 0.0 }
0x1981   : > { %12173 = vadd.xlane.f32.xlu1 %v12172_v18 }
0x1982   : > { %v12161_v40 = vadd.f32 %v12135_v59, %v16601_v10 }
0x1984   : > { %v12175_v45 = vsel %vm544_vm2, %v12161_v40, 0.0 }
0x1985   : > { %12176 = vadd.xlane.f32.xlu0 %v12175_v45 }
0x19a9   : > { %v13050_v4 = vpop.f32.mrb[146].mxu1 }
0x19aa   : > { %v13051_v57 = vpop.f32.mrb[147].mxu1 }
0x19ab   : > { %v13052_v14 = vadd.f32 %v13051_v57, %v13050_v4  ;;  %v12288_v4 = vld [vmem:[%s16811_s7] sm:$0xff]  ;;  %v12289_v57 = vld [vmem:[%s16811_s7 + $0x8] sm:$0xff] }
0x19ad   : > { %v12140_v11 = vadd.f32 %v13052_v14, %v12052_v24  ;;  %v13053_v44 = vpop.f32.mrb[148].mxu1  ;;  %v13853_v14 = vpack.c.bf16 %v12289_v57, %v12288_v4 }
0x19ae   : > { %v13054_v27 = vpop.f32.mrb[149].mxu1 }
0x19af   : > { %v13055_v29 = vadd.f32 %v13054_v27, %v13053_v44  ;;  %v12162_v53 = vadd.f32 %v12140_v11, %v16608_v17  ;;  %v14298_v11 = vmov 0.0|0.0   ;;  %v12290_v44 = vld [vmem:[%s16811_s7 + $0x10] sm:$0xff]  ;;  %v12291_v27 = vld [vmem:[%s16811_s7 + $0x18] sm:$0xff] }
0x19b0   : > { %13852 = vmatprep.subr.bf16.mxu0 %v14298_v11 }
0x19b1   : > { %v12145_v3 = vadd.f32 %v13055_v29, %v12052_v24  ;;  %v13056_v56 = vpop.f32.mrb[150].mxu1  ;;  %v12178_v23 = vsel %vm544_vm2, %v12162_v53, 0.0  ;;  %13854 = vmatpush3.bf16.msra.mxu0 %v13853_v14  ;;  %v13856_v29 = vpack.c.bf16 %v12291_v27, %v12290_v44 }
0x19b2   : > { %12179 = vadd.xlane.f32.xlu1 %v12178_v23  ;;  %v13057_v25 = vpop.f32.mrb[151].mxu1  ;;  %13855 = vmatprep.subr.bf16.mxu0 %v14298_v11  ;;  %v12294_v23 = vld [vmem:[%s16811_s7 + $0x30] sm:$0xff] }
0x19b3   : > { %v13058_v19 = vadd.f32 %v13057_v25, %v13056_v56  ;;  %v12163_v10 = vadd.f32 %v12145_v3, %v16613_v37  ;;  %v12293_v3 = vld [vmem:[%s16811_s7 + $0x28] sm:$0xff]  ;;  %v12295_v25 = vld [vmem:[%s16811_s7 + $0x38] sm:$0xff] }
0x19b5   : > { %v12150_v20 = vadd.f32 %v13058_v19, %v12052_v24  ;;  %v13059_v31 = vpop.f32.mrb[152].mxu1  ;;  %v12181_v13 = vsel %vm544_vm2, %v12163_v10, 0.0  ;;  %13857 = vmatpush3.bf16.msra.mxu0 %v13856_v29  ;;  %v13862_v19 = vpack.c.bf16 %v12295_v25, %v12294_v23 }
0x19b6   : > { %12182 = vadd.xlane.f32.xlu0 %v12181_v13  ;;  %v13060_v61 = vpop.f32.mrb[153].mxu1  ;;  %13858 = vmatprep.subr.bf16.mxu0 %v14298_v11 }
0x19b7   : > { %v13061_v15 = vadd.f32 %v13060_v61, %v13059_v31  ;;  %v12164_v62 = vadd.f32 %v12150_v20, %v16620_v5 }
0x19b9   : > { %v12155_v36 = vadd.f32 %v13061_v15, %v12052_v24  ;;  %v12184_v17 = vsel %vm544_vm2, %v12164_v62, 0.0 }
0x19ba   : > { %12185 = vadd.xlane.f32.xlu1 %v12184_v17 }
0x19bb   : > { %v12165_v41 = vadd.f32 %v12155_v36, %v16625_v43 }
0x19bd   : > { %v12187_v8 = vsel %vm544_vm2, %v12165_v41, 0.0 }
0x19be   : > { %12188 = vadd.xlane.f32.xlu0 %v12187_v8 }
0x1a06   : > { %v12168_v58 = vpop.xlane.xlu1 %12167 }
0x1a07   : > { %v12190_v37 = vmul.f32 0.015625, %v12168_v58 }
0x1a09   : > { %v16675_v39 = vsub.f32 %v12158_v54, %v12190_v37 }
0x1a0a   : > { %v12171_v26 = vpop.xlane.xlu0 %12170 }
0x1a0b   : > { %v12191_v33 = vmul.f32 0.015625, %v12171_v26  ;;  %v12206_v7 = vmul.f32 %v16675_v39, %v16675_v39 }
0x1a0d   : > { %v16679_v9 = vsub.f32 %v12159_v63, %v12191_v33  ;;  %v12214_v5 = vsel %vm544_vm2, %v12206_v7, 0.0 }
0x1a0e   : > { %v12174_v46 = vpop.xlane.xlu1 %12173  ;;  %12215 = vadd.xlane.f32.xlu1 %v12214_v5 }
0x1a0f   : > { %v12192_v16 = vmul.f32 0.015625, %v12174_v46  ;;  %v12207_v43 = vmul.f32 %v16679_v9, %v16679_v9 }
0x1a11   : > { %v16684_v42 = vsub.f32 %v12160_v51, %v12192_v16  ;;  %v12217_v2 = vsel %vm544_vm2, %v12207_v43, 0.0 }
0x1a12   : > { %12218 = vadd.xlane.f32.xlu0 %v12217_v2  ;;  %v12177_v52 = vpop.xlane.xlu0 %12176 }
0x1a13   : > { %v12193_v22 = vmul.f32 0.015625, %v12177_v52  ;;  %v12208_v32 = vmul.f32 %v16684_v42, %v16684_v42 }
0x1a15   : > { %v16689_v24 = vsub.f32 %v12161_v40, %v12193_v22  ;;  %v12220_v28 = vsel %vm544_vm2, %v12208_v32, 0.0 }
0x1a16   : > { %12221 = vadd.xlane.f32.xlu1 %v12220_v28 }
0x1a17   : > { %v12209_v12 = vmul.f32 %v16689_v24, %v16689_v24 }
0x1a19   : > { %v12223_v50 = vsel %vm544_vm2, %v12209_v12, 0.0 }
0x1a1a   : > { %12224 = vadd.xlane.f32.xlu0 %v12223_v50 }
0x1a3f   : > { %v12180_v38 = vpop.xlane.xlu1 %12179 }
0x1a40   : > { %v12194_v35 = vmul.f32 0.015625, %v12180_v38 }
0x1a42   : > { %v16695_v48 = vsub.f32 %v12162_v53, %v12194_v35  ;;  %v12292_v53 = vld [vmem:[%s16811_s7 + $0x20] sm:$0xff] }
0x1a43   : > { %v12183_v54 = vpop.xlane.xlu0 %12182  ;;  %v13859_v56 = vpack.c.bf16 %v12293_v3, %v12292_v53 }
0x1a44   : > { %v12195_v6 = vmul.f32 0.015625, %v12183_v54  ;;  %v12210_v34 = vmul.f32 %v16695_v48, %v16695_v48 }
0x1a45   : > { %13860 = vmatpush3.bf16.msra.mxu0 %v13859_v56 }
0x1a46   : > { %v16699_v1 = vsub.f32 %v12163_v10, %v12195_v6  ;;  %v12226_v60 = vsel %vm544_vm2, %v12210_v34, 0.0  ;;  %13861 = vmatprep.subr.bf16.mxu0 %v14298_v11  ;;  %v12270_v34 = vld [vmem:[%s16812_s8 + $0x7] ss:$0 sm:$0xff] }
0x1a47   : > { %12227 = vadd.xlane.f32.xlu1 %v12226_v60  ;;  %v12186_v0 = vpop.xlane.xlu1 %12185 }
0x1a48   : > { %v12196_v63 = vmul.f32 0.015625, %v12186_v0  ;;  %v12211_v21 = vmul.f32 %v16699_v1, %v16699_v1 }
0x1a49   : > { %13863 = vmatpush3.bf16.msra.mxu0 %v13862_v19 }
0x1a4a   : > { %v16704_v47 = vsub.f32 %v12164_v62, %v12196_v63  ;;  %v12229_v55 = vsel %vm544_vm2, %v12211_v21, 0.0 }
0x1a4b   : > { %12230 = vadd.xlane.f32.xlu0 %v12229_v55  ;;  %v12189_v30 = vpop.xlane.xlu0 %12188 }
0x1a4c   : > { %v12197_v49 = vmul.f32 0.015625, %v12189_v30  ;;  %v12212_v51 = vmul.f32 %v16704_v47, %v16704_v47 }
0x1a4e   : > { %v16709_v59 = vsub.f32 %v12165_v41, %v12197_v49  ;;  %v12232_v18 = vsel %vm544_vm2, %v12212_v51, 0.0 }
0x1a4f   : > { %12233 = vadd.xlane.f32.xlu1 %v12232_v18 }
0x1a50   : > { %v12213_v40 = vmul.f32 %v16709_v59, %v16709_v59 }
0x1a52   : > { %v12235_v45 = vsel %vm544_vm2, %v12213_v40, 0.0 }
0x1a53   : > { %12236 = vadd.xlane.f32.xlu0 %v12235_v45 }
0x1a9b   : > { %v12216_v10 = vpop.xlane.xlu1 %12215 }
0x1a9c   : > { %v12238_v13 = vmul.f32 0.015625, %v12216_v10 }
0x1a9e   : > { %v12246_v17 = vadd.f32 1e-05, %v12238_v13 }
0x1a9f   : > { %v12219_v20 = vpop.xlane.xlu0 %12218 }
0x1aa0   : > { %v12239_v15 = vmul.f32 0.015625, %v12219_v20  ;;  %14201 = vrsqrt.f32 %v12246_v17 }
0x1aa2   : > { %v12247_v41 = vadd.f32 1e-05, %v12239_v15 }
0x1aa3   : > { %v12222_v31 = vpop.xlane.xlu1 %12221 }
0x1aa4   : > { %v12240_v62 = vmul.f32 0.015625, %v12222_v31  ;;  %14203 = vrsqrt.f32 %v12247_v41 }
0x1aa6   : > { %v12248_v8 = vadd.f32 1e-05, %v12240_v62 }
0x1aa7   : > { %v12225_v61 = vpop.xlane.xlu0 %12224 }
0x1aa8   : > { %v12241_v36 = vmul.f32 0.015625, %v12225_v61  ;;  %14205 = vrsqrt.f32 %v12248_v8 }
0x1aaa   : > { %v12249_v58 = vadd.f32 1e-05, %v12241_v36  ;;  %v14202_v46 = vpop.eup %14201 }
0x1aab   : > { %v12262_v35 = vmul.f32 %v14202_v46, %v16675_v39  ;;  %v12279_v39 = vld [vmem:[%s16812_s8 + $0x10] ss:$0 sm:$0xff] }
0x1aac   : > { %14207 = vrsqrt.f32 %v12249_v58 }
0x1aad   : > { %v12271_v55 = vmul.f32 %v12270_v34, %v12262_v35 }
0x1aae   : > { %v14204_v43 = vpop.eup %14203 }
0x1aaf   : > { %v12263_v28 = vmul.f32 %v14204_v43, %v16679_v9  ;;  %v12280_v40 = vadd.f32 %v12279_v39, %v12271_v55 }
0x1ab1   : > { %v12272_v0 = vmul.f32 %v12270_v34, %v12263_v28  ;;  %v12305_v29 = vrot.slane %v12280_v40, 7 }
0x1ab2   : > { %v14206_v52 = vpop.eup %14205 }
0x1ab3   : > { %v12264_v50 = vmul.f32 %v14206_v52, %v16684_v42  ;;  %v12281_v49 = vadd.f32 %v12279_v39, %v12272_v0 }
0x1ab5   : > { %v12273_v21 = vmul.f32 %v12270_v34, %v12264_v50  ;;  %v12306_v11 = vrot.slane %v12281_v49, 6 }
0x1ab6   : > { %v14208_v32 = vpop.eup %14207 }
0x1ab7   : > { %v12265_v54 = vmul.f32 %v14208_v32, %v16689_v24  ;;  %v12282_v51 = vadd.f32 %v12279_v39, %v12273_v21  ;;  %v12308_v25 = vsel %vm12307_vm11, %v12306_v11, %v12305_v29 }
0x1ab9   : > { %v12274_v30 = vmul.f32 %v12270_v34, %v12265_v54 }
0x1abb   : > { %v12283_v45 = vadd.f32 %v12279_v39, %v12274_v30 }
0x1abd   : > { %v12312_v53 = vrot.slane %v12283_v45, 4 }
0x1ad4   : > { %v12228_v37 = vpop.xlane.xlu1 %12227 }
0x1ad5   : > { %v12242_v26 = vmul.f32 0.015625, %v12228_v37 }
0x1ad7   : > { %v12250_v33 = vadd.f32 1e-05, %v12242_v26 }
0x1ad8   : > { %v12231_v7 = vpop.xlane.xlu0 %12230 }
0x1ad9   : > { %14209 = vrsqrt.f32 %v12250_v33  ;;  %v12243_v5 = vmul.f32 0.015625, %v12231_v7 }
0x1adb   : > { %v12251_v16 = vadd.f32 1e-05, %v12243_v5 }
0x1adc   : > { %v12234_v2 = vpop.xlane.xlu1 %12233 }
0x1add   : > { %14211 = vrsqrt.f32 %v12251_v16  ;;  %v12244_v22 = vmul.f32 0.015625, %v12234_v2 }
0x1adf   : > { %v12252_v12 = vadd.f32 1e-05, %v12244_v22 }
0x1ae0   : > { %v12237_v38 = vpop.xlane.xlu0 %12236 }
0x1ae1   : > { %14213 = vrsqrt.f32 %v12252_v12  ;;  %v12245_v6 = vmul.f32 0.015625, %v12237_v38 }
0x1ae3   : > { %v14210_v60 = vpop.eup %14209  ;;  %v12253_v63 = vadd.f32 1e-05, %v12245_v6 }
0x1ae4   : > { %v12266_v9 = vmul.f32 %v14210_v60, %v16695_v48  ;;  %v12309_v48 = vrot.slane %v12282_v51, 5 }
0x1ae5   : > { %14215 = vrsqrt.f32 %v12253_v63 }
0x1ae6   : > { %v12275_v42 = vmul.f32 %v12270_v34, %v12266_v9  ;;  %v12311_v20 = vsel %vm12310_vm12, %v12309_v48, %v12308_v25 }
0x1ae7   : > { %v14212_v24 = vpop.eup %14211  ;;  %v12314_v31 = vsel %vm12313_vm13, %v12312_v53, %v12311_v20 }
0x1ae8   : > { %v12267_v18 = vmul.f32 %v14212_v24, %v16699_v1  ;;  %v12284_v4 = vadd.f32 %v12279_v39, %v12275_v42 }
0x1aea   : > { %v12276_v57 = vmul.f32 %v12270_v34, %v12267_v18  ;;  %v12315_v3 = vrot.slane %v12284_v4, 3 }
0x1aeb   : > { %v14214_v14 = vpop.eup %14213 }
0x1aec   : > { %v12285_v44 = vadd.f32 %v12279_v39, %v12276_v57  ;;  %v12268_v27 = vmul.f32 %v14214_v14, %v16704_v47  ;;  %v12317_v13 = vsel %vm12316_vm14, %v12315_v3, %v12314_v31 }
0x1aee   : > { %v12277_v56 = vmul.f32 %v12270_v34, %v12268_v27  ;;  %v12318_v1 = vrot.slane %v12285_v44, 2 }
0x1aef   : > { %v14216_v23 = vpop.eup %14215 }
0x1af0   : > { %v12269_v19 = vmul.f32 %v14216_v23, %v16709_v59  ;;  %v12286_v10 = vadd.f32 %v12279_v39, %v12277_v56  ;;  %v12320_v15 = vsel %vm12319_vm15, %v12318_v1, %v12317_v13  ;;  %v12296_v59 = vld [vmem:[%s16812_s8 + $0x11] ss:$0 sm:$0xff] }
0x1af2   : > { %v12278_v47 = vmul.f32 %v12270_v34, %v12269_v19  ;;  %v12321_v61 = vrot.slane %v12286_v10, 1 }
0x1af4   : > { %v12287_v62 = vadd.f32 %v12279_v39, %v12278_v47  ;;  %v12323_v36 = vsel %vm12322_vm0, %v12321_v61, %v12320_v15 }
0x1af6   : > { %v12325_v17 = vsel %vm12324_vm1, %v12287_v62, %v12323_v36 }
0x1af7   : > { %13770 = vmatmul.mubr.msk.f32.vlgmr.msra.gmra.mrb[166].mxu0 %vm544_vm2, %v12325_v17 }
0x1bca   : > { %v12394_v41 = vpop.f32.mrb[166].mxu0 }
0x1bcb   : > { %v12395_v8 = vadd.f32 %v12394_v41, %v12296_v59  ;;  %v13771_v58 = vpop.f32.mrb[167].mxu0 }
0x1bcd   : > { %12398 = vst [vmem:[%s342_s17] sm:$0xff] %v12395_v8 }
0x1bce   : > { %14230 = shalt.err (!%p14227_p3)
}
0x1bcf   : > { %s14231_s22 = scalar_lea.hbm %s16762_s28, 128  ;;  %s14235_s17 = scalar_lea.hbm %s16813_s9, 256 }
0x1bd0   : > { %p14232_p4 = scmp.ne.s32.totalorder %s16762_s28, %s14231_s22  ;;  %p14236_p9 = scmp.lt.u32.totalorder %s16762_s28, %s16813_s9 }
0x1bd1   : > { %p14237_p10 = scmp.lt.u32.totalorder %s14235_s17, %s14231_s22  ;;  %p14239_p12 = scmp.lt.u32.totalorder %s14231_s22, %s16762_s28 }
0x1bd2   : > { %p14233_p7 = pnand %p14232_p4, %p14388_p5 }
0x1bd3   : > { %p14238_p11 = por %p14237_p10, %p14236_p9 }
0x1bd4   : > { %p14234_p8 = pneg %p14233_p7 }
0x1bd5   : > { %p14240_p13 = por %p14239_p12, %p14238_p11 }
0x1bd7   : > { %p14241_p0 = pnand %p14240_p13, %p14234_p8 }
0x1bd9   : > { %14244 = shalt.err (!%p14241_p0)
}
0x1bda   : > { %13872 = dma.vmem_to_hbm [thread:$0]  (%p14388_p5), %s16764_s25, 128, %s16762_s28, %s12400_s14  }
0x1bdb PF: > { %p13878_p1 = scmp.ge.s32.totalorder %s14279_s12, 2  ;;  %s12425_s21 = sand.u32 1, %s14267_s30  }
0x1bdc   : > { %s12426_s13 = scalar_lea.sflag [#allocation3], %s12425_s21 }
0x1bdd   : > { %p13875_p2 = pnand %p13878_p1, %p14392_p6 }
0x1bdf   : > { %14262 = dma.done.wait (!%p13875_p2), %s12426_s13, 128  }
0x1be0   : > { %14264 = vsyncadd (!%p13875_p2), %s12426_s13, 4294967168  ;;  %p19_p3 = scmp.ge.s32.totalorder %s14375_s15, 4   ;;  %s16915_s30 = smov %s14271_s10 }
0x1be1   : > { %s16916_s10 = smov %s14275_s11  ;;  %s16917_s11 = smov %s14386_s18 }
0x1be2   : > { %s16918_s12 = smov %s14375_s15  ;;  %21 = sbr.rel (!%p19_p3) target bundleno = 3 (0x3), region = 96 }
0x1be9   :  { %12431 = vsyncpa [#allocation3], 1 }
0x1bea   :  { %12433 = vsyncpa [#allocation3 + $0x1], 1 }

</bundles_post_ra>
